<compile_context>
chip_gen: v5e
topology: v5e:2x2
jax: 0.10.0
libtpu: 0.0.40
codegen_flags: <defaults>
</compile_context>

<pallas_src>
import functools

import jax
import jax.numpy as jnp
from jax import lax
from jax.experimental import pallas as pl
from jax.experimental.pallas import tpu as pltpu

# ----------------------------------------------------------------------------
# Small synthetic config (same structure as the CLIPVisionConfig in the module)
# ----------------------------------------------------------------------------
IMAGE_SIZE = 16
PATCH_SIZE = 4
WIDTH = 32                    # hidden_size
HEADS = 4                     # num_attention_heads
LAYERS = 3                    # num_hidden_layers
HEAD_DIM = WIDTH // HEADS
NUM_PATCHES = (IMAGE_SIZE // PATCH_SIZE) ** 2
SEQ = NUM_PATCHES + 1         # +1 for CLS token
MLP_DIM = WIDTH * 4
PATCH_FEATS = 3 * PATCH_SIZE * PATCH_SIZE          # K = flattened patch features
LN_EPS = 1e-5                                      # torch LayerNorm default
SELECT_LAYER = -2                                  # args.mm_vision_select_layer
SELECT_FEATURE = "patch"                           # drop CLS token
APPROX_SOFTMAX_RECIP = True                        # EUP vrcp for softmax denominator

# Row layout of the packed per-layer "small" slab (width = MLP_DIM lanes, zero-padded)
_R_LN1G, _R_LN1B, _R_BQKV, _R_BO, _R_LN2G, _R_LN2B, _R_BFC, _R_BPR = range(8)
_SMALL_ROWS = 8


# ----------------------------------------------------------------------------
# Kernel helpers
# ----------------------------------------------------------------------------
def _layernorm(x, g, b):
    mu = jnp.mean(x, axis=-1, keepdims=True)
    var = jnp.mean((x - mu) ** 2, axis=-1, keepdims=True)
    return (x - mu) * lax.rsqrt(var + LN_EPS) * g + b


# ----------------------------------------------------------------------------
# Fused tower kernel: grid = (batch_blocks, layer)
#   l == 0 : x = ln_pre(patch_embed(patches) + pos_aug)      (pos_aug row0 = pos0+cls)
#   every l: x = x + out_proj(MHA(ln_1(x)))
#            x = x + c_proj(QuickGELU(c_fc(ln_2(x))))
# x lives in the output VMEM block, revisited across the layer axis.
# ----------------------------------------------------------------------------
def tower_kernel(patches_ref, embed_ref, wqkv_ref, wo_ref, wfc_ref, wpr_ref,
                 small_ref, x_ref):
    l = pl.program_id(1)
    bt = x_ref.shape[0]
    K = PATCH_FEATS

    # ---- layer 0 only: patch embedding + CLS + pos-embed + ln_pre ----
    @pl.when(l == 0)
    def _embed():
        w_patch = embed_ref[0:K, :]                       # (K, D)
        pos = embed_ref[K:K + SEQ, :]                     # (S, D); row 0 = pos0 + cls
        g = embed_ref[K + SEQ:K + SEQ + 1, :]             # (1, D) ln_pre gamma
        b = embed_ref[K + SEQ + 1:K + SEQ + 2, :]         # (1, D) ln_pre beta
        for img in range(bt):
            # patches row 0 is all-zero (CLS slot); pos row 0 carries class_embedding.
            emb = jnp.dot(patches_ref[img], w_patch,
                          preferred_element_type=jnp.float32)       # (S, D)
            x_ref[img] = _layernorm(emb + pos, g, b)

    # ---- per-layer params (fetched once per grid step, shared by all BT images) ----
    wqkv = wqkv_ref[0]                                    # (D, 3D), q-cols pre-scaled
    wo = wo_ref[0]                                        # (D, D)
    wfc = wfc_ref[0]                                      # (D, 4D)
    wpr = wpr_ref[0]                                      # (4D, D)
    sm = small_ref[0]                                     # (8, 4D) packed small params
    ln1_g, ln1_b = sm[_R_LN1G:_R_LN1G + 1, :WIDTH], sm[_R_LN1B:_R_LN1B + 1, :WIDTH]
    bqkv = sm[_R_BQKV:_R_BQKV + 1, :3 * WIDTH]
    bo = sm[_R_BO:_R_BO + 1, :WIDTH]
    ln2_g, ln2_b = sm[_R_LN2G:_R_LN2G + 1, :WIDTH], sm[_R_LN2B:_R_LN2B + 1, :WIDTH]
    bfc = sm[_R_BFC:_R_BFC + 1, :MLP_DIM]
    bpr = sm[_R_BPR:_R_BPR + 1, :WIDTH]

    for img in range(bt):                                 # static unroll over the block
        x = x_ref[img]                                    # (S, D), VMEM-resident

        # ---- attention: one fused QKV matmul, heads split only for scores ----
        h = _layernorm(x, ln1_g, ln1_b)
        qkv = jnp.dot(h, wqkv, preferred_element_type=jnp.float32) + bqkv   # (S, 3D)
        ctx_heads = []
        for hh in range(HEADS):
            o = hh * HEAD_DIM
            q_h = qkv[:, o:o + HEAD_DIM]                                    # (S, Hd)
            k_h = qkv[:, WIDTH + o:WIDTH + o + HEAD_DIM]
            v_h = qkv[:, 2 * WIDTH + o:2 * WIDTH + o + HEAD_DIM]
            s_h = jnp.einsum("qe,ke->qk", q_h, k_h,
                             preferred_element_type=jnp.float32)            # (S, S)
            s_h = s_h - jnp.max(s_h, axis=-1, keepdims=True)
            p_h = jnp.exp(s_h)
            denom = jnp.sum(p_h, axis=-1, keepdims=True)
            if APPROX_SOFTMAX_RECIP:
                p_h = p_h * pl.reciprocal(denom, approx=True)
            else:
                p_h = p_h / denom
            ctx_heads.append(jnp.dot(p_h, v_h,
                                     preferred_element_type=jnp.float32))   # (S, Hd)
        ctx = jnp.concatenate(ctx_heads, axis=-1)                           # (S, D)
        x = x + jnp.dot(ctx, wo, preferred_element_type=jnp.float32) + bo   # one out-proj

        # ---- MLP ----
        h2 = _layernorm(x, ln2_g, ln2_b)
        f = jnp.dot(h2, wfc, preferred_element_type=jnp.float32) + bfc
        f = f * jax.nn.sigmoid(1.702 * f)                                   # QuickGELU
        f = jnp.dot(f, wpr, preferred_element_type=jnp.float32) + bpr
        x_ref[img] = x + f


def pallas_tower(patches_ext, embed_slab, sp, *, batch_block=None):
    B, S, K = patches_ext.shape
    L = sp["wqkv"].shape[0]
    bt = B if batch_block is None else batch_block
    assert B % bt == 0
    # TODO(synk): on v7x keep B // bt >= 2 (and even) so both TensorCores get work.

    def per_layer(arr):
        return pl.BlockSpec((1,) + arr.shape[1:], lambda b, l: (l, 0, 0))

    return pl.pallas_call(
        tower_kernel,
        out_shape=jax.ShapeDtypeStruct((B, S, WIDTH), jnp.float32),
        grid=(B // bt, L),
        in_specs=[
            pl.BlockSpec((bt, S, K), lambda b, l: (b, 0, 0)),       # per-batch patches
            pl.BlockSpec(embed_slab.shape, lambda b, l: (0, 0)),    # replicated embed slab
            per_layer(sp["wqkv"]),                                  # (L, D, 3D)
            per_layer(sp["wo"]),                                    # (L, D, D)
            per_layer(sp["wfc"]),                                   # (L, D, 4D)
            per_layer(sp["wpr"]),                                   # (L, 4D, D)
            per_layer(sp["small"]),                                 # (L, 8, 4D)
        ],
        # Output block index ignores l -> x stays resident in VMEM across layers.
        out_specs=pl.BlockSpec((bt, S, WIDTH), lambda b, l: (b, 0, 0)),
        compiler_params=pltpu.CompilerParams(
            dimension_semantics=("parallel", "arbitrary"),
            vmem_limit_bytes=48 * 1024 * 1024),
    )(patches_ext, embed_slab, sp["wqkv"], sp["wo"], sp["wfc"], sp["wpr"], sp["small"])


# ----------------------------------------------------------------------------
# Host-side weight restructuring (done once, outside the kernel)
# ----------------------------------------------------------------------------
def stack_layer_weights(params, num_layers_used):
    scale = HEAD_DIM ** -0.5
    layers = params["layers"][:num_layers_used]

    def st(fn):
        return jnp.stack([fn(lp) for lp in layers], axis=0)

    def fused_wqkv(lp):                        # (D, 3D); 1/sqrt(Hd) folded into q cols
        w = lp["w_qkv"]
        return jnp.concatenate([w[:, :WIDTH] * scale, w[:, WIDTH:]], axis=1)

    def small(lp):                             # (8, 4D) packed biases + LN params
        rows = jnp.zeros((_SMALL_ROWS, MLP_DIM), jnp.float32)
        bqkv = jnp.concatenate([lp["b_qkv"][:WIDTH] * scale, lp["b_qkv"][WIDTH:]])
        rows = rows.at[_R_LN1G, :WIDTH].set(lp["ln1_g"])
        rows = rows.at[_R_LN1B, :WIDTH].set(lp["ln1_b"])
        rows = rows.at[_R_BQKV, :3 * WIDTH].set(bqkv)
        rows = rows.at[_R_BO, :WIDTH].set(lp["b_out"])
        rows = rows.at[_R_LN2G, :WIDTH].set(lp["ln2_g"])
        rows = rows.at[_R_LN2B, :WIDTH].set(lp["ln2_b"])
        rows = rows.at[_R_BFC, :MLP_DIM].set(lp["b_fc"])
        rows = rows.at[_R_BPR, :WIDTH].set(lp["b_proj"])
        return rows

    return dict(
        wqkv=st(fused_wqkv),
        wo=st(lambda lp: lp["w_out"]),
        wfc=st(lambda lp: lp["w_fc"]),
        wpr=st(lambda lp: lp["w_proj"]),
        small=st(small),
    )


def build_embed_slab(params):
    # Rows: [w_patch (K, D) | pos+cls (S, D) | ln_pre_g (1, D) | ln_pre_b (1, D)].
    # NOTE: exact because conv1 has bias=False in the torch module (CLS row stays 0
    # through the patch matmul and its pos row carries class_embedding).
    w_patch = params["conv1_w"].reshape(WIDTH, -1).T                         # (K, D)
    pos_aug = params["positional_embedding"].at[0].add(params["class_embedding"])
    g = params["ln_pre_g"].reshape(1, WIDTH)
    b = params["ln_pre_b"].reshape(1, WIDTH)
    return jnp.concatenate([w_patch, pos_aug, g, b], axis=0)                 # (K+S+2, D)


# ----------------------------------------------------------------------------
# Parameter init (deterministic, synthetic; mirrors the torch module's layout)
# ----------------------------------------------------------------------------
def init_params(key):
    ks = jax.random.split(key, 3 + LAYERS)
    scale = WIDTH ** (-0.5)
    params = {
        "conv1_w": 0.02 * jax.random.normal(ks[0], (WIDTH, 3, PATCH_SIZE, PATCH_SIZE), jnp.float32),
        "class_embedding": scale * jax.random.normal(ks[1], (WIDTH,), jnp.float32),
        "positional_embedding": scale * jax.random.normal(ks[2], (SEQ, WIDTH), jnp.float32),
        "ln_pre_g": jnp.ones((WIDTH,), jnp.float32),
        "ln_pre_b": jnp.zeros((WIDTH,), jnp.float32),
        "layers": [],
    }
    for i in range(LAYERS):
        lk = jax.random.split(ks[3 + i], 8)
        # Linear / in_proj weights stored transposed to (in, out): y = x @ W + b.
        params["layers"].append(dict(
            ln1_g=jnp.ones((WIDTH,), jnp.float32),
            ln1_b=jnp.zeros((WIDTH,), jnp.float32),
            w_qkv=0.02 * jax.random.normal(lk[0], (WIDTH, 3 * WIDTH), jnp.float32),
            b_qkv=0.02 * jax.random.normal(lk[1], (3 * WIDTH,), jnp.float32),
            w_out=0.02 * jax.random.normal(lk[2], (WIDTH, WIDTH), jnp.float32),
            b_out=0.02 * jax.random.normal(lk[3], (WIDTH,), jnp.float32),
            ln2_g=jnp.ones((WIDTH,), jnp.float32),
            ln2_b=jnp.zeros((WIDTH,), jnp.float32),
            w_fc=0.02 * jax.random.normal(lk[4], (WIDTH, MLP_DIM), jnp.float32),
            b_fc=0.02 * jax.random.normal(lk[5], (MLP_DIM,), jnp.float32),
            w_proj=0.02 * jax.random.normal(lk[6], (MLP_DIM, WIDTH), jnp.float32),
            b_proj=0.02 * jax.random.normal(lk[7], (WIDTH,), jnp.float32),
        ))
    return params


# ----------------------------------------------------------------------------
# Full UnicomVisionTower forward (batched tensor path of the torch module)
# ----------------------------------------------------------------------------
def unicom_vision_tower_forward(images, params):
    # images: (B, 3, H, W) NCHW, float32
    B, C, H, W = images.shape
    ps = PATCH_SIZE
    Hp, Wp = H // ps, W // ps
    P = Hp * Wp
    K = C * ps * ps

    # NCHW -> (B, P, K) patch rows (matches conv-weight (out, c, kh, kw) flattening).
    # TODO(synk): at real 336x336 images move this gather into the kernel.
    patches = images.reshape(B, C, Hp, ps, Wp, ps)
    patches = patches.transpose(0, 2, 4, 1, 3, 5).reshape(B, P, K)
    # Row 0 = CLS slot: a zero patch row whose positional-embedding row carries
    # class_embedding, so concat([cls, conv(x)], 1) + pos is reproduced exactly.
    patches_ext = jnp.concatenate([jnp.zeros((B, 1, K), patches.dtype), patches], axis=1)

    embed_slab = build_embed_slab(params)

    # Only layers whose output is consumed are executed (select_layer = -2 drops the last).
    sel_idx = SELECT_LAYER % LAYERS
    sp = stack_layer_weights(params, sel_idx + 1)

    sel = pallas_tower(patches_ext, embed_slab, sp)         # == feats[SELECT_LAYER]
    if SELECT_FEATURE == "patch":
        sel = sel[:, 1:]                                    # drop CLS token
    return sel


# ----------------------------------------------------------------------------
# Pure-JAX reference (for correctness check)
# ----------------------------------------------------------------------------
def ref_forward(images, params):
    B, C, H, W = images.shape
    ps = PATCH_SIZE
    Hp, Wp = H // ps, W // ps
    P = Hp * Wp

    def ln(x, g, b):
        mu = x.mean(-1, keepdims=True)
        var = ((x - mu) ** 2).mean(-1, keepdims=True)
        return (x - mu) / jnp.sqrt(var + LN_EPS) * g + b

    patches = images.reshape(B, C, Hp, ps, Wp, ps)
    patches = patches.transpose(0, 2, 4, 1, 3, 5).reshape(B, P, C * ps * ps)
    w_patch = params["conv1_w"].reshape(WIDTH, -1).T
    emb = patches @ w_patch
    cls = jnp.broadcast_to(params["class_embedding"][None, None, :], (B, 1, WIDTH))
    x = jnp.concatenate([cls, emb], axis=1) + params["positional_embedding"][None]
    x = ln(x, params["ln_pre_g"], params["ln_pre_b"])

    feats = []
    for lp in params["layers"]:
        h = ln(x, lp["ln1_g"], lp["ln1_b"])
        qkv = h @ lp["w_qkv"] + lp["b_qkv"]
        q, k, v = jnp.split(qkv, 3, axis=-1)
        q = q.reshape(B, SEQ, HEADS, HEAD_DIM) / (HEAD_DIM ** 0.5)
        k = k.reshape(B, SEQ, HEADS, HEAD_DIM)
        v = v.reshape(B, SEQ, HEADS, HEAD_DIM)
        s = jnp.einsum("bqhd,bkhd->bhqk", q, k)
        p = jax.nn.softmax(s, axis=-1)
        a = jnp.einsum("bhqk,bkhd->bqhd", p, v).reshape(B, SEQ, WIDTH)
        x = x + (a @ lp["w_out"] + lp["b_out"])
        h2 = ln(x, lp["ln2_g"], lp["ln2_b"])
        f = h2 @ lp["w_fc"] + lp["b_fc"]
        f = f * jax.nn.sigmoid(1.702 * f)
        x = x + (f @ lp["w_proj"] + lp["b_proj"])
        feats.append(x)

    sel = feats[SELECT_LAYER]
    if SELECT_FEATURE == "patch":
        sel = sel[:, 1:]
    return sel


# ----------------------------------------------------------------------------
if __name__ == "__main__":
    key = jax.random.PRNGKey(0)
    k_img, k_param = jax.random.split(key)
    images = jax.random.normal(k_img, (2, 3, IMAGE_SIZE, IMAGE_SIZE), jnp.float32)
    params = init_params(k_param)

    fwd = jax.jit(functools.partial(unicom_vision_tower_forward, params=params))
    out = fwd(images)
    out = jax.block_until_ready(out)

    assert out.shape == (2, NUM_PATCHES, WIDTH), out.shape

    ref = ref_forward(images, params)
    err = float(jnp.max(jnp.abs(out - ref)))
    # Tolerance covers default (bf16-input) MXU matmul precision on both sides plus
    # the approx-reciprocal softmax denominator.
    if err > 1e-2:
        raise SystemExit(f"mismatch vs reference: max abs err = {err}")

    print("KERNEL_OK")
</pallas_src>

<mosaic_0001>
module attributes {stable_mosaic.version = 11 : i64} {
  func.func @tower_kernel(%arg0: i32, %arg1: i32, %arg2: memref<2x17x48xf32, #tpu.memory_space<vmem>>, %arg3: memref<67x32xf32, #tpu.memory_space<vmem>>, %arg4: memref<1x32x96xf32, #tpu.memory_space<vmem>>, %arg5: memref<1x32x32xf32, #tpu.memory_space<vmem>>, %arg6: memref<1x32x128xf32, #tpu.memory_space<vmem>>, %arg7: memref<1x128x32xf32, #tpu.memory_space<vmem>>, %arg8: memref<1x8x128xf32, #tpu.memory_space<vmem>>, %arg9: memref<2x17x32xf32, #tpu.memory_space<vmem>>) attributes {dimension_semantics = [#tpu.dimension_semantics<parallel>, #tpu.dimension_semantics<arbitrary>], iteration_bounds = array<i64: 1, 2>, scalar_prefetch = 0 : i64, scratch_operands = 0 : i64, tpu.core_type = #tpu.core_type<tc>, window_params = [{transform_indices = @transform_0, window_bounds = array<i64: 2, 17, 48>}, {pipeline_mode = #tpu.pipeline_mode<synchronous>, transform_indices = @transform_1, window_bounds = array<i64: 67, 32>}, {transform_indices = @transform_2, window_bounds = array<i64: 1, 32, 96>}, {transform_indices = @transform_3, window_bounds = array<i64: 1, 32, 32>}, {transform_indices = @transform_4, window_bounds = array<i64: 1, 32, 128>}, {transform_indices = @transform_5, window_bounds = array<i64: 1, 128, 32>}, {transform_indices = @transform_6, window_bounds = array<i64: 1, 8, 128>}, {transform_indices = @transform_7, window_bounds = array<i64: 2, 17, 32>}]} {
    %c0_i32 = arith.constant 0 : i32
    %0 = arith.cmpi eq, %arg1, %c0_i32 : i32
    %1 = arith.extui %0 : i1 to i32
    %c0_i32_0 = arith.constant 0 : i32
    %2 = arith.cmpi ne, %1, %c0_i32_0 : i32
    scf.if %2 {
      %c0_89 = arith.constant 0 : index
      %c0_90 = arith.constant 0 : index
      %285 = vector.load %arg3[%c0_89, %c0_90] : memref<67x32xf32, #tpu.memory_space<vmem>>, vector<48x32xf32>
      %c48 = arith.constant 48 : index
      %c0_91 = arith.constant 0 : index
      %286 = vector.load %arg3[%c48, %c0_91] : memref<67x32xf32, #tpu.memory_space<vmem>>, vector<17x32xf32>
      %c65 = arith.constant 65 : index
      %c0_92 = arith.constant 0 : index
      %287 = vector.load %arg3[%c65, %c0_92] : memref<67x32xf32, #tpu.memory_space<vmem>>, vector<1x32xf32>
      %c66 = arith.constant 66 : index
      %c0_93 = arith.constant 0 : index
      %288 = vector.load %arg3[%c66, %c0_93] : memref<67x32xf32, #tpu.memory_space<vmem>>, vector<1x32xf32>
      %c0_94 = arith.constant 0 : index
      %c0_95 = arith.constant 0 : index
      %c0_96 = arith.constant 0 : index
      %289 = vector.load %arg2[%c0_94, %c0_95, %c0_96] : memref<2x17x48xf32, #tpu.memory_space<vmem>>, vector<1x17x48xf32>
      %290 = vector.shape_cast %289 : vector<1x17x48xf32> to vector<17x48xf32>
      %cst_97 = arith.constant dense<0.000000e+00> : vector<17x32xf32>
      %291 = tpu.matmul %290, %285, %cst_97 {dimension_numbers = #tpu.dot_dimension_numbers<[1], [0], [0], [1], [0, 0, 1, 1], [], []>} : vector<17x48xf32>, vector<48x32xf32>, vector<17x32xf32> -> vector<17x32xf32>
      %292 = arith.addf %291, %286 : vector<17x32xf32>
      %cst_98 = arith.constant dense<0.000000e+00> : vector<17xf32>
      %293 = vector.multi_reduction <add>, %292, %cst_98 [1] : vector<17x32xf32> to vector<17xf32>
      %294 = vector.shape_cast %293 : vector<17xf32> to vector<17x1xf32>
      %cst_99 = arith.constant 3.200000e+01 : f32
      %295 = vector.broadcast %cst_99 : f32 to vector<17x1xf32>
      %296 = arith.divf %294, %295 : vector<17x1xf32>
      %297 = vector.broadcast %296 : vector<17x1xf32> to vector<17x32xf32>
      %298 = arith.subf %292, %297 : vector<17x32xf32>
      %299 = arith.mulf %298, %298 : vector<17x32xf32>
      %cst_100 = arith.constant dense<0.000000e+00> : vector<17xf32>
      %300 = vector.multi_reduction <add>, %299, %cst_100 [1] : vector<17x32xf32> to vector<17xf32>
      %301 = vector.shape_cast %300 : vector<17xf32> to vector<17x1xf32>
      %cst_101 = arith.constant 3.200000e+01 : f32
      %302 = vector.broadcast %cst_101 : f32 to vector<17x1xf32>
      %303 = arith.divf %301, %302 : vector<17x1xf32>
      %304 = vector.broadcast %296 : vector<17x1xf32> to vector<17x32xf32>
      %305 = arith.subf %292, %304 : vector<17x32xf32>
      %cst_102 = arith.constant 9.99999974E-6 : f32
      %306 = vector.broadcast %cst_102 : f32 to vector<17x1xf32>
      %307 = arith.addf %303, %306 : vector<17x1xf32>
      %308 = math.rsqrt %307 : vector<17x1xf32>
      %309 = vector.broadcast %308 : vector<17x1xf32> to vector<17x32xf32>
      %310 = arith.mulf %305, %309 : vector<17x32xf32>
      %311 = vector.broadcast %287 : vector<1x32xf32> to vector<17x32xf32>
      %312 = arith.mulf %310, %311 : vector<17x32xf32>
      %313 = vector.broadcast %288 : vector<1x32xf32> to vector<17x32xf32>
      %314 = arith.addf %312, %313 : vector<17x32xf32>
      %c0_103 = arith.constant 0 : index
      %c0_104 = arith.constant 0 : index
      %c0_105 = arith.constant 0 : index
      %315 = vector.load %arg9[%c0_103, %c0_104, %c0_105] : memref<2x17x32xf32, #tpu.memory_space<vmem>>, vector<1x17x32xf32>
      %316 = vector.shape_cast %315 : vector<1x17x32xf32> to vector<17x32xf32>
      %317 = vector.shape_cast %314 : vector<17x32xf32> to vector<1x17x32xf32>
      tpu.vector_store %arg9[%c0_103, %c0_104, %c0_105], %317 {strides = array<i32>} : memref<2x17x32xf32, #tpu.memory_space<vmem>>, vector<1x17x32xf32>,
      %c1_106 = arith.constant 1 : index
      %c0_107 = arith.constant 0 : index
      %c0_108 = arith.constant 0 : index
      %318 = vector.load %arg2[%c1_106, %c0_107, %c0_108] : memref<2x17x48xf32, #tpu.memory_space<vmem>>, vector<1x17x48xf32>
      %319 = vector.shape_cast %318 : vector<1x17x48xf32> to vector<17x48xf32>
      %cst_109 = arith.constant dense<0.000000e+00> : vector<17x32xf32>
      %320 = tpu.matmul %319, %285, %cst_109 {dimension_numbers = #tpu.dot_dimension_numbers<[1], [0], [0], [1], [0, 0, 1, 1], [], []>} : vector<17x48xf32>, vector<48x32xf32>, vector<17x32xf32> -> vector<17x32xf32>
      %321 = arith.addf %320, %286 : vector<17x32xf32>
      %cst_110 = arith.constant dense<0.000000e+00> : vector<17xf32>
      %322 = vector.multi_reduction <add>, %321, %cst_110 [1] : vector<17x32xf32> to vector<17xf32>
      %323 = vector.shape_cast %322 : vector<17xf32> to vector<17x1xf32>
      %cst_111 = arith.constant 3.200000e+01 : f32
      %324 = vector.broadcast %cst_111 : f32 to vector<17x1xf32>
      %325 = arith.divf %323, %324 : vector<17x1xf32>
      %326 = vector.broadcast %325 : vector<17x1xf32> to vector<17x32xf32>
      %327 = arith.subf %321, %326 : vector<17x32xf32>
      %328 = arith.mulf %327, %327 : vector<17x32xf32>
      %cst_112 = arith.constant dense<0.000000e+00> : vector<17xf32>
      %329 = vector.multi_reduction <add>, %328, %cst_112 [1] : vector<17x32xf32> to vector<17xf32>
      %330 = vector.shape_cast %329 : vector<17xf32> to vector<17x1xf32>
      %cst_113 = arith.constant 3.200000e+01 : f32
      %331 = vector.broadcast %cst_113 : f32 to vector<17x1xf32>
      %332 = arith.divf %330, %331 : vector<17x1xf32>
      %333 = vector.broadcast %325 : vector<17x1xf32> to vector<17x32xf32>
      %334 = arith.subf %321, %333 : vector<17x32xf32>
      %cst_114 = arith.constant 9.99999974E-6 : f32
      %335 = vector.broadcast %cst_114 : f32 to vector<17x1xf32>
      %336 = arith.addf %332, %335 : vector<17x1xf32>
      %337 = math.rsqrt %336 : vector<17x1xf32>
      %338 = vector.broadcast %337 : vector<17x1xf32> to vector<17x32xf32>
      %339 = arith.mulf %334, %338 : vector<17x32xf32>
      %340 = vector.broadcast %287 : vector<1x32xf32> to vector<17x32xf32>
      %341 = arith.mulf %339, %340 : vector<17x32xf32>
      %342 = vector.broadcast %288 : vector<1x32xf32> to vector<17x32xf32>
      %343 = arith.addf %341, %342 : vector<17x32xf32>
      %c1_115 = arith.constant 1 : index
      %c0_116 = arith.constant 0 : index
      %c0_117 = arith.constant 0 : index
      %344 = vector.load %arg9[%c1_115, %c0_116, %c0_117] : memref<2x17x32xf32, #tpu.memory_space<vmem>>, vector<1x17x32xf32>
      %345 = vector.shape_cast %344 : vector<1x17x32xf32> to vector<17x32xf32>
      %346 = vector.shape_cast %343 : vector<17x32xf32> to vector<1x17x32xf32>
      tpu.vector_store %arg9[%c1_115, %c0_116, %c0_117], %346 {strides = array<i32>} : memref<2x17x32xf32, #tpu.memory_space<vmem>>, vector<1x17x32xf32>,
    } else {
    }
    %c0 = arith.constant 0 : index
    %c0_1 = arith.constant 0 : index
    %c0_2 = arith.constant 0 : index
    %3 = vector.load %arg4[%c0, %c0_1, %c0_2] : memref<1x32x96xf32, #tpu.memory_space<vmem>>, vector<1x32x96xf32>
    %4 = vector.shape_cast %3 : vector<1x32x96xf32> to vector<32x96xf32>
    %c0_3 = arith.constant 0 : index
    %c0_4 = arith.constant 0 : index
    %c0_5 = arith.constant 0 : index
    %5 = vector.load %arg5[%c0_3, %c0_4, %c0_5] : memref<1x32x32xf32, #tpu.memory_space<vmem>>, vector<1x32x32xf32>
    %6 = vector.shape_cast %5 : vector<1x32x32xf32> to vector<32x32xf32>
    %c0_6 = arith.constant 0 : index
    %c0_7 = arith.constant 0 : index
    %c0_8 = arith.constant 0 : index
    %7 = vector.load %arg6[%c0_6, %c0_7, %c0_8] : memref<1x32x128xf32, #tpu.memory_space<vmem>>, vector<1x32x128xf32>
    %8 = vector.shape_cast %7 : vector<1x32x128xf32> to vector<32x128xf32>
    %c0_9 = arith.constant 0 : index
    %c0_10 = arith.constant 0 : index
    %c0_11 = arith.constant 0 : index
    %9 = vector.load %arg7[%c0_9, %c0_10, %c0_11] : memref<1x128x32xf32, #tpu.memory_space<vmem>>, vector<1x128x32xf32>
    %10 = vector.shape_cast %9 : vector<1x128x32xf32> to vector<128x32xf32>
    %c0_12 = arith.constant 0 : index
    %c0_13 = arith.constant 0 : index
    %c0_14 = arith.constant 0 : index
    %11 = vector.load %arg8[%c0_12, %c0_13, %c0_14] : memref<1x8x128xf32, #tpu.memory_space<vmem>>, vector<1x8x128xf32>
    %12 = vector.shape_cast %11 : vector<1x8x128xf32> to vector<8x128xf32>
    %13 = vector.extract_strided_slice %12 {offsets = [0, 0], sizes = [1, 32], strides = [1, 1]} : vector<8x128xf32> to vector<1x32xf32>
    %14 = vector.extract_strided_slice %12 {offsets = [1, 0], sizes = [1, 32], strides = [1, 1]} : vector<8x128xf32> to vector<1x32xf32>
    %15 = vector.extract_strided_slice %12 {offsets = [2, 0], sizes = [1, 96], strides = [1, 1]} : vector<8x128xf32> to vector<1x96xf32>
    %16 = vector.extract_strided_slice %12 {offsets = [3, 0], sizes = [1, 32], strides = [1, 1]} : vector<8x128xf32> to vector<1x32xf32>
    %17 = vector.extract_strided_slice %12 {offsets = [4, 0], sizes = [1, 32], strides = [1, 1]} : vector<8x128xf32> to vector<1x32xf32>
    %18 = vector.extract_strided_slice %12 {offsets = [5, 0], sizes = [1, 32], strides = [1, 1]} : vector<8x128xf32> to vector<1x32xf32>
    %19 = vector.extract_strided_slice %12 {offsets = [6, 0], sizes = [1, 128], strides = [1, 1]} : vector<8x128xf32> to vector<1x128xf32>
    %20 = vector.extract_strided_slice %12 {offsets = [7, 0], sizes = [1, 32], strides = [1, 1]} : vector<8x128xf32> to vector<1x32xf32>
    %c0_15 = arith.constant 0 : index
    %c0_16 = arith.constant 0 : index
    %c0_17 = arith.constant 0 : index
    %21 = vector.load %arg9[%c0_15, %c0_16, %c0_17] : memref<2x17x32xf32, #tpu.memory_space<vmem>>, vector<1x17x32xf32>
    %22 = vector.shape_cast %21 : vector<1x17x32xf32> to vector<17x32xf32>
    %cst = arith.constant dense<0.000000e+00> : vector<17xf32>
    %23 = vector.multi_reduction <add>, %22, %cst [1] : vector<17x32xf32> to vector<17xf32>
    %24 = vector.shape_cast %23 : vector<17xf32> to vector<17x1xf32>
    %cst_18 = arith.constant 3.200000e+01 : f32
    %25 = vector.broadcast %cst_18 : f32 to vector<17x1xf32>
    %26 = arith.divf %24, %25 : vector<17x1xf32>
    %27 = vector.broadcast %26 : vector<17x1xf32> to vector<17x32xf32>
    %28 = arith.subf %22, %27 : vector<17x32xf32>
    %29 = arith.mulf %28, %28 : vector<17x32xf32>
    %cst_19 = arith.constant dense<0.000000e+00> : vector<17xf32>
    %30 = vector.multi_reduction <add>, %29, %cst_19 [1] : vector<17x32xf32> to vector<17xf32>
    %31 = vector.shape_cast %30 : vector<17xf32> to vector<17x1xf32>
    %cst_20 = arith.constant 3.200000e+01 : f32
    %32 = vector.broadcast %cst_20 : f32 to vector<17x1xf32>
    %33 = arith.divf %31, %32 : vector<17x1xf32>
    %34 = vector.broadcast %26 : vector<17x1xf32> to vector<17x32xf32>
    %35 = arith.subf %22, %34 : vector<17x32xf32>
    %cst_21 = arith.constant 9.99999974E-6 : f32
    %36 = vector.broadcast %cst_21 : f32 to vector<17x1xf32>
    %37 = arith.addf %33, %36 : vector<17x1xf32>
    %38 = math.rsqrt %37 : vector<17x1xf32>
    %39 = vector.broadcast %38 : vector<17x1xf32> to vector<17x32xf32>
    %40 = arith.mulf %35, %39 : vector<17x32xf32>
    %41 = vector.broadcast %13 : vector<1x32xf32> to vector<17x32xf32>
    %42 = arith.mulf %40, %41 : vector<17x32xf32>
    %43 = vector.broadcast %14 : vector<1x32xf32> to vector<17x32xf32>
    %44 = arith.addf %42, %43 : vector<17x32xf32>
    %cst_22 = arith.constant dense<0.000000e+00> : vector<17x96xf32>
    %45 = tpu.matmul %44, %4, %cst_22 {dimension_numbers = #tpu.dot_dimension_numbers<[1], [0], [0], [1], [0, 0, 1, 1], [], []>} : vector<17x32xf32>, vector<32x96xf32>, vector<17x96xf32> -> vector<17x96xf32>
    %46 = vector.broadcast %15 : vector<1x96xf32> to vector<17x96xf32>
    %47 = arith.addf %45, %46 : vector<17x96xf32>
    %48 = vector.extract_strided_slice %47 {offsets = [0, 0], sizes = [17, 8], strides = [1, 1]} : vector<17x96xf32> to vector<17x8xf32>
    %49 = vector.extract_strided_slice %47 {offsets = [0, 32], sizes = [17, 8], strides = [1, 1]} : vector<17x96xf32> to vector<17x8xf32>
    %50 = vector.extract_strided_slice %47 {offsets = [0, 64], sizes = [17, 8], strides = [1, 1]} : vector<17x96xf32> to vector<17x8xf32>
    "tpu.trace_start"() <{level = 10 : i32, message = "qe,ke->qk"}> : () -> ()
    %cst_23 = arith.constant dense<0.000000e+00> : vector<17x17xf32>
    %51 = tpu.matmul %48, %49, %cst_23 {dimension_numbers = #tpu.dot_dimension_numbers<[1], [1], [0], [0], [0, 0, 1, 0], [], []>} : vector<17x8xf32>, vector<17x8xf32>, vector<17x17xf32> -> vector<17x17xf32>
    "tpu.trace_stop"() : () -> ()
    %cst_24 = arith.constant dense<0xFF800000> : vector<17xf32>
    %52 = vector.multi_reduction <maximumf>, %51, %cst_24 [1] : vector<17x17xf32> to vector<17xf32>
    %53 = vector.shape_cast %52 : vector<17xf32> to vector<17x1xf32>
    %54 = vector.broadcast %53 : vector<17x1xf32> to vector<17x17xf32>
    %55 = arith.subf %51, %54 : vector<17x17xf32>
    %56 = math.exp %55 : vector<17x17xf32>
    %cst_25 = arith.constant dense<0.000000e+00> : vector<17xf32>
    %57 = vector.multi_reduction <add>, %56, %cst_25 [1] : vector<17x17xf32> to vector<17xf32>
    %58 = vector.shape_cast %57 : vector<17xf32> to vector<17x1xf32>
    %59 = tpu.reciprocal %58 {approx = true} : vector<17x1xf32> -> vector<17x1xf32>
    %60 = vector.broadcast %59 : vector<17x1xf32> to vector<17x17xf32>
    %61 = arith.mulf %56, %60 : vector<17x17xf32>
    %cst_26 = arith.constant dense<0.000000e+00> : vector<17x8xf32>
    %62 = tpu.matmul %61, %50, %cst_26 {dimension_numbers = #tpu.dot_dimension_numbers<[1], [0], [0], [1], [0, 0, 1, 1], [], []>} : vector<17x17xf32>, vector<17x8xf32>, vector<17x8xf32> -> vector<17x8xf32>
    %63 = vector.extract_strided_slice %47 {offsets = [0, 8], sizes = [17, 8], strides = [1, 1]} : vector<17x96xf32> to vector<17x8xf32>
    %64 = vector.extract_strided_slice %47 {offsets = [0, 40], sizes = [17, 8], strides = [1, 1]} : vector<17x96xf32> to vector<17x8xf32>
    %65 = vector.extract_strided_slice %47 {offsets = [0, 72], sizes = [17, 8], strides = [1, 1]} : vector<17x96xf32> to vector<17x8xf32>
    "tpu.trace_start"() <{level = 10 : i32, message = "qe,ke->qk"}> : () -> ()
    %cst_27 = arith.constant dense<0.000000e+00> : vector<17x17xf32>
    %66 = tpu.matmul %63, %64, %cst_27 {dimension_numbers = #tpu.dot_dimension_numbers<[1], [1], [0], [0], [0, 0, 1, 0], [], []>} : vector<17x8xf32>, vector<17x8xf32>, vector<17x17xf32> -> vector<17x17xf32>
    "tpu.trace_stop"() : () -> ()
    %cst_28 = arith.constant dense<0xFF800000> : vector<17xf32>
    %67 = vector.multi_reduction <maximumf>, %66, %cst_28 [1] : vector<17x17xf32> to vector<17xf32>
    %68 = vector.shape_cast %67 : vector<17xf32> to vector<17x1xf32>
    %69 = vector.broadcast %68 : vector<17x1xf32> to vector<17x17xf32>
    %70 = arith.subf %66, %69 : vector<17x17xf32>
    %71 = math.exp %70 : vector<17x17xf32>
    %cst_29 = arith.constant dense<0.000000e+00> : vector<17xf32>
    %72 = vector.multi_reduction <add>, %71, %cst_29 [1] : vector<17x17xf32> to vector<17xf32>
    %73 = vector.shape_cast %72 : vector<17xf32> to vector<17x1xf32>
    %74 = tpu.reciprocal %73 {approx = true} : vector<17x1xf32> -> vector<17x1xf32>
    %75 = vector.broadcast %74 : vector<17x1xf32> to vector<17x17xf32>
    %76 = arith.mulf %71, %75 : vector<17x17xf32>
    %cst_30 = arith.constant dense<0.000000e+00> : vector<17x8xf32>
    %77 = tpu.matmul %76, %65, %cst_30 {dimension_numbers = #tpu.dot_dimension_numbers<[1], [0], [0], [1], [0, 0, 1, 1], [], []>} : vector<17x17xf32>, vector<17x8xf32>, vector<17x8xf32> -> vector<17x8xf32>
    %78 = vector.extract_strided_slice %47 {offsets = [0, 16], sizes = [17, 8], strides = [1, 1]} : vector<17x96xf32> to vector<17x8xf32>
    %79 = vector.extract_strided_slice %47 {offsets = [0, 48], sizes = [17, 8], strides = [1, 1]} : vector<17x96xf32> to vector<17x8xf32>
    %80 = vector.extract_strided_slice %47 {offsets = [0, 80], sizes = [17, 8], strides = [1, 1]} : vector<17x96xf32> to vector<17x8xf32>
    "tpu.trace_start"() <{level = 10 : i32, message = "qe,ke->qk"}> : () -> ()
    %cst_31 = arith.constant dense<0.000000e+00> : vector<17x17xf32>
    %81 = tpu.matmul %78, %79, %cst_31 {dimension_numbers = #tpu.dot_dimension_numbers<[1], [1], [0], [0], [0, 0, 1, 0], [], []>} : vector<17x8xf32>, vector<17x8xf32>, vector<17x17xf32> -> vector<17x17xf32>
    "tpu.trace_stop"() : () -> ()
    %cst_32 = arith.constant dense<0xFF800000> : vector<17xf32>
    %82 = vector.multi_reduction <maximumf>, %81, %cst_32 [1] : vector<17x17xf32> to vector<17xf32>
    %83 = vector.shape_cast %82 : vector<17xf32> to vector<17x1xf32>
    %84 = vector.broadcast %83 : vector<17x1xf32> to vector<17x17xf32>
    %85 = arith.subf %81, %84 : vector<17x17xf32>
    %86 = math.exp %85 : vector<17x17xf32>
    %cst_33 = arith.constant dense<0.000000e+00> : vector<17xf32>
    %87 = vector.multi_reduction <add>, %86, %cst_33 [1] : vector<17x17xf32> to vector<17xf32>
    %88 = vector.shape_cast %87 : vector<17xf32> to vector<17x1xf32>
    %89 = tpu.reciprocal %88 {approx = true} : vector<17x1xf32> -> vector<17x1xf32>
    %90 = vector.broadcast %89 : vector<17x1xf32> to vector<17x17xf32>
    %91 = arith.mulf %86, %90 : vector<17x17xf32>
    %cst_34 = arith.constant dense<0.000000e+00> : vector<17x8xf32>
    %92 = tpu.matmul %91, %80, %cst_34 {dimension_numbers = #tpu.dot_dimension_numbers<[1], [0], [0], [1], [0, 0, 1, 1], [], []>} : vector<17x17xf32>, vector<17x8xf32>, vector<17x8xf32> -> vector<17x8xf32>
    %93 = vector.extract_strided_slice %47 {offsets = [0, 24], sizes = [17, 8], strides = [1, 1]} : vector<17x96xf32> to vector<17x8xf32>
    %94 = vector.extract_strided_slice %47 {offsets = [0, 56], sizes = [17, 8], strides = [1, 1]} : vector<17x96xf32> to vector<17x8xf32>
    %95 = vector.extract_strided_slice %47 {offsets = [0, 88], sizes = [17, 8], strides = [1, 1]} : vector<17x96xf32> to vector<17x8xf32>
    "tpu.trace_start"() <{level = 10 : i32, message = "qe,ke->qk"}> : () -> ()
    %cst_35 = arith.constant dense<0.000000e+00> : vector<17x17xf32>
    %96 = tpu.matmul %93, %94, %cst_35 {dimension_numbers = #tpu.dot_dimension_numbers<[1], [1], [0], [0], [0, 0, 1, 0], [], []>} : vector<17x8xf32>, vector<17x8xf32>, vector<17x17xf32> -> vector<17x17xf32>
    "tpu.trace_stop"() : () -> ()
    %cst_36 = arith.constant dense<0xFF800000> : vector<17xf32>
    %97 = vector.multi_reduction <maximumf>, %96, %cst_36 [1] : vector<17x17xf32> to vector<17xf32>
    %98 = vector.shape_cast %97 : vector<17xf32> to vector<17x1xf32>
    %99 = vector.broadcast %98 : vector<17x1xf32> to vector<17x17xf32>
    %100 = arith.subf %96, %99 : vector<17x17xf32>
    %101 = math.exp %100 : vector<17x17xf32>
    %cst_37 = arith.constant dense<0.000000e+00> : vector<17xf32>
    %102 = vector.multi_reduction <add>, %101, %cst_37 [1] : vector<17x17xf32> to vector<17xf32>
    %103 = vector.shape_cast %102 : vector<17xf32> to vector<17x1xf32>
    %104 = tpu.reciprocal %103 {approx = true} : vector<17x1xf32> -> vector<17x1xf32>
    %105 = vector.broadcast %104 : vector<17x1xf32> to vector<17x17xf32>
    %106 = arith.mulf %101, %105 : vector<17x17xf32>
    %cst_38 = arith.constant dense<0.000000e+00> : vector<17x8xf32>
    %107 = tpu.matmul %106, %95, %cst_38 {dimension_numbers = #tpu.dot_dimension_numbers<[1], [0], [0], [1], [0, 0, 1, 1], [], []>} : vector<17x17xf32>, vector<17x8xf32>, vector<17x8xf32> -> vector<17x8xf32>
    %108 = tpu.concatenate %62, %77, %92, %107 in 1 : vector<17x8xf32>, vector<17x8xf32>, vector<17x8xf32>, vector<17x8xf32> -> vector<17x32xf32>
    %cst_39 = arith.constant dense<0.000000e+00> : vector<17x32xf32>
    %109 = tpu.matmul %108, %6, %cst_39 {dimension_numbers = #tpu.dot_dimension_numbers<[1], [0], [0], [1], [0, 0, 1, 1], [], []>} : vector<17x32xf32>, vector<32x32xf32>, vector<17x32xf32> -> vector<17x32xf32>
    %110 = arith.addf %22, %109 : vector<17x32xf32>
    %111 = vector.broadcast %16 : vector<1x32xf32> to vector<17x32xf32>
    %112 = arith.addf %110, %111 : vector<17x32xf32>
    %cst_40 = arith.constant dense<0.000000e+00> : vector<17xf32>
    %113 = vector.multi_reduction <add>, %112, %cst_40 [1] : vector<17x32xf32> to vector<17xf32>
    %114 = vector.shape_cast %113 : vector<17xf32> to vector<17x1xf32>
    %cst_41 = arith.constant 3.200000e+01 : f32
    %115 = vector.broadcast %cst_41 : f32 to vector<17x1xf32>
    %116 = arith.divf %114, %115 : vector<17x1xf32>
    %117 = vector.broadcast %116 : vector<17x1xf32> to vector<17x32xf32>
    %118 = arith.subf %112, %117 : vector<17x32xf32>
    %119 = arith.mulf %118, %118 : vector<17x32xf32>
    %cst_42 = arith.constant dense<0.000000e+00> : vector<17xf32>
    %120 = vector.multi_reduction <add>, %119, %cst_42 [1] : vector<17x32xf32> to vector<17xf32>
    %121 = vector.shape_cast %120 : vector<17xf32> to vector<17x1xf32>
    %cst_43 = arith.constant 3.200000e+01 : f32
    %122 = vector.broadcast %cst_43 : f32 to vector<17x1xf32>
    %123 = arith.divf %121, %122 : vector<17x1xf32>
    %124 = vector.broadcast %116 : vector<17x1xf32> to vector<17x32xf32>
    %125 = arith.subf %112, %124 : vector<17x32xf32>
    %cst_44 = arith.constant 9.99999974E-6 : f32
    %126 = vector.broadcast %cst_44 : f32 to vector<17x1xf32>
    %127 = arith.addf %123, %126 : vector<17x1xf32>
    %128 = math.rsqrt %127 : vector<17x1xf32>
    %129 = vector.broadcast %128 : vector<17x1xf32> to vector<17x32xf32>
    %130 = arith.mulf %125, %129 : vector<17x32xf32>
    %131 = vector.broadcast %17 : vector<1x32xf32> to vector<17x32xf32>
    %132 = arith.mulf %130, %131 : vector<17x32xf32>
    %133 = vector.broadcast %18 : vector<1x32xf32> to vector<17x32xf32>
    %134 = arith.addf %132, %133 : vector<17x32xf32>
    %cst_45 = arith.constant dense<0.000000e+00> : vector<17x128xf32>
    %135 = tpu.matmul %134, %8, %cst_45 {dimension_numbers = #tpu.dot_dimension_numbers<[1], [0], [0], [1], [0, 0, 1, 1], [], []>} : vector<17x32xf32>, vector<32x128xf32>, vector<17x128xf32> -> vector<17x128xf32>
    %136 = vector.broadcast %19 : vector<1x128xf32> to vector<17x128xf32>
    %137 = arith.addf %135, %136 : vector<17x128xf32>
    %cst_46 = arith.constant 1.702000e+00 : f32
    %138 = vector.broadcast %cst_46 : f32 to vector<17x128xf32>
    %139 = arith.mulf %138, %137 : vector<17x128xf32>
    %140 = arith.negf %139 : vector<17x128xf32>
    %141 = math.exp %140 : vector<17x128xf32>
    %cst_47 = arith.constant 1.000000e+00 : f32
    %142 = vector.broadcast %cst_47 : f32 to vector<17x128xf32>
    %143 = arith.addf %142, %141 : vector<17x128xf32>
    %144 = arith.divf %142, %143 : vector<17x128xf32>
    %145 = arith.mulf %137, %144 : vector<17x128xf32>
    %cst_48 = arith.constant dense<0.000000e+00> : vector<17x32xf32>
    %146 = tpu.matmul %145, %10, %cst_48 {dimension_numbers = #tpu.dot_dimension_numbers<[1], [0], [0], [1], [0, 0, 1, 1], [], []>} : vector<17x128xf32>, vector<128x32xf32>, vector<17x32xf32> -> vector<17x32xf32>
    %147 = vector.broadcast %20 : vector<1x32xf32> to vector<17x32xf32>
    %148 = arith.addf %146, %147 : vector<17x32xf32>
    %149 = arith.addf %112, %148 : vector<17x32xf32>
    %c0_49 = arith.constant 0 : index
    %c0_50 = arith.constant 0 : index
    %c0_51 = arith.constant 0 : index
    %150 = vector.load %arg9[%c0_49, %c0_50, %c0_51] : memref<2x17x32xf32, #tpu.memory_space<vmem>>, vector<1x17x32xf32>
    %151 = vector.shape_cast %150 : vector<1x17x32xf32> to vector<17x32xf32>
    %152 = vector.shape_cast %149 : vector<17x32xf32> to vector<1x17x32xf32>
    tpu.vector_store %arg9[%c0_49, %c0_50, %c0_51], %152 {strides = array<i32>} : memref<2x17x32xf32, #tpu.memory_space<vmem>>, vector<1x17x32xf32>,
    %c1 = arith.constant 1 : index
    %c0_52 = arith.constant 0 : index
    %c0_53 = arith.constant 0 : index
    %153 = vector.load %arg9[%c1, %c0_52, %c0_53] : memref<2x17x32xf32, #tpu.memory_space<vmem>>, vector<1x17x32xf32>
    %154 = vector.shape_cast %153 : vector<1x17x32xf32> to vector<17x32xf32>
    %cst_54 = arith.constant dense<0.000000e+00> : vector<17xf32>
    %155 = vector.multi_reduction <add>, %154, %cst_54 [1] : vector<17x32xf32> to vector<17xf32>
    %156 = vector.shape_cast %155 : vector<17xf32> to vector<17x1xf32>
    %cst_55 = arith.constant 3.200000e+01 : f32
    %157 = vector.broadcast %cst_55 : f32 to vector<17x1xf32>
    %158 = arith.divf %156, %157 : vector<17x1xf32>
    %159 = vector.broadcast %158 : vector<17x1xf32> to vector<17x32xf32>
    %160 = arith.subf %154, %159 : vector<17x32xf32>
    %161 = arith.mulf %160, %160 : vector<17x32xf32>
    %cst_56 = arith.constant dense<0.000000e+00> : vector<17xf32>
    %162 = vector.multi_reduction <add>, %161, %cst_56 [1] : vector<17x32xf32> to vector<17xf32>
    %163 = vector.shape_cast %162 : vector<17xf32> to vector<17x1xf32>
    %cst_57 = arith.constant 3.200000e+01 : f32
    %164 = vector.broadcast %cst_57 : f32 to vector<17x1xf32>
    %165 = arith.divf %163, %164 : vector<17x1xf32>
    %166 = vector.broadcast %158 : vector<17x1xf32> to vector<17x32xf32>
    %167 = arith.subf %154, %166 : vector<17x32xf32>
    %cst_58 = arith.constant 9.99999974E-6 : f32
    %168 = vector.broadcast %cst_58 : f32 to vector<17x1xf32>
    %169 = arith.addf %165, %168 : vector<17x1xf32>
    %170 = math.rsqrt %169 : vector<17x1xf32>
    %171 = vector.broadcast %170 : vector<17x1xf32> to vector<17x32xf32>
    %172 = arith.mulf %167, %171 : vector<17x32xf32>
    %173 = vector.broadcast %13 : vector<1x32xf32> to vector<17x32xf32>
    %174 = arith.mulf %172, %173 : vector<17x32xf32>
    %175 = vector.broadcast %14 : vector<1x32xf32> to vector<17x32xf32>
    %176 = arith.addf %174, %175 : vector<17x32xf32>
    %cst_59 = arith.constant dense<0.000000e+00> : vector<17x96xf32>
    %177 = tpu.matmul %176, %4, %cst_59 {dimension_numbers = #tpu.dot_dimension_numbers<[1], [0], [0], [1], [0, 0, 1, 1], [], []>} : vector<17x32xf32>, vector<32x96xf32>, vector<17x96xf32> -> vector<17x96xf32>
    %178 = vector.broadcast %15 : vector<1x96xf32> to vector<17x96xf32>
    %179 = arith.addf %177, %178 : vector<17x96xf32>
    %180 = vector.extract_strided_slice %179 {offsets = [0, 0], sizes = [17, 8], strides = [1, 1]} : vector<17x96xf32> to vector<17x8xf32>
    %181 = vector.extract_strided_slice %179 {offsets = [0, 32], sizes = [17, 8], strides = [1, 1]} : vector<17x96xf32> to vector<17x8xf32>
    %182 = vector.extract_strided_slice %179 {offsets = [0, 64], sizes = [17, 8], strides = [1, 1]} : vector<17x96xf32> to vector<17x8xf32>
    "tpu.trace_start"() <{level = 10 : i32, message = "qe,ke->qk"}> : () -> ()
    %cst_60 = arith.constant dense<0.000000e+00> : vector<17x17xf32>
    %183 = tpu.matmul %180, %181, %cst_60 {dimension_numbers = #tpu.dot_dimension_numbers<[1], [1], [0], [0], [0, 0, 1, 0], [], []>} : vector<17x8xf32>, vector<17x8xf32>, vector<17x17xf32> -> vector<17x17xf32>
    "tpu.trace_stop"() : () -> ()
    %cst_61 = arith.constant dense<0xFF800000> : vector<17xf32>
    %184 = vector.multi_reduction <maximumf>, %183, %cst_61 [1] : vector<17x17xf32> to vector<17xf32>
    %185 = vector.shape_cast %184 : vector<17xf32> to vector<17x1xf32>
    %186 = vector.broadcast %185 : vector<17x1xf32> to vector<17x17xf32>
    %187 = arith.subf %183, %186 : vector<17x17xf32>
    %188 = math.exp %187 : vector<17x17xf32>
    %cst_62 = arith.constant dense<0.000000e+00> : vector<17xf32>
    %189 = vector.multi_reduction <add>, %188, %cst_62 [1] : vector<17x17xf32> to vector<17xf32>
    %190 = vector.shape_cast %189 : vector<17xf32> to vector<17x1xf32>
    %191 = tpu.reciprocal %190 {approx = true} : vector<17x1xf32> -> vector<17x1xf32>
    %192 = vector.broadcast %191 : vector<17x1xf32> to vector<17x17xf32>
    %193 = arith.mulf %188, %192 : vector<17x17xf32>
    %cst_63 = arith.constant dense<0.000000e+00> : vector<17x8xf32>
    %194 = tpu.matmul %193, %182, %cst_63 {dimension_numbers = #tpu.dot_dimension_numbers<[1], [0], [0], [1], [0, 0, 1, 1], [], []>} : vector<17x17xf32>, vector<17x8xf32>, vector<17x8xf32> -> vector<17x8xf32>
    %195 = vector.extract_strided_slice %179 {offsets = [0, 8], sizes = [17, 8], strides = [1, 1]} : vector<17x96xf32> to vector<17x8xf32>
    %196 = vector.extract_strided_slice %179 {offsets = [0, 40], sizes = [17, 8], strides = [1, 1]} : vector<17x96xf32> to vector<17x8xf32>
    %197 = vector.extract_strided_slice %179 {offsets = [0, 72], sizes = [17, 8], strides = [1, 1]} : vector<17x96xf32> to vector<17x8xf32>
    "tpu.trace_start"() <{level = 10 : i32, message = "qe,ke->qk"}> : () -> ()
    %cst_64 = arith.constant dense<0.000000e+00> : vector<17x17xf32>
    %198 = tpu.matmul %195, %196, %cst_64 {dimension_numbers = #tpu.dot_dimension_numbers<[1], [1], [0], [0], [0, 0, 1, 0], [], []>} : vector<17x8xf32>, vector<17x8xf32>, vector<17x17xf32> -> vector<17x17xf32>
    "tpu.trace_stop"() : () -> ()
    %cst_65 = arith.constant dense<0xFF800000> : vector<17xf32>
    %199 = vector.multi_reduction <maximumf>, %198, %cst_65 [1] : vector<17x17xf32> to vector<17xf32>
    %200 = vector.shape_cast %199 : vector<17xf32> to vector<17x1xf32>
    %201 = vector.broadcast %200 : vector<17x1xf32> to vector<17x17xf32>
    %202 = arith.subf %198, %201 : vector<17x17xf32>
    %203 = math.exp %202 : vector<17x17xf32>
    %cst_66 = arith.constant dense<0.000000e+00> : vector<17xf32>
    %204 = vector.multi_reduction <add>, %203, %cst_66 [1] : vector<17x17xf32> to vector<17xf32>
    %205 = vector.shape_cast %204 : vector<17xf32> to vector<17x1xf32>
    %206 = tpu.reciprocal %205 {approx = true} : vector<17x1xf32> -> vector<17x1xf32>
    %207 = vector.broadcast %206 : vector<17x1xf32> to vector<17x17xf32>
    %208 = arith.mulf %203, %207 : vector<17x17xf32>
    %cst_67 = arith.constant dense<0.000000e+00> : vector<17x8xf32>
    %209 = tpu.matmul %208, %197, %cst_67 {dimension_numbers = #tpu.dot_dimension_numbers<[1], [0], [0], [1], [0, 0, 1, 1], [], []>} : vector<17x17xf32>, vector<17x8xf32>, vector<17x8xf32> -> vector<17x8xf32>
    %210 = vector.extract_strided_slice %179 {offsets = [0, 16], sizes = [17, 8], strides = [1, 1]} : vector<17x96xf32> to vector<17x8xf32>
    %211 = vector.extract_strided_slice %179 {offsets = [0, 48], sizes = [17, 8], strides = [1, 1]} : vector<17x96xf32> to vector<17x8xf32>
    %212 = vector.extract_strided_slice %179 {offsets = [0, 80], sizes = [17, 8], strides = [1, 1]} : vector<17x96xf32> to vector<17x8xf32>
    "tpu.trace_start"() <{level = 10 : i32, message = "qe,ke->qk"}> : () -> ()
    %cst_68 = arith.constant dense<0.000000e+00> : vector<17x17xf32>
    %213 = tpu.matmul %210, %211, %cst_68 {dimension_numbers = #tpu.dot_dimension_numbers<[1], [1], [0], [0], [0, 0, 1, 0], [], []>} : vector<17x8xf32>, vector<17x8xf32>, vector<17x17xf32> -> vector<17x17xf32>
    "tpu.trace_stop"() : () -> ()
    %cst_69 = arith.constant dense<0xFF800000> : vector<17xf32>
    %214 = vector.multi_reduction <maximumf>, %213, %cst_69 [1] : vector<17x17xf32> to vector<17xf32>
    %215 = vector.shape_cast %214 : vector<17xf32> to vector<17x1xf32>
    %216 = vector.broadcast %215 : vector<17x1xf32> to vector<17x17xf32>
    %217 = arith.subf %213, %216 : vector<17x17xf32>
    %218 = math.exp %217 : vector<17x17xf32>
    %cst_70 = arith.constant dense<0.000000e+00> : vector<17xf32>
    %219 = vector.multi_reduction <add>, %218, %cst_70 [1] : vector<17x17xf32> to vector<17xf32>
    %220 = vector.shape_cast %219 : vector<17xf32> to vector<17x1xf32>
    %221 = tpu.reciprocal %220 {approx = true} : vector<17x1xf32> -> vector<17x1xf32>
    %222 = vector.broadcast %221 : vector<17x1xf32> to vector<17x17xf32>
    %223 = arith.mulf %218, %222 : vector<17x17xf32>
    %cst_71 = arith.constant dense<0.000000e+00> : vector<17x8xf32>
    %224 = tpu.matmul %223, %212, %cst_71 {dimension_numbers = #tpu.dot_dimension_numbers<[1], [0], [0], [1], [0, 0, 1, 1], [], []>} : vector<17x17xf32>, vector<17x8xf32>, vector<17x8xf32> -> vector<17x8xf32>
    %225 = vector.extract_strided_slice %179 {offsets = [0, 24], sizes = [17, 8], strides = [1, 1]} : vector<17x96xf32> to vector<17x8xf32>
    %226 = vector.extract_strided_slice %179 {offsets = [0, 56], sizes = [17, 8], strides = [1, 1]} : vector<17x96xf32> to vector<17x8xf32>
    %227 = vector.extract_strided_slice %179 {offsets = [0, 88], sizes = [17, 8], strides = [1, 1]} : vector<17x96xf32> to vector<17x8xf32>
    "tpu.trace_start"() <{level = 10 : i32, message = "qe,ke->qk"}> : () -> ()
    %cst_72 = arith.constant dense<0.000000e+00> : vector<17x17xf32>
    %228 = tpu.matmul %225, %226, %cst_72 {dimension_numbers = #tpu.dot_dimension_numbers<[1], [1], [0], [0], [0, 0, 1, 0], [], []>} : vector<17x8xf32>, vector<17x8xf32>, vector<17x17xf32> -> vector<17x17xf32>
    "tpu.trace_stop"() : () -> ()
    %cst_73 = arith.constant dense<0xFF800000> : vector<17xf32>
    %229 = vector.multi_reduction <maximumf>, %228, %cst_73 [1] : vector<17x17xf32> to vector<17xf32>
    %230 = vector.shape_cast %229 : vector<17xf32> to vector<17x1xf32>
    %231 = vector.broadcast %230 : vector<17x1xf32> to vector<17x17xf32>
    %232 = arith.subf %228, %231 : vector<17x17xf32>
    %233 = math.exp %232 : vector<17x17xf32>
    %cst_74 = arith.constant dense<0.000000e+00> : vector<17xf32>
    %234 = vector.multi_reduction <add>, %233, %cst_74 [1] : vector<17x17xf32> to vector<17xf32>
    %235 = vector.shape_cast %234 : vector<17xf32> to vector<17x1xf32>
    %236 = tpu.reciprocal %235 {approx = true} : vector<17x1xf32> -> vector<17x1xf32>
    %237 = vector.broadcast %236 : vector<17x1xf32> to vector<17x17xf32>
    %238 = arith.mulf %233, %237 : vector<17x17xf32>
    %cst_75 = arith.constant dense<0.000000e+00> : vector<17x8xf32>
    %239 = tpu.matmul %238, %227, %cst_75 {dimension_numbers = #tpu.dot_dimension_numbers<[1], [0], [0], [1], [0, 0, 1, 1], [], []>} : vector<17x17xf32>, vector<17x8xf32>, vector<17x8xf32> -> vector<17x8xf32>
    %240 = tpu.concatenate %194, %209, %224, %239 in 1 : vector<17x8xf32>, vector<17x8xf32>, vector<17x8xf32>, vector<17x8xf32> -> vector<17x32xf32>
    %cst_76 = arith.constant dense<0.000000e+00> : vector<17x32xf32>
    %241 = tpu.matmul %240, %6, %cst_76 {dimension_numbers = #tpu.dot_dimension_numbers<[1], [0], [0], [1], [0, 0, 1, 1], [], []>} : vector<17x32xf32>, vector<32x32xf32>, vector<17x32xf32> -> vector<17x32xf32>
    %242 = arith.addf %154, %241 : vector<17x32xf32>
    %243 = vector.broadcast %16 : vector<1x32xf32> to vector<17x32xf32>
    %244 = arith.addf %242, %243 : vector<17x32xf32>
    %cst_77 = arith.constant dense<0.000000e+00> : vector<17xf32>
    %245 = vector.multi_reduction <add>, %244, %cst_77 [1] : vector<17x32xf32> to vector<17xf32>
    %246 = vector.shape_cast %245 : vector<17xf32> to vector<17x1xf32>
    %cst_78 = arith.constant 3.200000e+01 : f32
    %247 = vector.broadcast %cst_78 : f32 to vector<17x1xf32>
    %248 = arith.divf %246, %247 : vector<17x1xf32>
    %249 = vector.broadcast %248 : vector<17x1xf32> to vector<17x32xf32>
    %250 = arith.subf %244, %249 : vector<17x32xf32>
    %251 = arith.mulf %250, %250 : vector<17x32xf32>
    %cst_79 = arith.constant dense<0.000000e+00> : vector<17xf32>
    %252 = vector.multi_reduction <add>, %251, %cst_79 [1] : vector<17x32xf32> to vector<17xf32>
    %253 = vector.shape_cast %252 : vector<17xf32> to vector<17x1xf32>
    %cst_80 = arith.constant 3.200000e+01 : f32
    %254 = vector.broadcast %cst_80 : f32 to vector<17x1xf32>
    %255 = arith.divf %253, %254 : vector<17x1xf32>
    %256 = vector.broadcast %248 : vector<17x1xf32> to vector<17x32xf32>
    %257 = arith.subf %244, %256 : vector<17x32xf32>
    %cst_81 = arith.constant 9.99999974E-6 : f32
    %258 = vector.broadcast %cst_81 : f32 to vector<17x1xf32>
    %259 = arith.addf %255, %258 : vector<17x1xf32>
    %260 = math.rsqrt %259 : vector<17x1xf32>
    %261 = vector.broadcast %260 : vector<17x1xf32> to vector<17x32xf32>
    %262 = arith.mulf %257, %261 : vector<17x32xf32>
    %263 = vector.broadcast %17 : vector<1x32xf32> to vector<17x32xf32>
    %264 = arith.mulf %262, %263 : vector<17x32xf32>
    %265 = vector.broadcast %18 : vector<1x32xf32> to vector<17x32xf32>
    %266 = arith.addf %264, %265 : vector<17x32xf32>
    %cst_82 = arith.constant dense<0.000000e+00> : vector<17x128xf32>
    %267 = tpu.matmul %266, %8, %cst_82 {dimension_numbers = #tpu.dot_dimension_numbers<[1], [0], [0], [1], [0, 0, 1, 1], [], []>} : vector<17x32xf32>, vector<32x128xf32>, vector<17x128xf32> -> vector<17x128xf32>
    %268 = vector.broadcast %19 : vector<1x128xf32> to vector<17x128xf32>
    %269 = arith.addf %267, %268 : vector<17x128xf32>
    %cst_83 = arith.constant 1.702000e+00 : f32
    %270 = vector.broadcast %cst_83 : f32 to vector<17x128xf32>
    %271 = arith.mulf %270, %269 : vector<17x128xf32>
    %272 = arith.negf %271 : vector<17x128xf32>
    %273 = math.exp %272 : vector<17x128xf32>
    %cst_84 = arith.constant 1.000000e+00 : f32
    %274 = vector.broadcast %cst_84 : f32 to vector<17x128xf32>
    %275 = arith.addf %274, %273 : vector<17x128xf32>
    %276 = arith.divf %274, %275 : vector<17x128xf32>
    %277 = arith.mulf %269, %276 : vector<17x128xf32>
    %cst_85 = arith.constant dense<0.000000e+00> : vector<17x32xf32>
    %278 = tpu.matmul %277, %10, %cst_85 {dimension_numbers = #tpu.dot_dimension_numbers<[1], [0], [0], [1], [0, 0, 1, 1], [], []>} : vector<17x128xf32>, vector<128x32xf32>, vector<17x32xf32> -> vector<17x32xf32>
    %279 = vector.broadcast %20 : vector<1x32xf32> to vector<17x32xf32>
    %280 = arith.addf %278, %279 : vector<17x32xf32>
    %281 = arith.addf %244, %280 : vector<17x32xf32>
    %c1_86 = arith.constant 1 : index
    %c0_87 = arith.constant 0 : index
    %c0_88 = arith.constant 0 : index
    %282 = vector.load %arg9[%c1_86, %c0_87, %c0_88] : memref<2x17x32xf32, #tpu.memory_space<vmem>>, vector<1x17x32xf32>
    %283 = vector.shape_cast %282 : vector<1x17x32xf32> to vector<17x32xf32>
    %284 = vector.shape_cast %281 : vector<17x32xf32> to vector<1x17x32xf32>
    tpu.vector_store %arg9[%c1_86, %c0_87, %c0_88], %284 {strides = array<i32>} : memref<2x17x32xf32, #tpu.memory_space<vmem>>, vector<1x17x32xf32>,
    return
  }
  func.func @transform_0(%arg0: i32, %arg1: i32) -> (i32, i32, i32) {
    %c0_i32 = arith.constant 0 : i32
    %c0_i32_0 = arith.constant 0 : i32
    %c0_i32_1 = arith.constant 0 : i32
    return %arg0, %c0_i32, %c0_i32_0 : i32, i32, i32
  }
  func.func @transform_1(%arg0: i32, %arg1: i32) -> (i32, i32) {
    %c0_i32 = arith.constant 0 : i32
    %c0_i32_0 = arith.constant 0 : i32
    %c0_i32_1 = arith.constant 0 : i32
    return %c0_i32, %c0_i32_0 : i32, i32
  }
  func.func @transform_2(%arg0: i32, %arg1: i32) -> (i32, i32, i32) {
    %c0_i32 = arith.constant 0 : i32
    %c0_i32_0 = arith.constant 0 : i32
    %c0_i32_1 = arith.constant 0 : i32
    return %arg1, %c0_i32, %c0_i32_0 : i32, i32, i32
  }
  func.func @transform_3(%arg0: i32, %arg1: i32) -> (i32, i32, i32) {
    %c0_i32 = arith.constant 0 : i32
    %c0_i32_0 = arith.constant 0 : i32
    %c0_i32_1 = arith.constant 0 : i32
    return %arg1, %c0_i32, %c0_i32_0 : i32, i32, i32
  }
  func.func @transform_4(%arg0: i32, %arg1: i32) -> (i32, i32, i32) {
    %c0_i32 = arith.constant 0 : i32
    %c0_i32_0 = arith.constant 0 : i32
    %c0_i32_1 = arith.constant 0 : i32
    return %arg1, %c0_i32, %c0_i32_0 : i32, i32, i32
  }
  func.func @transform_5(%arg0: i32, %arg1: i32) -> (i32, i32, i32) {
    %c0_i32 = arith.constant 0 : i32
    %c0_i32_0 = arith.constant 0 : i32
    %c0_i32_1 = arith.constant 0 : i32
    return %arg1, %c0_i32, %c0_i32_0 : i32, i32, i32
  }
  func.func @transform_6(%arg0: i32, %arg1: i32) -> (i32, i32, i32) {
    %c0_i32 = arith.constant 0 : i32
    %c0_i32_0 = arith.constant 0 : i32
    %c0_i32_1 = arith.constant 0 : i32
    return %arg1, %c0_i32, %c0_i32_0 : i32, i32, i32
  }
  func.func @transform_7(%arg0: i32, %arg1: i32) -> (i32, i32, i32) {
    %c0_i32 = arith.constant 0 : i32
    %c0_i32_0 = arith.constant 0 : i32
    %c0_i32_1 = arith.constant 0 : i32
    return %arg0, %c0_i32, %c0_i32_0 : i32, i32, i32
  }
}

</mosaic_0001>

<bundles_post_ra>
// kernel: unicom_vision_tower_forward.1
= control target key start
LH: loop header
LB: loop body
LE: loop exit
PB: predicated region body
PF: predicated region fallthrough
CT: control target
= control target key end

     0   :  { %s3131_s24 = smov 0   ;;  %s3133_s25 = smov 0   ;;  %s4138_s0 = inlined_call_operand.vmem [shape: f32[2,17,48], index: 0, kind: input, shape index: {}]   ;;  %s4139_s1 = inlined_call_operand.vmem [shape: f32[67,32], index: 1, kind: input, shape index: {}]   ;;  %s4140_s2 = inlined_call_operand.vmem [shape: f32[2,32,96], index: 2, kind: input, shape index: {}]   ;;  %s4141_s3 = inlined_call_operand.vmem [shape: f32[2,32,32], index: 3, kind: input, shape index: {}]   ;;  %s4142_s4 = inlined_call_operand.vmem [shape: f32[2,32,128], index: 4, kind: input, shape index: {}]   ;;  %s4143_s5 = inlined_call_operand.vmem [shape: f32[2,128,32], index: 5, kind: input, shape index: {}]   ;;  %s4144_s6 = inlined_call_operand.vmem [shape: f32[2,8,128], index: 6, kind: input, shape index: {}]   ;;  %s4145_s7 = inlined_call_operand.vmem [shape: f32[2,17,32], index: 7, kind: output, shape index: {}]  }
   0x1   :  { %s3135_s26 = smov 0  }
   0x2 LB: > { %s26_s27 = sadd.s32 1, %s3069_s25  ;;  %p2649_p0 = scmp.ge.s32.totalorder %s3073_s26, 1  ;;  %s3073_s26 = sphi %s3135_s26, %s17_s26   ;;  %s3069_s25 = sphi %s3133_s25, %s4153_s25   ;;  %s3065_s24 = sphi %s3131_s24, %s4152_s24  }
   0x3   : > { %p27_p1 = scmp.ge.s32.totalorder %s26_s27, 2  ;;  %p300_p2 = scmp.lt.s32.totalorder %s3073_s26, 3 }
   0x5   : > { %s4155_s27 = smov (%p27_p1, %s26_s27), 0  ;;  %p301_p3 = pnand %p2649_p0, %p300_p2 }
   0x6   : > { %p365_p4 = scmp.lt.s32.totalorder (!%p301_p3), %s3065_s24, 1  ;;  %p2659_p5 = scmp.ne.s32.totalorder (!%p301_p3), %s3065_s24, 0 }
   0x7   : > { %304 = sbr.rel (%p301_p3) target bundleno = 4334 (0x10ee), region = 48 }
   0xc   : > { %s366_s28 = scalar_select %p365_p4, %s3065_s24, 1 }
   0xe   : > { %s2786_s29 = sshll.u32 %s366_s28, 5  ;;  %s2789_s30 = sshll.u32 %s366_s28, 7 }
   0xf   : > { %s3152_s10 = scalar_lea.vmem %s4140_s2, %s2786_s29  ;;  %s3157_s13 = scalar_lea.vmem %s4141_s3, %s2786_s29 }
  0x10   : > { %s3162_s16 = scalar_lea.vmem %s4142_s4, %s2786_s29  ;;  %s3167_s19 = scalar_lea.vmem %s4143_s5, %s2789_s30 }
  0x11   : > { %s2658_s20 = sshll.u32 %s366_s28, 3  ;;  %399 = sbr.rel (%p2659_p5) target bundleno = 455 (0x1c7), region = 52 }
  0x12   : > { %s3172_s23 = scalar_lea.vmem %s4144_s6, %s2658_s20 }
  0x16   : > { %v405_v0 = vld [vmem:[%s4139_s1 + $0x28] sm:$0xff]  ;;  %v404_v1 = vld [vmem:[%s4139_s1 + $0x20] sm:$0xff]  ;;  %v403_v2 = vld [vmem:[%s4139_s1 + $0x18] sm:$0xff]  ;;  %vm414_vm0 = vcmask 392192   ;;  %vm450_vm1 = vcmask 261120   ;;  %vm457_vm2 = vcmask 253952  }
  0x17   : > { %434 = vmatpush.msra.mxu0 %v405_v0  ;;  %2790 = vmatpush.msra.mxu2 %v405_v0  ;;  %v402_v3 = vld [vmem:[%s4139_s1 + $0x10] sm:$0xff]  ;;  %v401_v4 = vld [vmem:[%s4139_s1 + $0x8] sm:$0xff]  ;;  %v400_v5 = vld [vmem:[%s4139_s1] sm:$0xff]  ;;  %v3075_v33 = vmov 32.0  }
  0x18   : > { %2796 = vmatpush.msra.mxu3 %v405_v0  ;;  %559 = vmatpush.msra.mxu1 %v405_v0  ;;  %v411_v6 = vld [vmem:[%s4138_s0] sm:$0xff]  ;;  %v412_v7 = vld [vmem:[%s4138_s0 + $0x8] sm:$0xff]  ;;  %v2663_v9 = vld [vmem:[%s4138_s0 + $0x18] sm:$0xff]  ;;  %2847 = vrcp.f32 %v3075_v33 }
  0x19   : > { %435 = vmatpush.msra.mxu0 %v404_v1  ;;  %2791 = vmatpush.msra.mxu2 %v404_v1  ;;  %v2664_v8 = vld [vmem:[%s4138_s0 + $0x20] sm:$0xff]  ;;  %v413_v10 = vld [vmem:[%s4138_s0 + $0x10] sm:$0x1]  ;;  %v2665_v11 = vld [vmem:[%s4138_s0 + $0x28] sm:$0x1] }
  0x1a   : > { %2797 = vmatpush.msra.mxu3 %v404_v1  ;;  %560 = vmatpush.msra.mxu1 %v404_v1  ;;  %v406_v12 = vld [vmem:[%s4139_s1 + $0x30] sm:$0xff]  ;;  %v407_v16 = vld [vmem:[%s4139_s1 + $0x38] sm:$0xff]  ;;  %v408_v23 = vld [vmem:[%s4139_s1 + $0x40] sm:$0x1] }
  0x1b   : > { %436 = vmatpush.msra.mxu0 %v403_v2  ;;  %2792 = vmatpush.msra.mxu2 %v403_v2 }
  0x1c   : > { %2798 = vmatpush.msra.mxu3 %v403_v2  ;;  %561 = vmatpush.msra.mxu1 %v403_v2 }
  0x1d   : > { %437 = vmatpush.msra.mxu0 %v402_v3  ;;  %2793 = vmatpush.msra.mxu2 %v402_v3 }
  0x1e   : > { %2799 = vmatpush.msra.mxu3 %v402_v3  ;;  %562 = vmatpush.msra.mxu1 %v402_v3  ;;  %v2848_v34 = vpop.eup %2847 }
  0x1f   : > { %438 = vmatpush.msra.mxu0 %v401_v4  ;;  %2794 = vmatpush.msra.mxu2 %v401_v4  ;;  %v462_v35 = vmul.f32 32.0, %v2848_v34  ;;  %vm466_vm3 = vweird.f32 %v2848_v34 }
  0x20   : > { %2800 = vmatpush.msra.mxu3 %v401_v4  ;;  %563 = vmatpush.msra.mxu1 %v401_v4 }
  0x21   : > { %439 = vmatpush.msra.mxu0 %v400_v5  ;;  %2795 = vmatpush.msra.mxu2 %v400_v5  ;;  %v463_v36 = vsub.f32 1.0, %v462_v35 }
  0x22   : > { %2801 = vmatpush.msra.mxu3 %v400_v5  ;;  %2660 = vmatmul.msk.f32.vlgmr.msra.gmra.mxu0 %vm414_vm0, %v411_v6 }
  0x23   : > { %2661 = vmatmul.msk.f32.vlgmr.msra.gmra.mxu2 %vm414_vm0, %v412_v7  ;;  %2667 = vmatmul.msk.f32.vlgmr.msra.gmra.mxu3 %vm414_vm0, %v2664_v8  ;;  %v464_v37 = vmul.f32 %v2848_v34, %v463_v36 }
  0x24   : > { %564 = vmatpush.msra.mxu1 %v400_v5 }
  0x25   : > { %2666 = vmatmul.msk.f32.vlgmr.msra.gmra.mxu1 %vm414_vm0, %v2663_v9  ;;  %v465_v38 = vadd.f32 %v2848_v34, %v464_v37 }
  0x27   : > { %v3231_v39 = vsel %vm466_vm3, %v2848_v34, %v465_v38 }
  0x2b   : > { %2662 = vmatmul.msk.f32.gmra.mxu2 %vm414_vm0, %v413_v10  ;;  %2668 = vmatmul.msk.f32.gmra.mxu3 %vm414_vm0, %v2665_v11 }
  0x9f   : > { %v441_v13 = vpop.f32.mrf.mxu0 }
  0xa0   : > { %v442_v14 = vadd.f32 %v441_v13, %v406_v12 }
  0xa2   : > { %v451_v15 = vsel %vm450_vm1, %v442_v14, 0.0  ;;  %v566_v28 = vpop.f32.mrf.mxu1 }
  0xa3   : > { %452 = vadd.xlane.f32.xlu0 %v451_v15  ;;  %v567_v31 = vadd.f32 %v566_v28, %v406_v12 }
  0xa5   : > { %v575_v32 = vsel %vm450_vm1, %v567_v31, 0.0 }
  0xa6   : > { %v444_v17 = vpop.f32.mrf.mxu2  ;;  %v569_v18 = vpop.f32.mrf.mxu3 }
  0xa7   : > { %v445_v19 = vadd.f32 %v444_v17, %v407_v16  ;;  %v570_v20 = vadd.f32 %v569_v18, %v407_v16 }
  0xa9   : > { %v578_v21 = vsel %vm450_vm1, %v570_v20, 0.0  ;;  %v454_v22 = vsel %vm450_vm1, %v445_v19, 0.0 }
  0xaa   : > { %579 = vadd.xlane.f32.xlu2 %v578_v21 }
  0xab   : > { %455 = vadd.xlane.f32.xlu0 %v454_v22 }
  0xae   : > { %v447_v24 = vpop.f32.mrf.mxu2  ;;  %v572_v25 = vpop.f32.mrf.mxu3 }
  0xaf   : > { %v448_v26 = vadd.f32 %v447_v24, %v408_v23  ;;  %v573_v27 = vadd.f32 %v572_v25, %v408_v23 }
  0xb1   : > { %v581_v29 = vsel %vm457_vm2, %v573_v27, 0.0  ;;  %v458_v30 = vsel %vm457_vm2, %v448_v26, 0.0 }
  0xb2   : > { %582 = vadd.xlane.f32.xlu2 %v581_v29  ;;  %459 = vadd.xlane.f32.xlu1 %v458_v30  ;;  %v3281_v29 = vld [vmem:[%s4139_s1 + $0x42] ss:$0 sm:$0xff] }
  0xba   : > { %576 = vadd.xlane.f32.xlu1 %v575_v32 }
 0x116   : > { %v453_v40 = vpop.xlane.xlu0 %452 }
 0x117   : > { %v468_v41 = vmul.f32 %v3231_v39, %v453_v40 }
 0x119   : > { %v3234_v42 = vsub.f32 %v442_v14, %v468_v41 }
 0x11b   : > { %v474_v43 = vmul.f32 %v3234_v42, %v3234_v42 }
 0x11d   : > { %v580_v44 = vpop.xlane.xlu2 %579  ;;  %v477_v45 = vsel %vm450_vm1, %v474_v43, 0.0 }
 0x11e   : > { %478 = vadd.xlane.f32.xlu0 %v477_v45  ;;  %v456_v46 = vpop.xlane.xlu0 %455  ;;  %v585_v48 = vmul.f32 %v580_v44, %v3231_v39 }
 0x11f   : > { %v469_v47 = vmul.f32 %v3231_v39, %v456_v46 }
 0x120   : > { %v3245_v51 = vsub.f32 %v570_v20, %v585_v48 }
 0x121   : > { %v3241_v49 = vsub.f32 %v445_v19, %v469_v47 }
 0x122   : > { %v591_v58 = vmul.f32 %v3245_v51, %v3245_v51 }
 0x123   : > { %v475_v50 = vmul.f32 %v3241_v49, %v3241_v49 }
 0x124   : > { %v596_v63 = vsel %vm450_vm1, %v591_v58, 0.0 }
 0x125   : > { %v583_v52 = vpop.xlane.xlu2 %582  ;;  %v460_v53 = vpop.xlane.xlu1 %459  ;;  %v480_v54 = vsel %vm450_vm1, %v475_v50, 0.0 }
 0x126   : > { %v470_v55 = vmul.f32 %v3231_v39, %v460_v53  ;;  %481 = vadd.xlane.f32.xlu1 %v480_v54  ;;  %v586_v56 = vmul.f32 %v583_v52, %v3231_v39 }
 0x128   : > { %v3250_v57 = vsub.f32 %v448_v26, %v470_v55  ;;  %v3256_v60 = vsub.f32 %v573_v27, %v586_v56  ;;  %v3276_v26 = vld [vmem:[%s4139_s1 + $0x41] ss:$0 sm:$0xff] }
 0x12a   : > { %v476_v59 = vmul.f32 %v3250_v57, %v3250_v57  ;;  %v592_v2 = vmul.f32 %v3256_v60, %v3256_v60 }
 0x12c   : > { %v483_v61 = vsel %vm457_vm2, %v476_v59, 0.0  ;;  %v599_v4 = vsel %vm457_vm2, %v592_v2, 0.0 }
 0x12d   : > { %484 = vadd.xlane.f32.xlu2 %v483_v61  ;;  %v577_v62 = vpop.xlane.xlu1 %576 }
 0x12e   : > { %v584_v0 = vmul.f32 %v577_v62, %v3231_v39  ;;  %597 = vadd.xlane.f32.xlu1 %v596_v63 }
 0x130   : > { %v3261_v1 = vsub.f32 %v567_v31, %v584_v0 }
 0x132   : > { %v590_v3 = vmul.f32 %v3261_v1, %v3261_v1 }
 0x134   : > { %v593_v5 = vsel %vm450_vm1, %v590_v3, 0.0 }
 0x135   : > { %600 = vadd.xlane.f32.xlu2 %v599_v4  ;;  %594 = vadd.xlane.f32.xlu0 %v593_v5 }
 0x191   : > { %v479_v6 = vpop.xlane.xlu0 %478 }
 0x192   : > { %v486_v7 = vmul.f32 %v479_v6, %v3231_v39 }
 0x194   : > { %v489_v8 = vadd.f32 1e-05, %v486_v7 }
 0x196   : > { %2849 = vrsqrt.f32 %v489_v8  ;;  %vm498_vm5 = vweird.f32 %v489_v8 }
 0x199   : > { %v482_v9 = vpop.xlane.xlu1 %481 }
 0x19a   : > { %v487_v10 = vmul.f32 %v482_v9, %v3231_v39 }
 0x19c   : > { %v2850_v11 = vpop.eup %2849  ;;  %v490_v12 = vadd.f32 1e-05, %v487_v10 }
 0x19d   : > { %v493_v13 = vmul.f32 %v2850_v11, %v489_v8  ;;  %vm499_vm4 = vweird.f32 %v2850_v11 }
 0x19e   : > { %2851 = vrsqrt.f32 %v490_v12  ;;  %vm500_vm6 = vmor %vm498_vm5, %vm499_vm4  ;;  %vm508_vm8 = vweird.f32 %v490_v12 }
 0x19f   : > { %v494_v14 = vmul.f32 %v2850_v11, %v493_v13 }
 0x1a0   : > { %v485_v15 = vpop.xlane.xlu2 %484 }
 0x1a1   : > { %v495_v16 = vmul.f32 0.5, %v494_v14  ;;  %v488_v17 = vmul.f32 %v485_v15, %v3231_v39  ;;  %v598_v18 = vpop.xlane.xlu1 %597 }
 0x1a2   : > { %v603_v19 = vmul.f32 %v598_v18, %v3231_v39 }
 0x1a3   : > { %v496_v20 = vsub.f32 1.5, %v495_v16  ;;  %v491_v21 = vadd.f32 1e-05, %v488_v17 }
 0x1a4   : > { %v2852_v22 = vpop.eup %2851  ;;  %v606_v23 = vadd.f32 1e-05, %v603_v19 }
 0x1a5   : > { %v497_v24 = vmul.f32 %v2850_v11, %v496_v20  ;;  %v503_v25 = vmul.f32 %v2852_v22, %v490_v12  ;;  %2853 = vrsqrt.f32 %v491_v21  ;;  %vm509_vm7 = vweird.f32 %v2852_v22 }
 0x1a6   : > { %2855 = vrsqrt.f32 %v606_v23  ;;  %vm510_vm9 = vmor %vm508_vm8, %vm509_vm7  ;;  %vm518_vm12 = vweird.f32 %v491_v21  ;;  %vm624_vm14 = vweird.f32 %v606_v23 }
 0x1a7   : > { %v501_v27 = vsel %vm500_vm6, %v2850_v11, %v497_v24  ;;  %v504_v28 = vmul.f32 %v2852_v22, %v503_v25 }
 0x1a8   : > { %v522_v30 = vmul.f32 %v501_v27, %v3234_v42  ;;  %v601_v31 = vpop.xlane.xlu2 %600  ;;  %v595_v32 = vpop.xlane.xlu0 %594 }
 0x1a9   : > { %v505_v33 = vmul.f32 0.5, %v504_v28  ;;  %v604_v34 = vmul.f32 %v601_v31, %v3231_v39  ;;  %v602_v35 = vmul.f32 %v595_v32, %v3231_v39 }
 0x1aa   : > { %v526_v36 = vmul.f32 %v3276_v26, %v522_v30 }
 0x1ab   : > { %v2854_v37 = vpop.eup %2853  ;;  %v506_v38 = vsub.f32 1.5, %v505_v33  ;;  %v607_v40 = vadd.f32 1e-05, %v604_v34  ;;  %v605_v41 = vadd.f32 1e-05, %v602_v35 }
 0x1ac   : > { %v2856_v43 = vpop.eup %2855  ;;  %v530_v44 = vadd.f32 %v3281_v29, %v526_v36  ;;  %v513_v45 = vmul.f32 %v2854_v37, %v491_v21  ;;  %vm519_vm10 = vweird.f32 %v2854_v37 }
 0x1ad   : > { %v507_v46 = vmul.f32 %v2852_v22, %v506_v38  ;;  %v619_v42 = vmul.f32 %v2856_v43, %v606_v23  ;;  %2857 = vrsqrt.f32 %v607_v40  ;;  %vm625_vm11 = vweird.f32 %v2856_v43  ;;  %vm520_vm13 = vmor %vm518_vm12, %vm519_vm10 }
 0x1ae   : > { %533 = vst.msk [vmem:[%s4145_s7] sm:$0xff] %vm450_vm1, %v530_v44  ;;  %v514_v39 = vmul.f32 %v2854_v37, %v513_v45  ;;  %2859 = vrsqrt.f32 %v605_v41  ;;  %vm626_vm15 = vmor %vm624_vm14, %vm625_vm11  ;;  %vm634_vm4 = vweird.f32 %v607_v40  ;;  %vm614_vm6 = vweird.f32 %v605_v41 }
 0x1af   : > { %v511_v47 = vsel %vm510_vm9, %v2852_v22, %v507_v46  ;;  %v620_v48 = vmul.f32 %v2856_v43, %v619_v42 }
 0x1b0   : > { %v523_v50 = vmul.f32 %v511_v47, %v3241_v49  ;;  %v515_v52 = vmul.f32 0.5, %v514_v39 }
 0x1b1   : > { %v621_v53 = vmul.f32 0.5, %v620_v48 }
 0x1b2   : > { %v527_v54 = vmul.f32 %v3276_v26, %v523_v50  ;;  %v516_v55 = vsub.f32 1.5, %v515_v52 }
 0x1b3   : > { %v2858_v56 = vpop.eup %2857  ;;  %v622_v58 = vsub.f32 1.5, %v621_v53 }
 0x1b4   : > { %v2860_v59 = vpop.eup %2859  ;;  %v531_v61 = vadd.f32 %v3281_v29, %v527_v54  ;;  %v517_v62 = vmul.f32 %v2854_v37, %v516_v55  ;;  %v629_v63 = vmul.f32 %v2858_v56, %v607_v40  ;;  %vm635_vm0 = vweird.f32 %v2858_v56 }
 0x1b5   : > { %v623_v0 = vmul.f32 %v2856_v43, %v622_v58  ;;  %v609_v2 = vmul.f32 %v2860_v59, %v605_v41  ;;  %vm615_vm3 = vweird.f32 %v2860_v59  ;;  %vm636_vm5 = vmor %vm634_vm4, %vm635_vm0 }
 0x1b6   : > { %534 = vst.msk [vmem:[%s4145_s7 + $0x8] sm:$0xff] %vm450_vm1, %v531_v61  ;;  %v521_v49 = vsel %vm520_vm13, %v2854_v37, %v517_v62  ;;  %v630_v3 = vmul.f32 %v2858_v56, %v629_v63  ;;  %vm616_vm7 = vmor %vm614_vm6, %vm615_vm3 }
 0x1b7   : > { %v524_v4 = vmul.f32 %v521_v49, %v3250_v57  ;;  %v627_v5 = vsel %vm626_vm15, %v2856_v43, %v623_v0  ;;  %v610_v6 = vmul.f32 %v2860_v59, %v609_v2 }
 0x1b8   : > { %v639_v7 = vmul.f32 %v627_v5, %v3245_v51  ;;  %v631_v8 = vmul.f32 0.5, %v630_v3 }
 0x1b9   : > { %v528_v9 = vmul.f32 %v3276_v26, %v524_v4  ;;  %v611_v10 = vmul.f32 0.5, %v610_v6 }
 0x1ba   : > { %v642_v11 = vmul.f32 %v3276_v26, %v639_v7  ;;  %v632_v12 = vsub.f32 1.5, %v631_v8 }
 0x1bb   : > { %v532_v13 = vadd.f32 %v3281_v29, %v528_v9  ;;  %v612_v14 = vsub.f32 1.5, %v611_v10 }
 0x1bc   : > { %v645_v15 = vadd.f32 %v3281_v29, %v642_v11  ;;  %v633_v16 = vmul.f32 %v2858_v56, %v632_v12 }
 0x1bd   : > { %535 = vst.msk [vmem:[%s4145_s7 + $0x10] sm:$0x1] %vm457_vm2, %v532_v13  ;;  %v613_v51 = vmul.f32 %v2860_v59, %v612_v14 }
 0x1be   : > { %2670 = vst.msk [vmem:[%s4145_s7 + $0x20] sm:$0xff] %vm450_vm1, %v645_v15  ;;  %v637_v57 = vsel %vm636_vm5, %v2858_v56, %v633_v16 }
 0x1bf   : > { %v640_v17 = vmul.f32 %v637_v57, %v3256_v60  ;;  %v617_v18 = vsel %vm616_vm7, %v2860_v59, %v613_v51 }
 0x1c0   : > { %v638_v19 = vmul.f32 %v617_v18, %v3261_v1 }
 0x1c1   : > { %v643_v20 = vmul.f32 %v3276_v26, %v640_v17 }
 0x1c2   : > { %v641_v21 = vmul.f32 %v3276_v26, %v638_v19 }
 0x1c3   : > { %v646_v22 = vadd.f32 %v3281_v29, %v643_v20 }
 0x1c4   : > { %v644_v23 = vadd.f32 %v3281_v29, %v641_v21 }
 0x1c5   : > { %2671 = vst.msk [vmem:[%s4145_s7 + $0x28] sm:$0x1] %vm457_vm2, %v646_v22 }
 0x1c6   : > { %2669 = vst.msk [vmem:[%s4145_s7 + $0x18] sm:$0xff] %vm450_vm1, %v644_v23 }
 0x1c7 PF: > { %v3330_v60 = vld [vmem:[%s4145_s7] sm:$0xff]  ;;  %vm683_vm8 = vcmask 261120   ;;  %v3335_v1 = vld [vmem:[%s4145_s7 + $0x10] sm:$0x1]  ;;  %vm690_vm9 = vcmask 253952   ;;  %v3344_v26 = vld [vmem:[%s4145_s7 + $0x8] sm:$0xff] }
 0x1c8   : > { %v684_v24 = vsel %vm683_vm8, %v3330_v60, 0.0  ;;  %v691_v25 = vsel %vm690_vm9, %v3335_v1, 0.0  ;;  %v687_v27 = vsel %vm683_vm8, %v3344_v26, 0.0  ;;  %v3076_v28 = vmov 32.0   ;;  %v3364_v52 = vld [vmem:[%s3152_s10 + $0x18] sm:$0xff]  ;;  %v3368_v53 = vld [vmem:[%s3152_s10 + $0x10] sm:$0xff] }
 0x1c9   : > { %685 = vadd.xlane.f32.xlu0 %v684_v24  ;;  %692 = vadd.xlane.f32.xlu1 %v691_v25  ;;  %2901 = vrcp.f32 %v3076_v28  ;;  %v3372_v54 = vld [vmem:[%s3152_s10 + $0x8] sm:$0xff]  ;;  %v3376_v55 = vld [vmem:[%s3152_s10] sm:$0xff]  ;;  %s3077_s10 = smov 96   ;;  %vm811_vm4 = vcmask 64512   ;;  %vm850_vm5 = vcmask 138240   ;;  %vm857_vm6 = vcmask 131072  }
 0x1ca   : > { %788 = vmatpush.msra.mxu0 %v3364_v52  ;;  %v3383_v7 = vld [vmem:[%s3172_s23] sm:$0xff]  ;;  %s3078_s12 = smov 88   ;;  %s3079_s14 = smov 120   ;;  %vm902_vm7 = vcmask 1040384  }
 0x1cb   : > { %v3386_v12 = vperm.slane %v3383_v7, 0  ;;  %v3389_v16 = vperm.slane %v3383_v7, 1  ;;  %s3080_s15 = smov 64   ;;  %s3081_s17 = smov 80  }
 0x1cc   : > { %789 = vmatpush.msra.mxu0 %v3368_v53  ;;  %s3082_s18 = smov 72   ;;  %s3083_s20 = smov 104  }
 0x1cd   : > { %s3084_s21 = smov 112   ;;  %s3085_s22 = smov 56  }
 0x1ce   : > { %790 = vmatpush.msra.mxu0 %v3372_v54  ;;  %s3086_s8 = smov 40   ;;  %s3087_s9 = smov 48  }
 0x1cf   : > { %v2902_v29 = vpop.eup %2901  ;;  %s3088_s11 = smov 8   ;;  %s4146_s29 = smov 16  }
 0x1d0   : > { %v695_v30 = vmul.f32 32.0, %v2902_v29  ;;  %vm699_vm1 = vweird.f32 %v2902_v29  ;;  %791 = vmatpush.msra.mxu0 %v3376_v55  ;;  %s4148_s30 = smov 24  }
 0x1d1   : > { %688 = vadd.xlane.f32.xlu0 %v687_v27 }
 0x1d2   : > { %v696_v31 = vsub.f32 1.0, %v695_v30 }
 0x1d4   : > { %v697_v32 = vmul.f32 %v2902_v29, %v696_v31 }
 0x1d6   : > { %v698_v33 = vadd.f32 %v2902_v29, %v697_v32 }
 0x1d8   : > { %v3348_v34 = vsel %vm699_vm1, %v2902_v29, %v698_v33  ;;  %vm1354_vm1 = vcmask 130048  }
 0x23c   : > { %v686_v35 = vpop.xlane.xlu0 %685  ;;  %v693_v40 = vpop.xlane.xlu1 %692 }
 0x23d   : > { %v701_v36 = vmul.f32 %v3348_v34, %v686_v35  ;;  %v703_v45 = vmul.f32 %v3348_v34, %v693_v40 }
 0x23f   : > { %v704_v37 = vsub.f32 %v3330_v60, %v701_v36  ;;  %v3357_v42 = vsub.f32 %v3335_v1, %v703_v45  ;;  %v3402_v36 = vperm.slane %v3383_v7, 2 }
 0x241   : > { %v707_v38 = vmul.f32 %v704_v37, %v704_v37  ;;  %v709_v48 = vmul.f32 %v3357_v42, %v3357_v42 }
 0x243   : > { %v710_v41 = vsel %vm683_vm8, %v707_v38, 0.0  ;;  %v716_v50 = vsel %vm690_vm9, %v709_v48, 0.0 }
 0x244   : > { %711 = vadd.xlane.f32.xlu1 %v710_v41  ;;  %v689_v43 = vpop.xlane.xlu0 %688 }
 0x245   : > { %v702_v44 = vmul.f32 %v3348_v34, %v689_v43 }
 0x247   : > { %v705_v46 = vsub.f32 %v3344_v26, %v702_v44 }
 0x249   : > { %v708_v39 = vmul.f32 %v705_v46, %v705_v46 }
 0x24b   : > { %v713_v47 = vsel %vm683_vm8, %v708_v39, 0.0 }
 0x24c   : > { %714 = vadd.xlane.f32.xlu2 %v713_v47 }
 0x254   : > { %717 = vadd.xlane.f32.xlu2 %v716_v50 }
 0x2b7   : > { %v712_v56 = vpop.xlane.xlu1 %711 }
 0x2b8   : > { %v719_v58 = vmul.f32 %v712_v56, %v3348_v34 }
 0x2ba   : > { %v722_v59 = vadd.f32 1e-05, %v719_v58 }
 0x2bc   : > { %2903 = vrsqrt.f32 %v722_v59  ;;  %vm731_vm10 = vweird.f32 %v722_v59 }
 0x2bf   : > { %v715_v61 = vpop.xlane.xlu2 %714 }
 0x2c0   : > { %v720_v62 = vmul.f32 %v715_v61, %v3348_v34 }
 0x2c2   : > { %v2904_v63 = vpop.eup %2903  ;;  %v723_v0 = vadd.f32 1e-05, %v720_v62 }
 0x2c3   : > { %v726_v2 = vmul.f32 %v2904_v63, %v722_v59  ;;  %vm732_vm2 = vweird.f32 %v2904_v63 }
 0x2c4   : > { %2905 = vrsqrt.f32 %v723_v0  ;;  %vm733_vm11 = vmor %vm731_vm10, %vm732_vm2  ;;  %vm741_vm13 = vweird.f32 %v723_v0  ;;  %vm1358_vm2 = vcmask 195584  }
 0x2c5   : > { %v727_v49 = vmul.f32 %v2904_v63, %v726_v2 }
 0x2c7   : > { %v728_v3 = vmul.f32 0.5, %v727_v49  ;;  %v718_v4 = vpop.xlane.xlu2 %717 }
 0x2c8   : > { %v721_v5 = vmul.f32 %v718_v4, %v3348_v34 }
 0x2c9   : > { %v729_v6 = vsub.f32 1.5, %v728_v3 }
 0x2ca   : > { %v2906_v8 = vpop.eup %2905  ;;  %v724_v9 = vadd.f32 1e-05, %v721_v5 }
 0x2cb   : > { %v730_v10 = vmul.f32 %v2904_v63, %v729_v6  ;;  %v736_v11 = vmul.f32 %v2906_v8, %v723_v0  ;;  %vm742_vm12 = vweird.f32 %v2906_v8 }
 0x2cc   : > { %2907 = vrsqrt.f32 %v724_v9  ;;  %vm743_vm14 = vmor %vm741_vm13, %vm742_vm12  ;;  %vm751_vm0 = vweird.f32 %v724_v9 }
 0x2cd   : > { %v734_v13 = vsel %vm733_vm11, %v2904_v63, %v730_v10  ;;  %v737_v14 = vmul.f32 %v2906_v8, %v736_v11 }
 0x2ce   : > { %v755_v15 = vmul.f32 %v734_v13, %v704_v37 }
 0x2cf   : > { %v738_v51 = vmul.f32 0.5, %v737_v14 }
 0x2d0   : > { %v759_v57 = vmul.f32 %v3386_v12, %v755_v15 }
 0x2d1   : > { %v739_v17 = vsub.f32 1.5, %v738_v51 }
 0x2d2   : > { %v2908_v18 = vpop.eup %2907  ;;  %v763_v19 = vadd.f32 %v3389_v16, %v759_v57 }
 0x2d3   : > { %v740_v20 = vmul.f32 %v2906_v8, %v739_v17  ;;  %v746_v21 = vmul.f32 %v2908_v18, %v724_v9  ;;  %vm752_vm15 = vweird.f32 %v2908_v18 }
 0x2d4   : > { %2672 = vmatmul.msk.f32.vlgmr.msra.gmra.mxu0 %vm683_vm8, %v763_v19  ;;  %vm753_vm3 = vmor %vm751_vm0, %vm752_vm15 }
 0x2d5   : > { %v744_v22 = vsel %vm743_vm14, %v2906_v8, %v740_v20  ;;  %v747_v23 = vmul.f32 %v2908_v18, %v746_v21 }
 0x2d6   : > { %v756_v24 = vmul.f32 %v744_v22, %v705_v46 }
 0x2d7   : > { %v748_v25 = vmul.f32 0.5, %v747_v23 }
 0x2d8   : > { %v760_v27 = vmul.f32 %v3386_v12, %v756_v24 }
 0x2d9   : > { %v749_v28 = vsub.f32 1.5, %v748_v25 }
 0x2da   : > { %v764_v29 = vadd.f32 %v3389_v16, %v760_v27 }
 0x2db   : > { %v750_v30 = vmul.f32 %v2908_v18, %v749_v28 }
 0x2dc   : > { %2673 = vmatmul.msk.f32.gmra.mxu0 %vm683_vm8, %v764_v29 }
 0x2dd   : > { %v754_v31 = vsel %vm753_vm3, %v2908_v18, %v750_v30 }
 0x2de   : > { %v757_v32 = vmul.f32 %v754_v31, %v3357_v42 }
 0x2e0   : > { %v761_v33 = vmul.f32 %v3386_v12, %v757_v32 }
 0x2e2   : > { %v765_v35 = vadd.f32 %v3389_v16, %v761_v33 }
 0x2e4   : > { %2674 = vmatmul.msk.f32.gmra.mxu0 %vm683_vm8, %v765_v35 }
 0x351   : > { %v793_v37 = vpop.f32.mrf.mxu0 }
 0x352   : > { %v794_v38 = vadd.f32 %v793_v37, %v3402_v36 }
 0x354   : > { %805 = vrot.lane.b32.xlu2 %v794_v38, %s3077_s10 }
 0x359   : > { %v796_v40 = vpop.f32.mrf.mxu0 }
 0x35a   : > { %v797_v41 = vadd.f32 %v796_v40, %v3402_v36 }
 0x35c   : > { %807 = vrot.lane.b32.xlu1 %v797_v41, %s3077_s10  ;;  %v3431_v59 = vpack.i.bf16 %v794_v38, %v797_v41 }
 0x361   : > { %v799_v43 = vpop.f32.mrf.mxu0 }
 0x362   : > { %v3409_v44 = vadd.f32 %v799_v43, %v3402_v36 }
 0x364   : > { %809 = vrot.lane.b32.xlu0 %v3409_v44, %s3077_s10 }
 0x3ae   : > { %v806_v42 = vpop.permute.xlu2 %805 }
 0x3ce   : > { %v808_v46 = vpop.permute.xlu1 %807 }
 0x3d6   : > { %v810_v45 = vpop.permute.xlu0 %809 }
 0x3d7   : > { %2675 = vmatpush.xpose.msk.msra.mxu1 %vm811_vm4, %v810_v45 }
 0x3db   : > { %2676 = vmatpush.xpose.msk.msra.mxu1 %vm811_vm4, %v808_v46 }
 0x3df   : > { %2677 = vmatpush.xpose.msk.msra.mxu1 %vm811_vm4, %v806_v42 }
 0x3e2   : > { %2678 = vmatmul.msk.f32.vlgmr.msra.gmra.mxu1 %vm811_vm4, %v794_v38 }
 0x3ea   : > { %2679 = vmatmul.msk.f32.gmra.mxu1 %vm811_vm4, %v797_v41 }
 0x3f2   : > { %2680 = vmatmul.msk.f32.gmra.mxu1 %vm811_vm4, %v3409_v44 }
 0x45f   : > { %v841_v39 = vpop.f32.mrf.mxu1 }
 0x460   : > { %v851_v47 = vsel %vm850_vm5, %v841_v39, -inf }
 0x461   : > { %852 = vmax.xlane.f32.xlu0 %v851_v47 }
 0x467   : > { %v844_v48 = vpop.f32.mrf.mxu1 }
 0x468   : > { %v854_v50 = vsel %vm850_vm5, %v844_v48, -inf }
 0x469   : > { %855 = vmax.xlane.f32.xlu2 %v854_v50 }
 0x46f   : > { %v847_v56 = vpop.f32.mrf.mxu1 }
 0x470   : > { %v858_v58 = vsel %vm857_vm6, %v847_v56, -inf }
 0x471   : > { %859 = vmax.xlane.f32.xlu1 %v858_v58 }
 0x475   : > { %941 = vrot.lane.b32.xlu0 %v3409_v44, %s3078_s12 }
 0x47d   : > { %935 = vrot.lane.b32.xlu0 %v3409_v44, %s3079_s14 }
 0x481   : > { %889 = vrot.lane.b32.xlu2 %v3409_v44, %s3080_s15 }
 0x485   : > { %1069 = vrot.lane.b32.xlu0 %v3409_v44, %s3081_s17 }
 0x489   : > { %939 = vrot.lane.b32.xlu2 %v797_v41, %s3078_s12 }
 0x48a   : > { %2862 = vrot.lane.b32.xlu1 %v3431_v59, %s3080_s15 }
 0x48d   : > { %1065 = vrot.lane.b32.xlu0 %v794_v38, %s3081_s17 }
 0x491   : > { %931 = vrot.lane.b32.xlu2 %v794_v38, %s3079_s14 }
 0x492   : > { %937 = vrot.lane.b32.xlu1 %v794_v38, %s3078_s12 }
 0x499   : > { %1197 = vrot.lane.b32.xlu2 %v3409_v44, %s3082_s18 }
 0x49a   : > { %933 = vrot.lane.b32.xlu1 %v797_v41, %s3079_s14 }
 0x4a1   : > { %1193 = vrot.lane.b32.xlu2 %v794_v38, %s3082_s18 }
 0x4a2   : > { %1195 = vrot.lane.b32.xlu1 %v797_v41, %s3082_s18 }
 0x4a9   : > { %1067 = vrot.lane.b32.xlu2 %v797_v41, %s3081_s17 }
 0x4aa   : > { %1187 = vrot.lane.b32.xlu1 %v794_v38, %s3083_s20 }
 0x4b1   : > { %1059 = vrot.lane.b32.xlu2 %v794_v38, %s3084_s21 }
 0x4b2   : > { %1189 = vrot.lane.b32.xlu1 %v797_v41, %s3083_s20 }
 0x4b9   : > { %1063 = vrot.lane.b32.xlu2 %v3409_v44, %s3084_s21 }
 0x4ba   : > { %1061 = vrot.lane.b32.xlu1 %v797_v41, %s3084_s21 }
 0x4d4   : > { %v853_v61 = vpop.xlane.xlu0 %852 }
 0x4d5   : > { %v861_v62 = vsub.f32 %v841_v39, %v853_v61 }
 0x4d7   : > { %v864_v63 = vmul.f32 1.442695, %v861_v62 }
 0x4d9   : > { %2909 = vpow2.f32 %v864_v63 }
 0x4dc   : > { %v856_v0 = vpop.xlane.xlu2 %855 }
 0x4dd   : > { %v862_v2 = vsub.f32 %v844_v48, %v856_v0 }
 0x4df   : > { %v3451_v49 = vpop.eup %2909  ;;  %v866_v3 = vmul.f32 1.442695, %v862_v2 }
 0x4e0   : > { %v870_v4 = vsel %vm850_vm5, %v3451_v49, 0.0 }
 0x4e1   : > { %2911 = vpow2.f32 %v866_v3  ;;  %871 = vadd.xlane.f32.xlu0 %v870_v4 }
 0x4e4   : > { %v890_v5 = vpop.permute.xlu2 %889  ;;  %v860_v6 = vpop.xlane.xlu1 %859 }
 0x4e5   : > { %v863_v8 = vsub.f32 %v847_v56, %v860_v6  ;;  %2681 = vmatpush.msk.msra.mxu2 %vm902_vm7, %v890_v5 }
 0x4e7   : > { %v2912_v9 = vpop.eup %2911  ;;  %v868_v10 = vmul.f32 1.442695, %v863_v8  ;;  %v942_v11 = vpop.permute.xlu0 %941 }
 0x4e8   : > { %2802 = vmatpush.xpose.msk.msra.mxu3 %vm811_vm4, %v942_v11  ;;  %v873_v13 = vsel %vm850_vm5, %v2912_v9, 0.0 }
 0x4e9   : > { %2913 = vpow2.f32 %v868_v10  ;;  %874 = vadd.xlane.f32.xlu0 %v873_v13 }
 0x4ec   : > { %v940_v14 = vpop.permute.xlu2 %939 }
 0x4ed   : > { %2803 = vmatpush.xpose.msk.msra.mxu3 %vm811_vm4, %v940_v14 }
 0x4ef   : > { %v2914_v15 = vpop.eup %2913  ;;  %v936_v51 = vpop.permute.xlu0 %935 }
 0x4f0   : > { %v876_v57 = vsel %vm857_vm6, %v2914_v15, 0.0 }
 0x4f1   : > { %877 = vadd.xlane.f32.xlu0 %v876_v57 }
 0x4f4   : > { %v932_v17 = vpop.permute.xlu2 %931 }
 0x4f7   : > { %v1070_v18 = vpop.permute.xlu0 %1069 }
 0x4f8   : > { %2695 = vmatpush.xpose.msk.msrb.mxu0 %vm811_vm4, %v1070_v18 }
 0x4fc   : > { %v1198_v19 = vpop.permute.xlu2 %1197  ;;  %v2863_v20 = vpop.permute.xlu1 %2862 }
 0x4fd   : > { %v2864_v21 = vunpack.i.l.bf16 %v2863_v20  ;;  %v2865_v22 = vunpack.i.h.bf16 %v2863_v20 }
 0x4ff   : > { %919 = vmatpush.msra.mxu2 %v2864_v21  ;;  %v1066_v28 = vpop.permute.xlu0 %1065 }
 0x501   : > { %920 = vmatpush.msra.mxu2 %v2865_v22 }
 0x503   : > { %2685 = vmatpush.xpose.msk.msrb.mxu2 %vm811_vm4, %v942_v11 }
 0x504   : > { %v1194_v23 = vpop.permute.xlu2 %1193  ;;  %v938_v24 = vpop.permute.xlu1 %937 }
 0x505   : > { %1191 = vrot.lane.b32.xlu0 %v3409_v44, %s3083_s20  ;;  %2804 = vmatpush.xpose.msk.msra.mxu3 %vm811_vm4, %v938_v24 }
 0x507   : > { %2686 = vmatpush.xpose.msk.msrb.mxu2 %vm811_vm4, %v940_v14 }
 0x509   : > { %2705 = vmatpush.xpose.msk.msrb.mxu3 %vm811_vm4, %v1198_v19 }
 0x50b   : > { %2687 = vmatpush.xpose.msk.msrb.mxu2 %vm811_vm4, %v938_v24 }
 0x50c   : > { %v1068_v25 = vpop.permute.xlu2 %1067  ;;  %v934_v27 = vpop.permute.xlu1 %933 }
 0x50d   : > { %2689 = vmatmul.msk.f32.vlgmr.msra.gmra.mxu3 %vm811_vm4, %v934_v27  ;;  %2696 = vmatpush.xpose.msk.msrb.mxu0 %vm811_vm4, %v1068_v25 }
 0x511   : > { %2697 = vmatpush.xpose.msk.msrb.mxu0 %vm811_vm4, %v1066_v28 }
 0x514   : > { %v1060_v29 = vpop.permute.xlu2 %1059  ;;  %v1196_v30 = vpop.permute.xlu1 %1195 }
 0x515   : > { %2690 = vmatmul.msk.f32.gmra.mxu3 %vm811_vm4, %v936_v51  ;;  %2698 = vmatmul.msk.f32.vlgmr.msrb.gmra.mxu0 %vm811_vm4, %v1060_v29 }
 0x516   : > { %2706 = vmatpush.xpose.msk.msrb.mxu3 %vm811_vm4, %v1196_v30 }
 0x51a   : > { %2707 = vmatpush.xpose.msk.msrb.mxu3 %vm811_vm4, %v1194_v23 }
 0x51c   : > { %v1188_v31 = vpop.permute.xlu1 %1187  ;;  %v1064_v35 = vpop.permute.xlu2 %1063 }
 0x51d   : > { %2708 = vmatmul.msk.f32.vlgmr.msrb.gmra.mxu3 %vm811_vm4, %v1188_v31 }
 0x524   : > { %v1190_v32 = vpop.permute.xlu1 %1189 }
 0x525   : > { %2709 = vmatmul.msk.f32.gmra.mxu3 %vm811_vm4, %v1190_v32 }
 0x52c   : > { %v1062_v33 = vpop.permute.xlu1 %1061 }
 0x52d   : > { %2699 = vmatmul.msk.f32.gmra.mxu0 %vm811_vm4, %v1062_v33 }
 0x535   : > { %2700 = vmatmul.msk.f32.gmra.mxu0 %vm811_vm4, %v1064_v35 }
 0x554   : > { %v872_v37 = vpop.xlane.xlu0 %871 }
 0x555   : > { %2915 = vrcp.f32 %v872_v37 }
 0x55b   : > { %v2916_v38 = vpop.eup %2915 }
 0x55c   : > { %v875_v40 = vpop.xlane.xlu0 %874  ;;  %v882_v41 = vmul.f32 %v2916_v38, %v3451_v49 }
 0x55d   : > { %2917 = vrcp.f32 %v875_v40 }
 0x55e   : > { %2682 = vmatmul.msk.f32.vlgmr.msra.gmra.mxu2 %vm850_vm5, %v882_v41 }
 0x563   : > { %v2918_v43 = vpop.eup %2917 }
 0x564   : > { %v878_v45 = vpop.xlane.xlu0 %877  ;;  %v883_v46 = vmul.f32 %v2918_v43, %v2912_v9 }
 0x565   : > { %2919 = vrcp.f32 %v878_v45 }
 0x566   : > { %2683 = vmatmul.msk.f32.gmra.mxu2 %vm850_vm5, %v883_v46 }
 0x56b   : > { %v2920_v42 = vpop.eup %2919 }
 0x56c   : > { %v884_v39 = vmul.f32 %v2920_v42, %v2914_v15 }
 0x56e   : > { %2684 = vmatmul.msk.f32.gmra.mxu2 %vm850_vm5, %v884_v39 }
 0x576   : > { %2688 = vmatmul.msk.f32.vlgmr.msrb.gmra.mxu2 %vm811_vm4, %v932_v17 }
 0x577   : > { %v1192_v47 = vpop.permute.xlu0 %1191 }
 0x578   : > { %2710 = vmatmul.msk.f32.gmra.mxu3 %vm811_vm4, %v1192_v47 }
 0x590   : > { %v975_v48 = vpop.f32.mrf.mxu3 }
 0x591   : > { %v984_v50 = vsel %vm850_vm5, %v975_v48, -inf }
 0x592   : > { %985 = vmax.xlane.f32.xlu1 %v984_v50  ;;  %v1100_v56 = vpop.f32.mrf.mxu0 }
 0x593   : > { %v1109_v61 = vsel %vm850_vm5, %v1100_v56, -inf }
 0x598   : > { %v978_v58 = vpop.f32.mrf.mxu3 }
 0x599   : > { %v987_v62 = vsel %vm857_vm6, %v978_v58, -inf }
 0x59a   : > { %1110 = vmax.xlane.f32.xlu1 %v1109_v61  ;;  %988 = vmax.xlane.f32.xlu2 %v987_v62 }
 0x5a0   : > { %v1228_v63 = vpop.f32.mrf.mxu3 }
 0x5a1   : > { %v1237_v0 = vsel %vm850_vm5, %v1228_v63, -inf }
 0x5a2   : > { %1238 = vmax.xlane.f32.xlu0 %v1237_v0 }
 0x5a8   : > { %v1231_v2 = vpop.f32.mrf.mxu3 }
 0x5a9   : > { %v1240_v49 = vsel %vm850_vm5, %v1231_v2, -inf }
 0x5aa   : > { %1241 = vmax.xlane.f32.xlu2 %v1240_v49  ;;  %v3490_v3 = vpop.f32.mrf.mxu0 }
 0x5ab   : > { %v1112_v4 = vsel %vm850_vm5, %v3490_v3, -inf }
 0x5ac   : > { %1113 = vmax.xlane.f32.xlu0 %v1112_v4 }
 0x5b2   : > { %v1106_v5 = vpop.f32.mrf.mxu0 }
 0x5b3   : > { %v1115_v6 = vsel %vm857_vm6, %v1106_v5, -inf }
 0x5b4   : > { %1116 = vmax.xlane.f32.xlu2 %v1115_v6 }
 0x5cc   : > { %2867 = vrot.lane.b32.xlu2 %v3431_v59, %s3085_s22 }
 0x5d4   : > { %1274 = vrot.lane.b32.xlu2 %v3409_v44, %s3086_s8 }
 0x5e1   : > { %v3518_v30 = vpop.f32.mrf.mxu2 }
 0x5e9   : > { %v3522_v35 = vpop.f32.mrf.mxu2 }
 0x5f1   : > { %v3524_v38 = vpop.f32.mrf.mxu2 }
 0x5f9   : > { %v972_v43 = vpop.f32.mrf.mxu2 }
 0x5fa   : > { %v981_v45 = vsel %vm850_vm5, %v972_v43, -inf }
 0x5fb   : > { %v1234_v8 = vpop.f32.mrf.mxu3 }
 0x5fc   : > { %v1243_v9 = vsel %vm857_vm6, %v1234_v8, -inf }
 0x5fd   : > { %1244 = vmax.xlane.f32.xlu1 %v1243_v9 }
 0x605   : > { %v986_v10 = vpop.xlane.xlu1 %985 }
 0x606   : > { %v991_v11 = vsub.f32 %v975_v48, %v986_v10 }
 0x608   : > { %v995_v13 = vmul.f32 1.442695, %v991_v11 }
 0x60a   : > { %2921 = vpow2.f32 %v995_v13 }
 0x60d   : > { %v989_v14 = vpop.xlane.xlu2 %988  ;;  %v1111_v25 = vpop.xlane.xlu1 %1110 }
 0x60e   : > { %v992_v15 = vsub.f32 %v978_v58, %v989_v14  ;;  %v1118_v27 = vsub.f32 %v1100_v56, %v1111_v25 }
 0x610   : > { %v3500_v51 = vpop.eup %2921  ;;  %v997_v57 = vmul.f32 1.442695, %v992_v15  ;;  %v1121_v28 = vmul.f32 1.442695, %v1118_v27 }
 0x611   : > { %v1002_v17 = vsel %vm850_vm5, %v3500_v51, 0.0 }
 0x612   : > { %2923 = vpow2.f32 %v997_v57  ;;  %1003 = vadd.xlane.f32.xlu0 %v1002_v17 }
 0x615   : > { %v1239_v32 = vpop.xlane.xlu0 %1238 }
 0x616   : > { %1018 = vrot.lane.b32.xlu1 %v3409_v44, %s3085_s22  ;;  %v1246_v33 = vsub.f32 %v1228_v63, %v1239_v32 }
 0x618   : > { %v3506_v18 = vpop.eup %2923  ;;  %v1249_v37 = vmul.f32 1.442695, %v1246_v33 }
 0x619   : > { %v1005_v19 = vsel %vm857_vm6, %v3506_v18, 0.0 }
 0x61a   : > { %1006 = vadd.xlane.f32.xlu0 %v1005_v19 }
 0x61d   : > { %v1242_v20 = vpop.xlane.xlu2 %1241 }
 0x61e   : > { %v1247_v21 = vsub.f32 %v1231_v2, %v1242_v20 }
 0x61f   : > { %v1114_v0 = vpop.xlane.xlu0 %1113 }
 0x620   : > { %v1251_v22 = vmul.f32 1.442695, %v1247_v21  ;;  %v1119_v20 = vsub.f32 %v3490_v3, %v1114_v0 }
 0x622   : > { %2925 = vpow2.f32 %v1251_v22  ;;  %v1123_v21 = vmul.f32 1.442695, %v1119_v20 }
 0x623   : > { %2927 = vpow2.f32 %v1121_v28 }
 0x624   : > { %2929 = vpow2.f32 %v1249_v37 }
 0x627   : > { %v1117_v46 = vpop.xlane.xlu2 %1116 }
 0x628   : > { %v3510_v23 = vpop.eup %2925  ;;  %v1120_v47 = vsub.f32 %v1106_v5, %v1117_v46 }
 0x629   : > { %v1258_v24 = vsel %vm850_vm5, %v3510_v23, 0.0  ;;  %v3516_v29 = vpop.eup %2927 }
 0x62a   : > { %1259 = vadd.xlane.f32.xlu2 %v1258_v24  ;;  %v1127_v31 = vsel %vm850_vm5, %v3516_v29, 0.0  ;;  %v3526_v40 = vpop.eup %2929  ;;  %v1125_v50 = vmul.f32 1.442695, %v1120_v47 }
 0x62b   : > { %v1255_v41 = vsel %vm850_vm5, %v3526_v40, 0.0 }
 0x62e   : > { %2872 = vrot.lane.b32.xlu0 %v3431_v59, %s3086_s8 }
 0x62f   : > { %v2868_v62 = vpop.permute.xlu2 %2867 }
 0x630   : > { %v2869_v49 = vunpack.i.l.bf16 %v2868_v62 }
 0x637   : > { %v1275_v4 = vpop.permute.xlu2 %1274 }
 0x640   : > { %1128 = vadd.xlane.f32.xlu1 %v1127_v31 }
 0x658   : > { %1256 = vadd.xlane.f32.xlu0 %v1255_v41 }
 0x660   : > { %982 = vmax.xlane.f32.xlu0 %v981_v45 }
 0x670   : > { %v1245_v42 = vpop.xlane.xlu1 %1244 }
 0x671   : > { %v1248_v39 = vsub.f32 %v1234_v8, %v1245_v42 }
 0x673   : > { %v1253_v48 = vmul.f32 1.442695, %v1248_v39 }
 0x674   : > { %1146 = vrot.lane.b32.xlu0 %v3409_v44, %s3087_s9  ;;  %v2870_v44 = vunpack.i.h.bf16 %v2868_v62 }
 0x675   : > { %2931 = vpow2.f32 %v1253_v48 }
 0x676   : > { %2933 = vpow2.f32 %v1125_v50 }
 0x67b   : > { %v3533_v56 = vpop.eup %2931 }
 0x67c   : > { %v1261_v58 = vsel %vm857_vm6, %v3533_v56, 0.0  ;;  %v3537_v61 = vpop.eup %2933 }
 0x67d   : > { %1262 = vadd.xlane.f32.xlu1 %v1261_v58  ;;  %v1133_v63 = vsel %vm857_vm6, %v3537_v61, 0.0 }
 0x685   : > { %1134 = vadd.xlane.f32.xlu1 %v1133_v63  ;;  %v1004_v5 = vpop.xlane.xlu0 %1003 }
 0x688   : > { %v1019_v2 = vpop.permute.xlu1 %1018 }
 0x689   : > { %2691 = vmatpush.msk.msra.mxu2 %vm902_vm7, %v1019_v2 }
 0x68b   : > { %1047 = vmatpush.msra.mxu2 %v2869_v49 }
 0x68d   : > { %1048 = vmatpush.msra.mxu2 %v2870_v44  ;;  %v1007_v6 = vpop.xlane.xlu0 %1006 }
 0x68f   : > { %2711 = vmatpush.msk.msrb.mxu2 %vm902_vm7, %v1275_v4  ;;  %v3579_v4 = vld [vmem:[%s3157_s13 + $0x18] sm:$0xff] }
 0x690   : > { %1383 = vmatpush.msra.mxu0 %v3579_v4 }
 0x6a0   : > { %v2873_v8 = vpop.permute.xlu0 %2872 }
 0x6a1   : > { %v2874_v9 = vunpack.i.l.bf16 %v2873_v8  ;;  %v2875_v10 = vunpack.i.h.bf16 %v2873_v8  ;;  %v3591_v8 = vld [vmem:[%s3157_s13] sm:$0xff] }
 0x6a3   : > { %1303 = vmatpush.msrb.mxu2 %v2874_v9  ;;  %v2724_v9 = vld [vmem:[%s4145_s7 + $0x18] sm:$0xff] }
 0x6a5   : > { %1304 = vmatpush.msrb.mxu2 %v2875_v10  ;;  %v1614_v10 = vsel %vm683_vm8, %v2724_v9, 0.0 }
 0x6b3   : > { %v1129_v31 = vpop.xlane.xlu1 %1128 }
 0x6cb   : > { %v1257_v11 = vpop.xlane.xlu0 %1256 }
 0x6d3   : > { %v983_v13 = vpop.xlane.xlu0 %982 }
 0x6d4   : > { %v990_v14 = vsub.f32 %v972_v43, %v983_v13 }
 0x6d6   : > { %v993_v15 = vmul.f32 1.442695, %v990_v14 }
 0x6d8   : > { %2935 = vpow2.f32 %v993_v15 }
 0x6d9   : > { %2937 = vpow2.f32 %v1123_v21  ;;  %v2725_v21 = vld [vmem:[%s4145_s7 + $0x20] sm:$0xff] }
 0x6de   : > { %v2936_v57 = vpop.eup %2935 }
 0x6df   : > { %v999_v17 = vsel %vm850_vm5, %v2936_v57, 0.0  ;;  %v2938_v22 = vpop.eup %2937 }
 0x6e0   : > { %1000 = vadd.xlane.f32.xlu0 %v999_v17  ;;  %v1130_v24 = vsel %vm850_vm5, %v2938_v22, 0.0 }
 0x6e6   : > { %v1147_v19 = vpop.permute.xlu0 %1146 }
 0x6e7   : > { %2701 = vmatpush.msk.msrb.mxu1 %vm902_vm7, %v1147_v19 }
 0x6f0   : > { %v1263_v45 = vpop.xlane.xlu1 %1262 }
 0x6f4   : > { %2877 = vrot.lane.b32.xlu0 %v3431_v59, %s3087_s9 }
 0x6f8   : > { %v1135_v47 = vpop.xlane.xlu1 %1134 }
 0x71e   : > { %1131 = vadd.xlane.f32.xlu0 %v1130_v24 }
 0x753   : > { %v1001_v25 = vpop.xlane.xlu0 %1000 }
 0x754   : > { %2939 = vrcp.f32 %v1001_v25 }
 0x755   : > { %2941 = vrcp.f32 %v1004_v5  ;;  %v3582_v5 = vld [vmem:[%s3157_s13 + $0x10] sm:$0xff] }
 0x756   : > { %2943 = vrcp.f32 %v1129_v31  ;;  %1384 = vmatpush.msra.mxu0 %v3582_v5 }
 0x757   : > { %2945 = vrcp.f32 %v1007_v6  ;;  %v3587_v6 = vld [vmem:[%s3157_s13 + $0x8] sm:$0xff] }
 0x758   : > { %2947 = vrcp.f32 %v1257_v11  ;;  %1385 = vmatpush.msra.mxu0 %v3587_v6  ;;  %v2726_v11 = vld [vmem:[%s4145_s7 + $0x28] sm:$0x1] }
 0x759   : > { %v1620_v13 = vsel %vm690_vm9, %v2726_v11, 0.0 }
 0x75a   : > { %v2940_v27 = vpop.eup %2939  ;;  %1386 = vmatpush.msra.mxu0 %v3591_v8 }
 0x75b   : > { %v1011_v28 = vmul.f32 %v2940_v27, %v2936_v57  ;;  %v2942_v32 = vpop.eup %2941 }
 0x75c   : > { %v1012_v59 = vmul.f32 %v2942_v32, %v3500_v51  ;;  %v2944_v33 = vpop.eup %2943 }
 0x75d   : > { %2692 = vmatmul.msk.f32.vlgmr.msra.gmra.mxu2 %vm850_vm5, %v1011_v28  ;;  %v2946_v41 = vpop.eup %2945 }
 0x75e   : > { %1707 = vmatpush.msra.mxu2 %v3364_v52  ;;  %v1139_v52 = vmul.f32 %v2944_v33, %v3516_v29 }
 0x760   : > { %1708 = vmatpush.msra.mxu2 %v3368_v53  ;;  %v1013_v53 = vmul.f32 %v2946_v41, %v3506_v18 }
 0x762   : > { %1709 = vmatpush.msra.mxu2 %v3372_v54  ;;  %v1260_v54 = vpop.xlane.xlu2 %1259 }
 0x763   : > { %2949 = vrcp.f32 %v1260_v54 }
 0x764   : > { %1710 = vmatpush.msra.mxu2 %v3376_v55  ;;  %v2948_v55 = vpop.eup %2947  ;;  %2951 = vrcp.f32 %v1263_v45 }
 0x765   : > { %2693 = vmatmul.msk.f32.gmra.mxu2 %vm850_vm5, %v1012_v59  ;;  %v1267_v51 = vmul.f32 %v2948_v55, %v3526_v40 }
 0x766   : > { %v2878_v3 = vpop.permute.xlu0 %2877 }
 0x767   : > { %v2879_v37 = vunpack.i.l.bf16 %v2878_v3  ;;  %v2880_v43 = vunpack.i.h.bf16 %v2878_v3 }
 0x769   : > { %1175 = vmatpush.msrb.mxu1 %v2879_v37  ;;  %v2950_v46 = vpop.eup %2949 }
 0x76a   : > { %v1268_v42 = vmul.f32 %v2950_v46, %v3510_v23  ;;  %v2952_v29 = vpop.eup %2951 }
 0x76b   : > { %1176 = vmatpush.msrb.mxu1 %v2880_v43  ;;  %v1269_v18 = vmul.f32 %v2952_v29, %v3533_v56 }
 0x76c   : > { %2702 = vmatmul.msk.f32.vlgmr.msrb.gmra.mxu1 %vm850_vm5, %v1139_v52 }
 0x76d   : > { %2694 = vmatmul.msk.f32.gmra.mxu2 %vm850_vm5, %v1013_v53 }
 0x775   : > { %2712 = vmatmul.msk.f32.vlgmr.msrb.gmra.mxu2 %vm850_vm5, %v1267_v51 }
 0x77d   : > { %2713 = vmatmul.msk.f32.gmra.mxu2 %vm850_vm5, %v1268_v42  ;;  %v3630_v42 = vperm.slane %v3383_v7, 3 }
 0x785   : > { %2714 = vmatmul.msk.f32.gmra.mxu2 %vm850_vm5, %v1269_v18 }
 0x791   : > { %v1132_v39 = vpop.xlane.xlu0 %1131 }
 0x792   : > { %2953 = vrcp.f32 %v1132_v39 }
 0x793   : > { %2955 = vrcp.f32 %v1135_v47 }
 0x798   : > { %v2954_v48 = vpop.eup %2953 }
 0x799   : > { %v1140_v40 = vmul.f32 %v2954_v48, %v2938_v22  ;;  %v2956_v50 = vpop.eup %2955  ;;  %v1617_v22 = vsel %vm683_vm8, %v2725_v21, 0.0 }
 0x79a   : > { %v1141_v58 = vmul.f32 %v2956_v50, %v3537_v61 }
 0x79b   : > { %2703 = vmatmul.msk.f32.gmra.mxu1 %vm850_vm5, %v1140_v40 }
 0x7a3   : > { %2704 = vmatmul.msk.f32.gmra.mxu1 %vm850_vm5, %v1141_v58 }
 0x7e0   : > { %v1050_v23 = vpop.f32.mrf.mxu2 }
 0x7e1   : > { %1318 = vrot.lane.b32.xlu2 %v1050_v23, %s3088_s11 }
 0x7e8   : > { %v1053_v56 = vpop.f32.mrf.mxu2 }
 0x7e9   : > { %1320 = vrot.lane.b32.xlu0 %v1053_v56, %s3088_s11  ;;  %v1178_v62 = vpop.f32.mrf.mxu1 }
 0x7ea   : > { %1330 = vrot.lane.b32.xlu1 %v1178_v62, %s4146_s29 }
 0x7f0   : > { %v1056_v63 = vpop.f32.mrf.mxu2 }
 0x7f8   : > { %v1306_v0 = vpop.f32.mrf.mxu2 }
 0x7f9   : > { %1342 = vrot.lane.b32.xlu2 %v1306_v0, %s4148_s30 }
 0x800   : > { %v1309_v61 = vpop.f32.mrf.mxu2 }
 0x801   : > { %1344 = vrot.lane.b32.xlu2 %v1309_v61, %s4148_s30 }
 0x808   : > { %v1312_v44 = vpop.f32.mrf.mxu2 }
 0x813   : > { %1618 = vadd.xlane.f32.xlu0 %v1617_v22 }
 0x818   : > { %v1181_v2 = vpop.f32.mrf.mxu1 }
 0x819   : > { %1332 = vrot.lane.b32.xlu1 %v1181_v2, %s4146_s29 }
 0x820   : > { %v1184_v49 = vpop.f32.mrf.mxu1 }
 0x821   : > { %1322 = vrot.lane.b32.xlu1 %v1056_v63, %s3088_s11  ;;  %1334 = vrot.lane.b32.xlu2 %v1184_v49, %s4146_s29 }
 0x829   : > { %1346 = vrot.lane.b32.xlu1 %v1312_v44, %s4148_s30 }
 0x83b   : > { %v1319_v14 = vpop.permute.xlu2 %1318 }
 0x83c   : > { %v1351_v15 = vsel %vm811_vm4, %v3518_v30, %v1319_v14 }
 0x84a   : > { %1615 = vadd.xlane.f32.xlu2 %v1614_v10 }
 0x852   : > { %1621 = vadd.xlane.f32.xlu2 %v1620_v13 }
 0x853   : > { %v1343_v17 = vpop.permute.xlu2 %1342 }
 0x85b   : > { %v1321_v24 = vpop.permute.xlu0 %1320  ;;  %v1345_v27 = vpop.permute.xlu2 %1344 }
 0x85c   : > { %v1331_v57 = vpop.permute.xlu1 %1330  ;;  %v1352_v25 = vsel %vm811_vm4, %v3522_v35, %v1321_v24 }
 0x85d   : > { %v1355_v19 = vsel %vm1354_vm1, %v1351_v15, %v1331_v57 }
 0x85e   : > { %v1359_v20 = vsel %vm1358_vm2, %v1355_v19, %v1343_v17 }
 0x85f   : > { %2715 = vmatmul.msk.f32.vlgmr.msra.gmra.mxu0 %vm683_vm8, %v1359_v20 }
 0x87b   : > { %v1335_v3 = vpop.permute.xlu2 %1334 }
 0x886   : > { %v1619_v48 = vpop.xlane.xlu0 %1618 }
 0x887   : > { %v1624_v40 = vmul.f32 %v1619_v48, %v3348_v34 }
 0x889   : > { %v3643_v7 = vsub.f32 %v2725_v21, %v1624_v40 }
 0x88b   : > { %v1333_v30 = vpop.permute.xlu1 %1332  ;;  %v1630_v56 = vmul.f32 %v3643_v7, %v3643_v7 }
 0x88c   : > { %v1356_v28 = vsel %vm1354_vm1, %v1352_v25, %v1333_v30 }
 0x88d   : > { %v1360_v31 = vsel %vm1358_vm2, %v1356_v28, %v1345_v27  ;;  %v1635_v62 = vsel %vm683_vm8, %v1630_v56, 0.0 }
 0x88e   : > { %2716 = vmatmul.msk.f32.gmra.mxu0 %vm683_vm8, %v1360_v31 }
 0x893   : > { %v1323_v32 = vpop.permute.xlu1 %1322 }
 0x894   : > { %v1353_v59 = vsel %vm811_vm4, %v3524_v38, %v1323_v32 }
 0x895   : > { %v1357_v37 = vsel %vm1354_vm1, %v1353_v59, %v1335_v3 }
 0x89b   : > { %v1347_v33 = vpop.permute.xlu1 %1346 }
 0x89c   : > { %v1361_v41 = vsel %vm1358_vm2, %v1357_v37, %v1347_v33 }
 0x89d   : > { %2717 = vmatmul.msk.f32.gmra.mxu0 %vm683_vm8, %v1361_v41 }
 0x8bd   : > { %v1616_v35 = vpop.xlane.xlu2 %1615 }
 0x8be   : > { %v1623_v43 = vmul.f32 %v1616_v35, %v3348_v34 }
 0x8c0   : > { %v1626_v52 = vsub.f32 %v2724_v9, %v1623_v43 }
 0x8c2   : > { %v1629_v53 = vmul.f32 %v1626_v52, %v1626_v52 }
 0x8c4   : > { %v1632_v54 = vsel %vm683_vm8, %v1629_v53, 0.0 }
 0x8c5   : > { %1633 = vadd.xlane.f32.xlu2 %v1632_v54  ;;  %v1622_v55 = vpop.xlane.xlu2 %1621 }
 0x8c6   : > { %v1625_v51 = vmul.f32 %v1622_v55, %v3348_v34 }
 0x8c8   : > { %v3624_v38 = vsub.f32 %v2726_v11, %v1625_v51 }
 0x8ca   : > { %v1631_v45 = vmul.f32 %v3624_v38, %v3624_v38 }
 0x8cc   : > { %v1638_v46 = vsel %vm690_vm9, %v1631_v45, 0.0 }
 0x8cd   : > { %1639 = vadd.xlane.f32.xlu2 %v1638_v46 }
 0x8dc   : > { %v1388_v29 = vpop.f32.mrf.mxu0 }
 0x8dd   : > { %v1397_v18 = vadd.f32 %v1388_v29, %v3330_v60 }
 0x8df   : > { %v3634_v39 = vadd.f32 %v3630_v42, %v1397_v18 }
 0x8e1   : > { %v1404_v47 = vsel %vm683_vm8, %v3634_v39, 0.0 }
 0x8e2   : > { %1405 = vadd.xlane.f32.xlu1 %v1404_v47 }
 0x90b   : > { %v1391_v50 = vpop.f32.mrf.mxu0 }
 0x90c   : > { %v1398_v58 = vadd.f32 %v1391_v50, %v3344_v26 }
 0x90e   : > { %v3641_v23 = vadd.f32 %v3630_v42, %v1398_v58 }
 0x910   : > { %v1407_v60 = vsel %vm683_vm8, %v3641_v23, 0.0 }
 0x911   : > { %1408 = vadd.xlane.f32.xlu0 %v1407_v60 }
 0x919   : > { %1636 = vadd.xlane.f32.xlu0 %v1635_v62 }
 0x91a   : > { %v1394_v63 = vpop.f32.mrf.mxu0 }
 0x91b   : > { %v1399_v0 = vadd.f32 %v1394_v63, %v3335_v1 }
 0x91d   : > { %v3652_v26 = vadd.f32 %v3630_v42, %v1399_v0 }
 0x91f   : > { %v1410_v61 = vsel %vm690_vm9, %v3652_v26, 0.0 }
 0x920   : > { %1411 = vadd.xlane.f32.xlu1 %v1410_v61 }
 0x938   : > { %v1634_v2 = vpop.xlane.xlu2 %1633 }
 0x939   : > { %v1641_v49 = vmul.f32 %v1634_v2, %v3348_v34 }
 0x93b   : > { %v1644_v44 = vadd.f32 1e-05, %v1641_v49 }
 0x93d   : > { %2957 = vrsqrt.f32 %v1644_v44  ;;  %vm1653_vm10 = vweird.f32 %v1644_v44 }
 0x940   : > { %v1640_v30 = vpop.xlane.xlu2 %1639 }
 0x941   : > { %v1643_v27 = vmul.f32 %v1640_v30, %v3348_v34 }
 0x943   : > { %v2958_v9 = vpop.eup %2957  ;;  %v1646_v28 = vadd.f32 1e-05, %v1643_v27 }
 0x944   : > { %v1648_v10 = vmul.f32 %v2958_v9, %v1644_v44  ;;  %vm1654_vm11 = vweird.f32 %v2958_v9 }
 0x945   : > { %vm1655_vm12 = vmor %vm1653_vm10, %vm1654_vm11  ;;  %2959 = vrsqrt.f32 %v1646_v28  ;;  %vm1673_vm13 = vweird.f32 %v1646_v28 }
 0x946   : > { %v1649_v11 = vmul.f32 %v2958_v9, %v1648_v10  ;;  %v3692_v10 = vld [vmem:[%s3162_s16 + $0x18] sm:$0xff] }
 0x947   : > { %1500 = vmatpush.msra.mxu1 %v3692_v10 }
 0x948   : > { %v1650_v13 = vmul.f32 0.5, %v1649_v11  ;;  %v3700_v11 = vld [vmem:[%s3162_s16 + $0x8] sm:$0xff] }
 0x94a   : > { %v1651_v14 = vsub.f32 1.5, %v1650_v13  ;;  %v3703_v13 = vld [vmem:[%s3162_s16] sm:$0xff] }
 0x94b   : > { %v2960_v41 = vpop.eup %2959 }
 0x94c   : > { %v1652_v1 = vmul.f32 %v2958_v9, %v1651_v14  ;;  %vm1674_vm14 = vweird.f32 %v2960_v41 }
 0x94d   : > { %vm1675_vm0 = vmor %vm1673_vm13, %vm1674_vm14 }
 0x94e   : > { %v1656_v15 = vsel %vm1655_vm12, %v2958_v9, %v1652_v1 }
 0x94f   : > { %v1677_v57 = vmul.f32 %v1656_v15, %v1626_v52  ;;  %v1668_v52 = vmul.f32 %v2960_v41, %v1646_v28 }
 0x951   : > { %v1680_v17 = vmul.f32 %v1677_v57, %v3386_v12  ;;  %v1669_v54 = vmul.f32 %v2960_v41, %v1668_v52 }
 0x953   : > { %v1683_v19 = vadd.f32 %v1680_v17, %v3389_v16  ;;  %v1670_v46 = vmul.f32 0.5, %v1669_v54 }
 0x955   : > { %v1406_v20 = vpop.xlane.xlu1 %1405  ;;  %2727 = vmatmul.msk.f32.vlgmr.msra.gmra.mxu2 %vm683_vm8, %v1683_v19  ;;  %v1671_v40 = vsub.f32 1.5, %v1670_v46 }
 0x956   : > { %v1413_v21 = vmul.f32 %v1406_v20, %v3348_v34 }
 0x957   : > { %v1672_v60 = vmul.f32 %v2960_v41, %v1671_v40 }
 0x958   : > { %v3662_v22 = vsub.f32 %v3634_v39, %v1413_v21 }
 0x959   : > { %v1676_v0 = vsel %vm1675_vm0, %v2960_v41, %v1672_v60 }
 0x95a   : > { %v1419_v24 = vmul.f32 %v3662_v22, %v3662_v22  ;;  %v1679_v49 = vmul.f32 %v1676_v0, %v3624_v38 }
 0x95c   : > { %v1422_v25 = vsel %vm683_vm8, %v1419_v24, 0.0  ;;  %v1682_v44 = vmul.f32 %v1679_v49, %v3386_v12  ;;  %v3714_v24 = vld [vmem:[%s3172_s23] sm:$0xff] }
 0x95d   : > { %1423 = vadd.xlane.f32.xlu1 %v1422_v25  ;;  %v3717_v25 = vperm.slane %v3714_v24, 4  ;;  %v3721_v28 = vperm.slane %v3714_v24, 5 }
 0x95e   : > { %v1685_v9 = vadd.f32 %v1682_v44, %v3389_v16  ;;  %v3775_v44 = vld [vmem:[%s3167_s19 + $0x70] sm:$0xff] }
 0x984   : > { %v1409_v31 = vpop.xlane.xlu0 %1408 }
 0x985   : > { %v1414_v32 = vmul.f32 %v1409_v31, %v3348_v34 }
 0x987   : > { %v3670_v59 = vsub.f32 %v3641_v23, %v1414_v32 }
 0x989   : > { %v1420_v3 = vmul.f32 %v3670_v59, %v3670_v59 }
 0x98b   : > { %v1425_v33 = vsel %vm683_vm8, %v1420_v3, 0.0 }
 0x98c   : > { %1426 = vadd.xlane.f32.xlu0 %v1425_v33  ;;  %v1637_v37 = vpop.xlane.xlu0 %1636 }
 0x98d   : > { %v1642_v35 = vmul.f32 %v1637_v37, %v3348_v34 }
 0x98f   : > { %v1645_v43 = vadd.f32 1e-05, %v1642_v35 }
 0x991   : > { %2961 = vrsqrt.f32 %v1645_v43  ;;  %vm1663_vm3 = vweird.f32 %v1645_v43 }
 0x993   : > { %v1412_v53 = vpop.xlane.xlu1 %1411 }
 0x994   : > { %v1415_v55 = vmul.f32 %v1412_v53, %v3348_v34 }
 0x996   : > { %v3678_v51 = vsub.f32 %v3652_v26, %v1415_v55 }
 0x997   : > { %v2962_v45 = vpop.eup %2961 }
 0x998   : > { %v1658_v29 = vmul.f32 %v2962_v45, %v1645_v43  ;;  %v1421_v18 = vmul.f32 %v3678_v51, %v3678_v51  ;;  %vm1664_vm15 = vweird.f32 %v2962_v45 }
 0x999   : > { %vm1665_vm10 = vmor %vm1663_vm3, %vm1664_vm15 }
 0x99a   : > { %v1659_v47 = vmul.f32 %v2962_v45, %v1658_v29  ;;  %v1428_v48 = vsel %vm690_vm9, %v1421_v18, 0.0 }
 0x99b   : > { %1429 = vadd.xlane.f32.xlu1 %v1428_v48 }
 0x99c   : > { %v1660_v50 = vmul.f32 0.5, %v1659_v47 }
 0x99e   : > { %v1661_v58 = vsub.f32 1.5, %v1660_v50 }
 0x9a0   : > { %v1662_v56 = vmul.f32 %v2962_v45, %v1661_v58 }
 0x9a2   : > { %v1666_v62 = vsel %vm1665_vm10, %v2962_v45, %v1662_v56 }
 0x9a3   : > { %v1678_v63 = vmul.f32 %v1666_v62, %v3643_v7  ;;  %v3696_v7 = vld [vmem:[%s3162_s16 + $0x10] sm:$0xff] }
 0x9a4   : > { %1501 = vmatpush.msra.mxu1 %v3696_v7 }
 0x9a5   : > { %v1681_v61 = vmul.f32 %v1678_v63, %v3386_v12 }
 0x9a6   : > { %1502 = vmatpush.msra.mxu1 %v3700_v11 }
 0x9a7   : > { %v1684_v2 = vadd.f32 %v1681_v61, %v3389_v16 }
 0x9a8   : > { %1503 = vmatpush.msra.mxu1 %v3703_v13 }
 0x9a9   : > { %2728 = vmatmul.msk.f32.gmra.mxu2 %vm683_vm8, %v1684_v2 }
 0x9b1   : > { %2729 = vmatmul.msk.f32.gmra.mxu2 %vm683_vm8, %v1685_v9  ;;  %v3779_v9 = vld [vmem:[%s3167_s19 + $0x68] sm:$0xff] }
 0x9d0   : > { %v1424_v12 = vpop.xlane.xlu1 %1423 }
 0x9d1   : > { %v1431_v16 = vmul.f32 %v1424_v12, %v3348_v34  ;;  %v3783_v12 = vld [vmem:[%s3167_s19 + $0x60] sm:$0xff] }
 0x9d3   : > { %v1434_v38 = vadd.f32 1e-05, %v1431_v16  ;;  %v3787_v16 = vld [vmem:[%s3167_s19 + $0x58] sm:$0xff] }
 0x9d5   : > { %2963 = vrsqrt.f32 %v1434_v38  ;;  %vm1443_vm12 = vweird.f32 %v1434_v38 }
 0x9d8   : > { %v1712_v14 = vpop.f32.mrf.mxu2 }
 0x9d9   : > { %v3709_v1 = vadd.f32 %v1712_v14, %v3402_v36  ;;  %v3799_v14 = vld [vmem:[%s3167_s19 + $0x48] sm:$0xff] }
 0x9db   : > { %v2964_v15 = vpop.eup %2963  ;;  %1852 = vrot.lane.b32.xlu1 %v3709_v1, %s3078_s12 }
 0x9dc   : > { %v1438_v57 = vmul.f32 %v2964_v15, %v1434_v38  ;;  %vm1444_vm11 = vweird.f32 %v2964_v15  ;;  %v3795_v38 = vld [vmem:[%s3167_s19 + $0x50] sm:$0xff] }
 0x9dd   : > { %vm1445_vm13 = vmor %vm1443_vm12, %vm1444_vm11 }
 0x9de   : > { %v1439_v17 = vmul.f32 %v2964_v15, %v1438_v57  ;;  %v3807_v57 = vld [vmem:[%s3167_s19 + $0x38] sm:$0xff] }
 0x9e0   : > { %v1440_v19 = vmul.f32 0.5, %v1439_v17  ;;  %v3815_v17 = vld [vmem:[%s3167_s19 + $0x30] sm:$0xff] }
 0x9e2   : > { %v1441_v20 = vsub.f32 1.5, %v1440_v19  ;;  %v3819_v19 = vld [vmem:[%s3167_s19 + $0x28] sm:$0xff] }
 0x9e4   : > { %v1442_v21 = vmul.f32 %v2964_v15, %v1441_v20  ;;  %v3823_v20 = vld [vmem:[%s3167_s19 + $0x20] sm:$0xff] }
 0x9e6   : > { %v1446_v30 = vsel %vm1445_vm13, %v2964_v15, %v1442_v21  ;;  %v3803_v15 = vld [vmem:[%s3167_s19 + $0x40] sm:$0xff]  ;;  %v3827_v21 = vld [vmem:[%s3167_s19 + $0x18] sm:$0xff] }
 0x9e7   : > { %v1467_v27 = vmul.f32 %v1446_v30, %v3662_v22  ;;  %v3832_v30 = vperm.slane %v3714_v24, 6 }
 0x9e9   : > { %v1471_v31 = vmul.f32 %v3717_v25, %v1467_v27  ;;  %v3838_v27 = vld [vmem:[%s3167_s19 + $0x10] sm:$0xff] }
 0x9eb   : > { %v1475_v32 = vadd.f32 %v3721_v28, %v1471_v31 }
 0x9ed   : > { %2718 = vmatmul.msk.f32.vlgmr.msra.gmra.mxu1 %vm683_vm8, %v1475_v32  ;;  %v3842_v32 = vld [vmem:[%s3167_s19 + $0x8] sm:$0xff] }
 0x9ff   : > { %v1427_v3 = vpop.xlane.xlu0 %1426 }
 0xa00   : > { %v1432_v33 = vmul.f32 %v1427_v3, %v3348_v34 }
 0xa02   : > { %v1435_v37 = vadd.f32 1e-05, %v1432_v33  ;;  %v3846_v33 = vld [vmem:[%s3167_s19] sm:$0xff] }
 0xa04   : > { %2965 = vrsqrt.f32 %v1435_v37  ;;  %vm1453_vm15 = vweird.f32 %v1435_v37 }
 0xa0a   : > { %v2966_v41 = vpop.eup %2965 }
 0xa0b   : > { %v1448_v35 = vmul.f32 %v2966_v41, %v1435_v37  ;;  %vm1454_vm14 = vweird.f32 %v2966_v41 }
 0xa0c   : > { %vm1455_vm0 = vmor %vm1453_vm15, %vm1454_vm14 }
 0xa0d   : > { %v1449_v43 = vmul.f32 %v2966_v41, %v1448_v35 }
 0xa0e   : > { %v1430_v52 = vpop.xlane.xlu1 %1429 }
 0xa0f   : > { %v1450_v53 = vmul.f32 0.5, %v1449_v43  ;;  %v1433_v22 = vmul.f32 %v1430_v52, %v3348_v34 }
 0xa11   : > { %v1451_v54 = vsub.f32 1.5, %v1450_v53  ;;  %v1436_v55 = vadd.f32 1e-05, %v1433_v22 }
 0xa13   : > { %v1452_v45 = vmul.f32 %v2966_v41, %v1451_v54  ;;  %2967 = vrsqrt.f32 %v1436_v55  ;;  %vm1463_vm10 = vweird.f32 %v1436_v55 }
 0xa15   : > { %v1456_v46 = vsel %vm1455_vm0, %v2966_v41, %v1452_v45 }
 0xa16   : > { %v1468_v29 = vmul.f32 %v1456_v46, %v3670_v59 }
 0xa18   : > { %v1472_v18 = vmul.f32 %v3717_v25, %v1468_v29 }
 0xa19   : > { %v2968_v47 = vpop.eup %2967 }
 0xa1a   : > { %v1458_v48 = vmul.f32 %v2968_v47, %v1436_v55  ;;  %v1476_v40 = vadd.f32 %v3721_v28, %v1472_v18  ;;  %vm1464_vm3 = vweird.f32 %v2968_v47 }
 0xa1b   : > { %vm1465_vm11 = vmor %vm1463_vm10, %vm1464_vm3 }
 0xa1c   : > { %v1459_v50 = vmul.f32 %v2968_v47, %v1458_v48  ;;  %2719 = vmatmul.msk.f32.gmra.mxu1 %vm683_vm8, %v1476_v40 }
 0xa1e   : > { %v1460_v58 = vmul.f32 0.5, %v1459_v50 }
 0xa20   : > { %v1461_v60 = vsub.f32 1.5, %v1460_v58 }
 0xa22   : > { %v1462_v56 = vmul.f32 %v2968_v47, %v1461_v60 }
 0xa24   : > { %v1466_v62 = vsel %vm1465_vm11, %v2968_v47, %v1462_v56 }
 0xa25   : > { %v1469_v63 = vmul.f32 %v1466_v62, %v3678_v51 }
 0xa27   : > { %v1473_v59 = vmul.f32 %v3717_v25, %v1469_v63 }
 0xa29   : > { %v1477_v0 = vadd.f32 %v3721_v28, %v1473_v59 }
 0xa2b   : > { %2720 = vmatmul.msk.f32.gmra.mxu1 %vm683_vm8, %v1477_v0 }
 0xa2c   : > { %v1715_v61 = vpop.f32.mrf.mxu2 }
 0xa2d   : > { %v3737_v2 = vadd.f32 %v1715_v61, %v3402_v36 }
 0xa2f   : > { %1854 = vrot.lane.b32.xlu0 %v3737_v2, %s3078_s12  ;;  %1848 = vrot.lane.b32.xlu1 %v3737_v2, %s3079_s14 }
 0xa34   : > { %v1718_v49 = vpop.f32.mrf.mxu2 }
 0xa35   : > { %v3744_v51 = vadd.f32 %v1718_v49, %v3402_v36  ;;  %v3765_v36 = vld [vmem:[%s3167_s19 + $0x78] sm:$0xff] }
 0xa36   : > { %1578 = vmatpush.msra.mxu3 %v3765_v36 }
 0xa37   : > { %2110 = vrot.lane.b32.xlu1 %v3737_v2, %s3082_s18  ;;  %1728 = vrot.lane.b32.xlu0 %v3744_v51, %s3077_s10 }
 0xa38   : > { %1856 = vrot.lane.b32.xlu2 %v3744_v51, %s3078_s12  ;;  %1579 = vmatpush.msra.mxu3 %v3775_v44 }
 0xa3a   : > { %1580 = vmatpush.msra.mxu3 %v3779_v9 }
 0xa3c   : > { %1581 = vmatpush.msra.mxu3 %v3783_v12 }
 0xa3e   : > { %1582 = vmatpush.msra.mxu3 %v3787_v16 }
 0xa3f   : > { %2102 = vrot.lane.b32.xlu1 %v3709_v1, %s3083_s20  ;;  %1726 = vrot.lane.b32.xlu0 %v3737_v2, %s3077_s10 }
 0xa40   : > { %1846 = vrot.lane.b32.xlu2 %v3709_v1, %s3079_s14  ;;  %1583 = vmatpush.msra.mxu3 %v3795_v38 }
 0xa42   : > { %1584 = vmatpush.msra.mxu3 %v3799_v14 }
 0xa44   : > { %1585 = vmatpush.msra.mxu3 %v3803_v15 }
 0xa46   : > { %1586 = vmatpush.msra.mxu3 %v3807_v57 }
 0xa47   : > { %2104 = vrot.lane.b32.xlu1 %v3737_v2, %s3083_s20  ;;  %2112 = vrot.lane.b32.xlu0 %v3744_v51, %s3082_s18 }
 0xa48   : > { %1724 = vrot.lane.b32.xlu2 %v3709_v1, %s3077_s10  ;;  %1587 = vmatpush.msra.mxu3 %v3815_v17 }
 0xa4a   : > { %1588 = vmatpush.msra.mxu3 %v3819_v19 }
 0xa4c   : > { %1589 = vmatpush.msra.mxu3 %v3823_v20 }
 0xa4d   : > { %v1853_v0 = vpop.permute.xlu1 %1852 }
 0xa4e   : > { %1590 = vmatpush.msra.mxu3 %v3827_v21 }
 0xa4f   : > { %1976 = vrot.lane.b32.xlu1 %v3737_v2, %s3084_s21  ;;  %2108 = vrot.lane.b32.xlu0 %v3709_v1, %s3082_s18 }
 0xa50   : > { %1850 = vrot.lane.b32.xlu2 %v3744_v51, %s3079_s14  ;;  %1591 = vmatpush.msra.mxu3 %v3838_v27 }
 0xa52   : > { %1592 = vmatpush.msra.mxu3 %v3842_v32 }
 0xa54   : > { %1593 = vmatpush.msra.mxu3 %v3846_v33 }
 0xa57   : > { %1982 = vrot.lane.b32.xlu0 %v3737_v2, %s3081_s17 }
 0xa58   : > { %1984 = vrot.lane.b32.xlu2 %v3744_v51, %s3081_s17 }
 0xa5f   : > { %1974 = vrot.lane.b32.xlu0 %v3709_v1, %s3084_s21 }
 0xa60   : > { %1980 = vrot.lane.b32.xlu2 %v3709_v1, %s3081_s17  ;;  %s4151_s17 = smov 16  }
 0xa67   : > { %1978 = vrot.lane.b32.xlu0 %v3744_v51, %s3084_s21 }
 0xa68   : > { %2106 = vrot.lane.b32.xlu2 %v3744_v51, %s3083_s20 }
 0xa6a   : > { %v1505_v31 = vpop.f32.mrf.mxu1 }
 0xa6b   : > { %v1506_v3 = vadd.f32 %v1505_v31, %v3832_v30 }
 0xa6d   : > { %v2721_v37 = vmul.f32 -1.702, %v1506_v3 }
 0xa6f   : > { %v1520_v41 = vmul.f32 1.442695, %v2721_v37 }
 0xa71   : > { %2969 = vpow2.f32 %v1520_v41 }
 0xa77   : > { %v2970_v35 = vpop.eup %2969 }
 0xa78   : > { %v1526_v43 = vadd.f32 1.0, %v2970_v35 }
 0xa7a   : > { %2971 = vrcp.f32 %v1526_v43  ;;  %v1540_v54 = vand.u32 2147483648, %v1526_v43  ;;  %v1538_v45 = vand.u32 2147483647, %v1526_v43  ;;  %vm1534_vm13 = vweird.f32 %v1526_v43 }
 0xa7c   : > { %v1541_v29 = vor.u32 1.1754944e-38, %v1540_v54  ;;  %vm1539_vm15 = vcmp.eq.f32.partialorder %v1538_v45, 8.507059e+37 }
 0xa80   : > { %v2972_v52 = vpop.eup %2971 }
 0xa81   : > { %v1530_v53 = vmul.f32 %v2972_v52, %v1526_v43  ;;  %vm1535_vm12 = vweird.f32 %v2972_v52 }
 0xa82   : > { %vm1536_vm14 = vmor %vm1534_vm13, %vm1535_vm12 }
 0xa83   : > { %v1531_v22 = vsub.f32 1.0, %v1530_v53 }
 0xa85   : > { %v1532_v55 = vmul.f32 %v2972_v52, %v1531_v22 }
 0xa87   : > { %v1533_v46 = vadd.f32 %v2972_v52, %v1532_v55 }
 0xa89   : > { %v1537_v18 = vsel %vm1536_vm14, %v2972_v52, %v1533_v46 }
 0xa8a   : > { %v1542_v47 = vsel %vm1539_vm15, %v1541_v29, %v1537_v18 }
 0xa8b   : > { %v1574_v48 = vmul.f32 %v1542_v47, %v1506_v3 }
 0xa8d   : > { %1594 = vmatmul.f32.vlgmr.msra.gmra.mxu3 %v1574_v48 }
 0xa92   : > { %v1857_v40 = vpop.permute.xlu2 %1856 }
 0xa93   : > { %2740 = vmatpush.xpose.msk.msrb.mxu3 %vm811_vm4, %v1857_v40 }
 0xa99   : > { %v1508_v50 = vpop.f32.mrf.mxu1 }
 0xa9a   : > { %v1509_v58 = vadd.f32 %v1508_v50, %v3832_v30  ;;  %v3852_v60 = vpop.permute.xlu2 %1846 }
 0xa9c   : > { %v2722_v56 = vmul.f32 -1.702, %v1509_v58 }
 0xa9e   : > { %v1522_v62 = vmul.f32 1.442695, %v2722_v56 }
 0xaa0   : > { %2973 = vpow2.f32 %v1522_v62 }
 0xaa1   : > { %v1855_v63 = vpop.permute.xlu0 %1854  ;;  %v3860_v22 = vpop.permute.xlu1 %1848 }
 0xaa2   : > { %v1725_v59 = vpop.permute.xlu2 %1724  ;;  %2741 = vmatpush.xpose.msk.msrb.mxu3 %vm811_vm4, %v1855_v63 }
 0xaa6   : > { %v2974_v61 = vpop.eup %2973  ;;  %2742 = vmatpush.xpose.msk.msrb.mxu3 %vm811_vm4, %v1853_v0 }
 0xaa7   : > { %v1527_v49 = vadd.f32 1.0, %v2974_v61 }
 0xaa8   : > { %v1511_v31 = vpop.f32.mrf.mxu1 }
 0xaa9   : > { %2975 = vrcp.f32 %v1527_v49  ;;  %v1512_v3 = vadd.f32 %v1511_v31, %v3832_v30  ;;  %v1729_v37 = vpop.permute.xlu0 %1728  ;;  %v1555_v45 = vand.u32 2147483648, %v1527_v49  ;;  %v1553_v29 = vand.u32 2147483647, %v1527_v49  ;;  %v2111_v61 = vpop.permute.xlu1 %2110 }
 0xaaa   : > { %2730 = vmatpush.xpose.msk.msrb.mxu0 %vm811_vm4, %v1729_v37  ;;  %v3858_v35 = vpop.permute.xlu2 %1850  ;;  %vm1549_vm3 = vweird.f32 %v1527_v49 }
 0xaab   : > { %v2723_v41 = vmul.f32 -1.702, %v1512_v3  ;;  %v1556_v50 = vor.u32 1.1754944e-38, %v1555_v45  ;;  %vm1554_vm11 = vcmp.eq.f32.partialorder %v1553_v29, 8.507059e+37 }
 0xaad   : > { %v1524_v43 = vmul.f32 1.442695, %v2723_v41 }
 0xaaf   : > { %v2976_v52 = vpop.eup %2975  ;;  %2977 = vpow2.f32 %v1524_v43 }
 0xab0   : > { %v1545_v53 = vmul.f32 %v2976_v52, %v1527_v49  ;;  %vm1550_vm0 = vweird.f32 %v2976_v52 }
 0xab1   : > { %v1727_v54 = vpop.permute.xlu0 %1726  ;;  %vm1551_vm10 = vmor %vm1549_vm3, %vm1550_vm0 }
 0xab2   : > { %2731 = vmatpush.xpose.msk.msrb.mxu0 %vm811_vm4, %v1727_v54  ;;  %v1546_v55 = vsub.f32 1.0, %v1545_v53  ;;  %v1985_v48 = vpop.permute.xlu2 %1984  ;;  %v2103_v53 = vpop.permute.xlu1 %2102 }
 0xab4   : > { %v1547_v46 = vmul.f32 %v2976_v52, %v1546_v55 }
 0xab5   : > { %v2978_v18 = vpop.eup %2977 }
 0xab6   : > { %v1528_v47 = vadd.f32 1.0, %v2978_v18  ;;  %2732 = vmatpush.xpose.msk.msrb.mxu0 %vm811_vm4, %v1725_v59  ;;  %v1548_v40 = vadd.f32 %v2976_v52, %v1547_v46 }
 0xab8   : > { %2979 = vrcp.f32 %v1528_v47  ;;  %v1552_v56 = vsel %vm1551_vm10, %v2976_v52, %v1548_v40  ;;  %v1570_v41 = vand.u32 2147483648, %v1528_v47  ;;  %v1568_v52 = vand.u32 2147483647, %v1528_v47 }
 0xab9   : > { %v2113_v62 = vpop.permute.xlu0 %2112  ;;  %2733 = vmatmul.msk.f32.vlgmr.msrb.gmra.mxu0 %vm811_vm4, %v3709_v1  ;;  %v1557_v63 = vsel %vm1554_vm11, %v1556_v50, %v1552_v56  ;;  %vm1564_vm13 = vweird.f32 %v1528_v47 }
 0xaba   : > { %2750 = vmatpush.xpose.msk.msra.mxu0 %vm811_vm4, %v1985_v48  ;;  %2760 = vmatpush.xpose.msk.msra.mxu3 %vm811_vm4, %v2113_v62  ;;  %v1575_v0 = vmul.f32 %v1557_v63, %v1509_v58  ;;  %v1571_v58 = vor.u32 1.1754944e-38, %v1570_v41  ;;  %vm1569_vm15 = vcmp.eq.f32.partialorder %v1568_v52, 8.507059e+37  ;;  %v1981_v18 = vpop.permute.xlu2 %1980  ;;  %v2105_v48 = vpop.permute.xlu1 %2104 }
 0xabc   : > { %1597 = vmatmul.f32.gmra.mxu3 %v1575_v0 }
 0xabe   : > { %v2980_v59 = vpop.eup %2979  ;;  %2761 = vmatpush.xpose.msk.msra.mxu3 %vm811_vm4, %v2111_v61 }
 0xabf   : > { %v1560_v49 = vmul.f32 %v2980_v59, %v1528_v47  ;;  %vm1565_vm12 = vweird.f32 %v2980_v59 }
 0xac0   : > { %vm1566_vm14 = vmor %vm1564_vm13, %vm1565_vm12 }
 0xac1   : > { %v2109_v31 = vpop.permute.xlu0 %2108  ;;  %2734 = vmatmul.msk.f32.gmra.mxu0 %vm811_vm4, %v3737_v2  ;;  %v1561_v37 = vsub.f32 1.0, %v1560_v49 }
 0xac2   : > { %2762 = vmatpush.xpose.msk.msra.mxu3 %vm811_vm4, %v2109_v31 }
 0xac3   : > { %v1562_v43 = vmul.f32 %v2980_v59, %v1561_v37 }
 0xac5   : > { %v1563_v54 = vadd.f32 %v2980_v59, %v1562_v43 }
 0xac7   : > { %v1567_v55 = vsel %vm1566_vm14, %v2980_v59, %v1563_v54 }
 0xac8   : > { %v1572_v45 = vsel %vm1569_vm15, %v1571_v58, %v1567_v55 }
 0xac9   : > { %v1983_v46 = vpop.permute.xlu0 %1982  ;;  %2735 = vmatmul.msk.f32.gmra.mxu0 %vm811_vm4, %v3744_v51  ;;  %v1576_v29 = vmul.f32 %v1572_v45, %v1512_v3  ;;  %v1977_v3 = vpop.permute.xlu1 %1976 }
 0xaca   : > { %2751 = vmatpush.xpose.msk.msra.mxu0 %vm811_vm4, %v1983_v46 }
 0xacb   : > { %1600 = vmatmul.f32.gmra.mxu3 %v1576_v29 }
 0xace   : > { %2752 = vmatpush.xpose.msk.msra.mxu0 %vm811_vm4, %v1981_v18 }
 0xad1   : > { %v1975_v47 = vpop.permute.xlu0 %1974 }
 0xad2   : > { %2296 = vmatpush.msrb.mxu0 %v3579_v4 }
 0xad3   : > { %2753 = vmatmul.msk.f32.vlgmr.msra.gmra.mxu0 %vm811_vm4, %v1975_v47  ;;  %2743 = vmatmul.msk.f32.vlgmr.msrb.gmra.mxu3 %vm811_vm4, %v3852_v60 }
 0xad4   : > { %2297 = vmatpush.msrb.mxu0 %v3582_v5  ;;  %2486 = vmatpush.msrb.mxu3 %v3765_v36  ;;  %v2107_v5 = vpop.permute.xlu2 %2106 }
 0xad6   : > { %2298 = vmatpush.msrb.mxu0 %v3587_v6  ;;  %2487 = vmatpush.msrb.mxu3 %v3775_v44  ;;  %v3909_v6 = vperm.slane %v3714_v24, 7 }
 0xad8   : > { %2299 = vmatpush.msrb.mxu0 %v3591_v8  ;;  %2488 = vmatpush.msrb.mxu3 %v3779_v9 }
 0xad9   : > { %v1979_v4 = vpop.permute.xlu0 %1978 }
 0xada   : > { %2489 = vmatpush.msrb.mxu3 %v3783_v12 }
 0xadb   : > { %2754 = vmatmul.msk.f32.gmra.mxu0 %vm811_vm4, %v1977_v3  ;;  %2744 = vmatmul.msk.f32.gmra.mxu3 %vm811_vm4, %v3860_v22 }
 0xadc   : > { %2490 = vmatpush.msrb.mxu3 %v3787_v16 }
 0xade   : > { %2491 = vmatpush.msrb.mxu3 %v3795_v38 }
 0xae0   : > { %2492 = vmatpush.msrb.mxu3 %v3799_v14 }
 0xae2   : > { %2493 = vmatpush.msrb.mxu3 %v3803_v15 }
 0xae3   : > { %2755 = vmatmul.msk.f32.gmra.mxu0 %vm811_vm4, %v1979_v4  ;;  %2745 = vmatmul.msk.f32.gmra.mxu3 %vm811_vm4, %v3858_v35 }
 0xae4   : > { %2494 = vmatpush.msrb.mxu3 %v3807_v57 }
 0xae6   : > { %2495 = vmatpush.msrb.mxu3 %v3815_v17 }
 0xae8   : > { %2496 = vmatpush.msrb.mxu3 %v3819_v19 }
 0xaea   : > { %2497 = vmatpush.msrb.mxu3 %v3823_v20 }
 0xaeb   : > { %2763 = vmatmul.msk.f32.vlgmr.msra.gmra.mxu3 %vm811_vm4, %v2103_v53 }
 0xaec   : > { %2498 = vmatpush.msrb.mxu3 %v3827_v21 }
 0xaee   : > { %2499 = vmatpush.msrb.mxu3 %v3838_v27 }
 0xaf0   : > { %2500 = vmatpush.msrb.mxu3 %v3842_v32 }
 0xaf2   : > { %2501 = vmatpush.msrb.mxu3 %v3846_v33 }
 0xaf3   : > { %2764 = vmatmul.msk.f32.gmra.mxu3 %vm811_vm4, %v2105_v48 }
 0xafb   : > { %2765 = vmatmul.msk.f32.gmra.mxu3 %vm811_vm4, %v2107_v5 }
 0xb10   : > { %v1595_v8 = vpop.f32.mrf.mxu3 }
 0xb11   : > { %v1596_v36 = vadd.f32 %v1595_v8, %v3909_v6 }
 0xb13   : > { %v1604_v44 = vadd.f32 %v1596_v36, %v3634_v39 }
 0xb15   : > { %1607 = vst.msk [vmem:[%s4145_s7] sm:$0xff] %vm683_vm8, %v1604_v44 }
 0xb36   : > { %v1759_v9 = vpop.f32.mrf.mxu0 }
 0xb37   : > { %v1768_v12 = vsel %vm850_vm5, %v1759_v9, -inf }
 0xb38   : > { %1769 = vmax.xlane.f32.xlu1 %v1768_v12 }
 0xb3e   : > { %v1762_v16 = vpop.f32.mrf.mxu0 }
 0xb3f   : > { %v1598_v38 = vpop.f32.mrf.mxu3  ;;  %v1771_v14 = vsel %vm850_vm5, %v1762_v16, -inf }
 0xb40   : > { %v1599_v24 = vadd.f32 %v1598_v38, %v3909_v6  ;;  %1772 = vmax.xlane.f32.xlu2 %v1771_v14 }
 0xb42   : > { %v1605_v15 = vadd.f32 %v1599_v24, %v3641_v23 }
 0xb44   : > { %1608 = vst.msk [vmem:[%s4145_s7 + $0x8] sm:$0xff] %vm683_vm8, %v1605_v15 }
 0xb46   : > { %v1765_v39 = vpop.f32.mrf.mxu0 }
 0xb47   : > { %v1774_v57 = vsel %vm857_vm6, %v1765_v39, -inf }
 0xb48   : > { %1775 = vmax.xlane.f32.xlu2 %v1774_v57 }
 0xb4e   : > { %v1601_v17 = vpop.f32.mrf.mxu3 }
 0xb4f   : > { %v1602_v19 = vadd.f32 %v1601_v17, %v3909_v6 }
 0xb50   : > { %v2015_v20 = vpop.f32.mrf.mxu0 }
 0xb51   : > { %v2024_v21 = vsel %vm850_vm5, %v2015_v20, -inf  ;;  %v1606_v27 = vadd.f32 %v1602_v19, %v3652_v26  ;;  %v3945_v26 = vpack.i.bf16 %v3709_v1, %v3737_v2 }
 0xb52   : > { %2025 = vmax.xlane.f32.xlu1 %v2024_v21 }
 0xb53   : > { %1609 = vst.msk [vmem:[%s4145_s7 + $0x10] sm:$0x1] %vm690_vm9, %v1606_v27 }
 0xb56   : > { %v3953_v35 = vpop.f32.mrf.mxu3 }
 0xb57   : > { %v1896_v55 = vsel %vm850_vm5, %v3953_v35, -inf }
 0xb58   : > { %v3933_v23 = vpop.f32.mrf.mxu0 }
 0xb59   : > { %v2027_v32 = vsel %vm850_vm5, %v3933_v23, -inf }
 0xb5a   : > { %2028 = vmax.xlane.f32.xlu0 %v2027_v32 }
 0xb5e   : > { %v3955_v40 = vpop.f32.mrf.mxu3 }
 0xb5f   : > { %v1899_v8 = vsel %vm850_vm5, %v3955_v40, -inf }
 0xb60   : > { %v3937_v33 = vpop.f32.mrf.mxu0 }
 0xb61   : > { %v2030_v60 = vsel %vm857_vm6, %v3937_v33, -inf }
 0xb62   : > { %2031 = vmax.xlane.f32.xlu2 %v2030_v60 }
 0xb66   : > { %v3957_v63 = vpop.f32.mrf.mxu3 }
 0xb67   : > { %v1902_v18 = vsel %vm857_vm6, %v3957_v63, -inf }
 0xb6b   : > { %1805 = vrot.lane.b32.xlu1 %v3744_v51, %s3080_s15 }
 0xb6e   : > { %2882 = vrot.lane.b32.xlu0 %v3945_v26, %s3085_s22  ;;  %v3961_v43 = vpop.f32.mrf.mxu3 }
 0xb76   : > { %2887 = vrot.lane.b32.xlu0 %v3945_v26, %s3080_s15  ;;  %v3966_v46 = vpop.f32.mrf.mxu3  ;;  %s4150_s15 = smov 24  }
 0xb7a   : > { %1933 = vrot.lane.b32.xlu2 %v3744_v51, %s3085_s22 }
 0xb7e   : > { %v3974_v47 = vpop.f32.mrf.mxu3 }
 0xb7f   : > { %v2158_v5 = vsel %vm857_vm6, %v3974_v47, -inf }
 0xbab   : > { %v1770_v22 = vpop.xlane.xlu1 %1769 }
 0xbac   : > { %v1777_v50 = vsub.f32 %v1759_v9, %v1770_v22 }
 0xbae   : > { %v1780_v56 = vmul.f32 1.442695, %v1777_v50 }
 0xbb0   : > { %2981 = vpow2.f32 %v1780_v56 }
 0xbb3   : > { %v1773_v62 = vpop.xlane.xlu2 %1772 }
 0xbb4   : > { %v1778_v1 = vsub.f32 %v1762_v16, %v1773_v62  ;;  %v2152_v16 = vsel %vm850_vm5, %v3961_v43, -inf }
 0xbb6   : > { %v2982_v2 = vpop.eup %2981  ;;  %v1782_v0 = vmul.f32 1.442695, %v1778_v1 }
 0xbb7   : > { %v1786_v61 = vsel %vm850_vm5, %v2982_v2, 0.0 }
 0xbb8   : > { %2983 = vpow2.f32 %v1782_v0  ;;  %1787 = vadd.xlane.f32.xlu1 %v1786_v61 }
 0xbbb   : > { %v1776_v59 = vpop.xlane.xlu2 %1775 }
 0xbbc   : > { %v1779_v49 = vsub.f32 %v1765_v39, %v1776_v59  ;;  %v2155_v39 = vsel %vm850_vm5, %v3966_v46, -inf }
 0xbbe   : > { %v2984_v31 = vpop.eup %2983  ;;  %v1784_v37 = vmul.f32 1.442695, %v1779_v49 }
 0xbbf   : > { %v1789_v41 = vsel %vm850_vm5, %v2984_v31, 0.0 }
 0xbc0   : > { %2985 = vpow2.f32 %v1784_v37  ;;  %1790 = vadd.xlane.f32.xlu2 %v1789_v41 }
 0xbc5   : > { %v2026_v52 = vpop.xlane.xlu1 %2025 }
 0xbc6   : > { %v2033_v53 = vsub.f32 %v2015_v20, %v2026_v52  ;;  %v2986_v54 = vpop.eup %2985 }
 0xbc7   : > { %v1792_v45 = vsel %vm857_vm6, %v2986_v54, 0.0 }
 0xbc8   : > { %v2036_v58 = vmul.f32 1.442695, %v2033_v53  ;;  %1897 = vmax.xlane.f32.xlu2 %v1896_v55  ;;  %1793 = vadd.xlane.f32.xlu1 %v1792_v45 }
 0xbca   : > { %2987 = vpow2.f32 %v2036_v58 }
 0xbcd   : > { %v3978_v4 = vpop.xlane.xlu0 %2028 }
 0xbd0   : > { %v3968_v29 = vpop.eup %2987  ;;  %1903 = vmax.xlane.f32.xlu1 %v1902_v18 }
 0xbd1   : > { %v2042_v48 = vsel %vm850_vm5, %v3968_v29, 0.0 }
 0xbd2   : > { %2043 = vadd.xlane.f32.xlu0 %v2042_v48 }
 0xbd5   : > { %v3976_v3 = vpop.xlane.xlu2 %2031 }
 0xbd8   : > { %2159 = vmax.xlane.f32.xlu1 %v2158_v5 }
 0xbda   : > { %1900 = vmax.xlane.f32.xlu0 %v1899_v8 }
 0xbdd   : > { %v1806_v36 = vpop.permute.xlu1 %1805  ;;  %v1934_v44 = vpop.permute.xlu2 %1933 }
 0xbde   : > { %2736 = vmatpush.msk.msrb.mxu1 %vm902_vm7, %v1806_v36  ;;  %2746 = vmatpush.msk.msrb.mxu2 %vm902_vm7, %v1934_v44  ;;  %v2034_v44 = vsub.f32 %v3933_v23, %v3978_v4  ;;  %v2035_v23 = vsub.f32 %v3937_v33, %v3976_v3 }
 0xbe0   : > { %v2883_v9 = vpop.permute.xlu0 %2882  ;;  %2189 = vrot.lane.b32.xlu2 %v3744_v51, %s3086_s8 }
 0xbe1   : > { %v2884_v12 = vunpack.i.l.bf16 %v2883_v9  ;;  %v2885_v38 = vunpack.i.h.bf16 %v2883_v9 }
 0xbe2   : > { %2153 = vmax.xlane.f32.xlu0 %v2152_v16 }
 0xbe3   : > { %1962 = vmatpush.msrb.mxu2 %v2884_v12  ;;  %v2038_v12 = vmul.f32 1.442695, %v2034_v44 }
 0xbe5   : > { %1963 = vmatpush.msrb.mxu2 %v2885_v38 }
 0xbe8   : > { %v2888_v14 = vpop.permute.xlu0 %2887 }
 0xbe9   : > { %v2889_v24 = vunpack.i.l.bf16 %v2888_v14  ;;  %v2890_v15 = vunpack.i.h.bf16 %v2888_v14 }
 0xbeb   : > { %1834 = vmatpush.msrb.mxu1 %v2889_v24 }
 0xbed   : > { %1835 = vmatpush.msrb.mxu1 %v2890_v15 }
 0xc09   : > { %2156 = vmax.xlane.f32.xlu2 %v2155_v39 }
 0xc2b   : > { %v1788_v57 = vpop.xlane.xlu1 %1787 }
 0xc2c   : > { %2989 = vrcp.f32 %v1788_v57 }
 0xc32   : > { %v2990_v17 = vpop.eup %2989 }
 0xc33   : > { %v1798_v19 = vmul.f32 %v2990_v17, %v2982_v2  ;;  %v1791_v20 = vpop.xlane.xlu2 %1790 }
 0xc34   : > { %2991 = vrcp.f32 %v1791_v20 }
 0xc35   : > { %2737 = vmatmul.msk.f32.vlgmr.msrb.gmra.mxu1 %vm850_vm5, %v1798_v19 }
 0xc3a   : > { %v2992_v21 = vpop.eup %2991 }
 0xc3b   : > { %v1794_v27 = vpop.xlane.xlu1 %1793  ;;  %v1898_v32 = vpop.xlane.xlu2 %1897  ;;  %v1799_v60 = vmul.f32 %v2992_v21, %v2984_v31 }
 0xc3c   : > { %2993 = vrcp.f32 %v1794_v27  ;;  %v1905_v22 = vsub.f32 %v3953_v35, %v1898_v32 }
 0xc3d   : > { %2738 = vmatmul.msk.f32.gmra.mxu1 %vm850_vm5, %v1799_v60 }
 0xc3e   : > { %v1908_v50 = vmul.f32 1.442695, %v1905_v22 }
 0xc40   : > { %2995 = vpow2.f32 %v1908_v50 }
 0xc42   : > { %v2994_v56 = vpop.eup %2993 }
 0xc43   : > { %v1904_v62 = vpop.xlane.xlu1 %1903  ;;  %v2190_v1 = vpop.permute.xlu2 %2189  ;;  %v1800_v0 = vmul.f32 %v2994_v56, %v2986_v54 }
 0xc44   : > { %v1907_v2 = vsub.f32 %v3957_v63, %v1904_v62  ;;  %2766 = vmatpush.msk.msra.mxu2 %vm902_vm7, %v2190_v1 }
 0xc45   : > { %v3996_v61 = vpop.xlane.xlu0 %2043  ;;  %2739 = vmatmul.msk.f32.gmra.mxu1 %vm850_vm5, %v1800_v0 }
 0xc46   : > { %v2996_v59 = vpop.eup %2995  ;;  %v1912_v49 = vmul.f32 1.442695, %v1907_v2 }
 0xc47   : > { %v1914_v35 = vsel %vm850_vm5, %v2996_v59, 0.0 }
 0xc48   : > { %2997 = vpow2.f32 %v1912_v49  ;;  %1915 = vadd.xlane.f32.xlu0 %v1914_v35 }
 0xc4b   : > { %v2160_v9 = vpop.xlane.xlu1 %2159 }
 0xc4c   : > { %v2163_v16 = vsub.f32 %v3974_v47, %v2160_v9  ;;  %v2040_v47 = vmul.f32 1.442695, %v2035_v23 }
 0xc4d   : > { %v1901_v31 = vpop.xlane.xlu0 %1900 }
 0xc4e   : > { %v1906_v37 = vsub.f32 %v3955_v40, %v1901_v31  ;;  %v2998_v41 = vpop.eup %2997  ;;  %v2168_v38 = vmul.f32 1.442695, %v2163_v16 }
 0xc4f   : > { %v1920_v53 = vsel %vm857_vm6, %v2998_v41, 0.0 }
 0xc50   : > { %v1910_v52 = vmul.f32 1.442695, %v1906_v37  ;;  %1921 = vadd.xlane.f32.xlu0 %v1920_v53 }
 0xc52   : > { %2999 = vpow2.f32 %v1910_v52 }
 0xc55   : > { %v2154_v63 = vpop.xlane.xlu0 %2153 }
 0xc56   : > { %v2161_v54 = vsub.f32 %v3961_v43, %v2154_v63 }
 0xc58   : > { %v3000_v58 = vpop.eup %2999  ;;  %v2164_v55 = vmul.f32 1.442695, %v2161_v54 }
 0xc59   : > { %v1917_v45 = vsel %vm850_vm5, %v3000_v58, 0.0 }
 0xc5a   : > { %3001 = vpow2.f32 %v2164_v55  ;;  %1918 = vadd.xlane.f32.xlu1 %v1917_v45 }
 0xc60   : > { %v3002_v18 = vpop.eup %3001 }
 0xc61   : > { %v2170_v48 = vsel %vm850_vm5, %v3002_v18, 0.0 }
 0xc62   : > { %2171 = vadd.xlane.f32.xlu2 %v2170_v48 }
 0xc73   : > { %2892 = vrot.lane.b32.xlu1 %v3945_v26, %s3086_s8 }
 0xc7a   : > { %2897 = vrot.lane.b32.xlu2 %v3945_v26, %s3087_s9 }
 0xc7c   : > { %v2157_v40 = vpop.xlane.xlu2 %2156 }
 0xc7d   : > { %v2162_v5 = vsub.f32 %v3966_v46, %v2157_v40 }
 0xc7f   : > { %v2166_v43 = vmul.f32 1.442695, %v2162_v5 }
 0xc81   : > { %3003 = vpow2.f32 %v2166_v43 }
 0xc82   : > { %3005 = vpow2.f32 %v2038_v12 }
 0xc83   : > { %3007 = vpow2.f32 %v2168_v38 }
 0xc87   : > { %v3004_v8 = vpop.eup %3003 }
 0xc88   : > { %v2173_v36 = vsel %vm850_vm5, %v3004_v8, 0.0  ;;  %v4015_v14 = vpop.eup %3005 }
 0xc89   : > { %2174 = vadd.xlane.f32.xlu0 %v2173_v36  ;;  %v2045_v26 = vsel %vm850_vm5, %v4015_v14, 0.0  ;;  %v3008_v46 = vpop.eup %3007 }
 0xc8a   : > { %v2176_v24 = vsel %vm857_vm6, %v3008_v46, 0.0 }
 0xc9d   : > { %2046 = vadd.xlane.f32.xlu1 %v2045_v26  ;;  %2061 = vrot.lane.b32.xlu0 %v3744_v51, %s3087_s9 }
 0xca3   : > { %2177 = vadd.xlane.f32.xlu2 %v2176_v24 }
 0xcbb   : > { %v1916_v4 = vpop.xlane.xlu0 %1915 }
 0xcbc   : > { %3009 = vrcp.f32 %v1916_v4 }
 0xcbd   : > { %3011 = vpow2.f32 %v2040_v47 }
 0xcc2   : > { %v3010_v15 = vpop.eup %3009 }
 0xcc3   : > { %v3012_v39 = vpop.eup %3011  ;;  %v1926_v57 = vmul.f32 %v3010_v15, %v2996_v59  ;;  %v1922_v19 = vpop.xlane.xlu0 %1921 }
 0xcc4   : > { %v2048_v17 = vsel %vm857_vm6, %v3012_v39, 0.0 }
 0xcc5   : > { %2747 = vmatmul.msk.f32.vlgmr.msrb.gmra.mxu2 %vm850_vm5, %v1926_v57 }
 0xcc7   : > { %2049 = vadd.xlane.f32.xlu0 %v2048_v17 }
 0xccd   : > { %v1919_v51 = vpop.xlane.xlu1 %1918 }
 0xcce   : > { %3013 = vrcp.f32 %v1919_v51 }
 0xccf   : > { %3015 = vrcp.f32 %v1922_v19 }
 0xcd4   : > { %v3014_v20 = vpop.eup %3013 }
 0xcd5   : > { %v1927_v21 = vmul.f32 %v3014_v20, %v3000_v58  ;;  %v3016_v33 = vpop.eup %3015  ;;  %v2172_v3 = vpop.xlane.xlu2 %2171 }
 0xcd6   : > { %v1928_v27 = vmul.f32 %v3016_v33, %v2998_v41  ;;  %3017 = vrcp.f32 %v2172_v3 }
 0xcd7   : > { %2748 = vmatmul.msk.f32.gmra.mxu2 %vm850_vm5, %v1927_v21  ;;  %v3048_v21 = vld [vmem:[%s4145_s7 + $0x18] sm:$0xff] }
 0xcdc   : > { %v3018_v60 = vpop.eup %3017 }
 0xcdd   : > { %v2182_v56 = vmul.f32 %v3018_v60, %v3002_v18  ;;  %v2898_v2 = vpop.permute.xlu2 %2897  ;;  %v3049_v60 = vld [vmem:[%s4145_s7 + $0x20] sm:$0xff] }
 0xcde   : > { %v2899_v31 = vunpack.i.l.bf16 %v2898_v2  ;;  %v2900_v37 = vunpack.i.h.bf16 %v2898_v2 }
 0xcdf   : > { %2749 = vmatmul.msk.f32.gmra.mxu2 %vm850_vm5, %v1928_v27 }
 0xce5   : > { %v2893_v32 = vpop.permute.xlu1 %2892 }
 0xce6   : > { %v2894_v22 = vunpack.i.l.bf16 %v2893_v32  ;;  %v2895_v50 = vunpack.i.h.bf16 %v2893_v32 }
 0xce8   : > { %2218 = vmatpush.msra.mxu2 %v2894_v22 }
 0xcea   : > { %2219 = vmatpush.msra.mxu2 %v2895_v50 }
 0xceb   : > { %2767 = vmatmul.msk.f32.vlgmr.msra.gmra.mxu2 %vm850_vm5, %v2182_v56 }
 0xcfc   : > { %v2175_v62 = vpop.xlane.xlu0 %2174 }
 0xcfd   : > { %3019 = vrcp.f32 %v2175_v62 }
 0xcfe   : > { %3021 = vrcp.f32 %v3996_v61 }
 0xd03   : > { %v3020_v1 = vpop.eup %3019 }
 0xd04   : > { %v2183_v0 = vmul.f32 %v3020_v1, %v3004_v8  ;;  %v3022_v35 = vpop.eup %3021  ;;  %v3050_v1 = vld [vmem:[%s4145_s7 + $0x28] sm:$0x1] }
 0xd05   : > { %v2054_v41 = vmul.f32 %v3022_v35, %v3968_v29 }
 0xd06   : > { %2768 = vmatmul.msk.f32.gmra.mxu2 %vm850_vm5, %v2183_v0 }
 0xd0f   : > { %v2062_v49 = vpop.permute.xlu0 %2061 }
 0xd10   : > { %v2047_v59 = vpop.xlane.xlu1 %2046  ;;  %2756 = vmatpush.msk.msra.mxu1 %vm902_vm7, %v2062_v49 }
 0xd11   : > { %3023 = vrcp.f32 %v2047_v59 }
 0xd12   : > { %2090 = vmatpush.msra.mxu1 %v2899_v31 }
 0xd14   : > { %2091 = vmatpush.msra.mxu1 %v2900_v37 }
 0xd15   : > { %2757 = vmatmul.msk.f32.vlgmr.msra.gmra.mxu1 %vm850_vm5, %v2054_v41 }
 0xd16   : > { %v2178_v52 = vpop.xlane.xlu2 %2177  ;;  %2409 = vmatpush.msrb.mxu1 %v3692_v10 }
 0xd17   : > { %3025 = vrcp.f32 %v2178_v52  ;;  %v3024_v61 = vpop.eup %3023 }
 0xd18   : > { %2410 = vmatpush.msrb.mxu1 %v3696_v7  ;;  %v2055_v53 = vmul.f32 %v3024_v61, %v4015_v14 }
 0xd1a   : > { %2411 = vmatpush.msrb.mxu1 %v3700_v11 }
 0xd1c   : > { %2412 = vmatpush.msrb.mxu1 %v3703_v13  ;;  %v1837_v13 = vpop.f32.mrf.mxu1 }
 0xd1d   : > { %v3026_v63 = vpop.eup %3025  ;;  %2758 = vmatmul.msk.f32.gmra.mxu1 %vm850_vm5, %v2055_v53 }
 0xd1e   : > { %v2184_v29 = vmul.f32 %v3026_v63, %v3008_v46 }
 0xd20   : > { %2769 = vmatmul.msk.f32.gmra.mxu2 %vm850_vm5, %v2184_v29 }
 0xd24   : > { %v1840_v18 = vpop.f32.mrf.mxu1 }
 0xd2c   : > { %v1843_v48 = vpop.f32.mrf.mxu1 }
 0xd3a   : > { %v2050_v54 = vpop.xlane.xlu0 %2049 }
 0xd3b   : > { %3027 = vrcp.f32 %v2050_v54 }
 0xd41   : > { %v3028_v58 = vpop.eup %3027 }
 0xd42   : > { %v2056_v55 = vmul.f32 %v3028_v58, %v3012_v39 }
 0xd44   : > { %2759 = vmatmul.msk.f32.gmra.mxu1 %vm850_vm5, %v2056_v55 }
 0xd48   : > { %v1965_v10 = vpop.f32.mrf.mxu2 }
 0xd49   : > { %2233 = vrot.lane.b32.xlu1 %v1965_v10, %s3088_s11 }
 0xd5a   : > { %v1968_v7 = vpop.f32.mrf.mxu2 }
 0xd62   : > { %v1971_v11 = vpop.f32.mrf.mxu2 }
 0xd6e   : > { %v2221_v45 = vpop.f32.mrf.mxu2 }
 0xd6f   : > { %2257 = vrot.lane.b32.xlu0 %v2221_v45, %s4150_s15 }
 0xd77   : > { %2235 = vrot.lane.b32.xlu0 %v1968_v7, %s3088_s11 }
 0xd7f   : > { %2237 = vrot.lane.b32.xlu0 %v1971_v11, %s3088_s11 }
 0xd89   : > { %v2224_v5 = vpop.f32.mrf.mxu2 }
 0xd92   : > { %v2093_v40 = vpop.f32.mrf.mxu1 }
 0xd93   : > { %2245 = vrot.lane.b32.xlu2 %v2093_v40, %s4151_s17 }
 0xd9a   : > { %v2096_v43 = vpop.f32.mrf.mxu1 }
 0xd9b   : > { %2259 = vrot.lane.b32.xlu2 %v2224_v5, %s4150_s15  ;;  %2247 = vrot.lane.b32.xlu1 %v2096_v43, %s4151_s17 }
 0xda3   : > { %v2227_v8 = vpop.f32.mrf.mxu2 }
 0xda4   : > { %2261 = vrot.lane.b32.xlu2 %v2227_v8, %s4150_s15 }
 0xdbb   : > { %v2234_v44 = vpop.permute.xlu1 %2233 }
 0xdbc   : > { %v2266_v9 = vsel %vm811_vm4, %v1837_v13, %v2234_v44 }
 0xdc1   : > { %v2099_v36 = vpop.f32.mrf.mxu1 }
 0xdc2   : > { %2249 = vrot.lane.b32.xlu1 %v2099_v36, %s4151_s17 }
 0xde1   : > { %v2258_v16 = vpop.permute.xlu0 %2257 }
 0xde9   : > { %v2236_v26 = vpop.permute.xlu0 %2235 }
 0xdea   : > { %v2267_v46 = vsel %vm811_vm4, %v1840_v18, %v2236_v26 }
 0xded   : > { %v2246_v12 = vpop.permute.xlu2 %2245 }
 0xdee   : > { %v2269_v38 = vsel %vm1354_vm1, %v2266_v9, %v2246_v12 }
 0xdef   : > { %v2272_v14 = vsel %vm1358_vm2, %v2269_v38, %v2258_v16 }
 0xdf0   : > { %2770 = vmatmul.msk.f32.vlgmr.msrb.gmra.mxu0 %vm683_vm8, %v2272_v14 }
 0xdf1   : > { %v2238_v15 = vpop.permute.xlu0 %2237 }
 0xdf2   : > { %v2268_v39 = vsel %vm811_vm4, %v1843_v48, %v2238_v15 }
 0xdf5   : > { %v2260_v23 = vpop.permute.xlu2 %2259 }
 0xdfe   : > { %v2262_v17 = vpop.permute.xlu2 %2261 }
 0xe0d   : > { %v2248_v24 = vpop.permute.xlu1 %2247 }
 0xe0e   : > { %v2270_v47 = vsel %vm1354_vm1, %v2267_v46, %v2248_v24 }
 0xe0f   : > { %v2273_v4 = vsel %vm1358_vm2, %v2270_v47, %v2260_v23 }
 0xe10   : > { %2771 = vmatmul.msk.f32.gmra.mxu0 %vm683_vm8, %v2273_v4 }
 0xe34   : > { %v2250_v57 = vpop.permute.xlu1 %2249 }
 0xe35   : > { %v2271_v51 = vsel %vm1354_vm1, %v2268_v39, %v2250_v57 }
 0xe36   : > { %v2274_v19 = vsel %vm1358_vm2, %v2271_v51, %v2262_v17 }
 0xe37   : > { %2772 = vmatmul.msk.f32.gmra.mxu0 %vm683_vm8, %v2274_v19 }
 0xe6d   : > { %v2301_v20 = vpop.f32.mrf.mxu0 }
 0xe6e   : > { %v2310_v33 = vadd.f32 %v3048_v21, %v2301_v20 }
 0xe70   : > { %v4067_v3 = vadd.f32 %v2310_v33, %v3630_v42 }
 0xe72   : > { %v2316_v27 = vsel %vm683_vm8, %v4067_v3, 0.0 }
 0xe73   : > { %2317 = vadd.xlane.f32.xlu0 %v2316_v27 }
 0xe8d   : > { %v2304_v32 = vpop.f32.mrf.mxu0 }
 0xe8e   : > { %v2311_v22 = vadd.f32 %v3049_v60, %v2304_v32 }
 0xe90   : > { %v4075_v50 = vadd.f32 %v2311_v22, %v3630_v42 }
 0xe92   : > { %v2319_v56 = vsel %vm683_vm8, %v4075_v50, 0.0 }
 0xe93   : > { %2320 = vadd.xlane.f32.xlu1 %v2319_v56 }
 0xeb4   : > { %v2307_v62 = vpop.f32.mrf.mxu0 }
 0xeb5   : > { %v2312_v0 = vadd.f32 %v3050_v1, %v2307_v62 }
 0xeb7   : > { %v4083_v2 = vadd.f32 %v2312_v0, %v3630_v42 }
 0xeb9   : > { %v2322_v59 = vsel %vm690_vm9, %v4083_v2, 0.0 }
 0xeba   : > { %2323 = vadd.xlane.f32.xlu2 %v2322_v59 }
 0xee6   : > { %v2318_v49 = vpop.xlane.xlu0 %2317 }
 0xee7   : > { %v2325_v35 = vmul.f32 %v2318_v49, %v3348_v34 }
 0xee9   : > { %v2328_v31 = vsub.f32 %v4067_v3, %v2325_v35 }
 0xeeb   : > { %v2331_v37 = vmul.f32 %v2328_v31, %v2328_v31 }
 0xeed   : > { %v2334_v41 = vsel %vm683_vm8, %v2331_v37, 0.0 }
 0xeee   : > { %2335 = vadd.xlane.f32.xlu0 %v2334_v41 }
 0xf06   : > { %v2321_v52 = vpop.xlane.xlu1 %2320 }
 0xf07   : > { %v2326_v61 = vmul.f32 %v2321_v52, %v3348_v34 }
 0xf09   : > { %v2329_v53 = vsub.f32 %v4075_v50, %v2326_v61 }
 0xf0b   : > { %v2332_v42 = vmul.f32 %v2329_v53, %v2329_v53 }
 0xf0d   : > { %v2337_v63 = vsel %vm683_vm8, %v2332_v42, 0.0 }
 0xf0e   : > { %2338 = vadd.xlane.f32.xlu1 %v2337_v63 }
 0xf2d   : > { %v2324_v29 = vpop.xlane.xlu2 %2323 }
 0xf2e   : > { %v2327_v54 = vmul.f32 %v2324_v29, %v3348_v34 }
 0xf30   : > { %v2330_v58 = vsub.f32 %v4083_v2, %v2327_v54 }
 0xf32   : > { %v2333_v55 = vmul.f32 %v2330_v58, %v2330_v58 }
 0xf34   : > { %v2340_v10 = vsel %vm690_vm9, %v2333_v55, 0.0 }
 0xf35   : > { %2341 = vadd.xlane.f32.xlu2 %v2340_v10 }
 0xf61   : > { %v2336_v7 = vpop.xlane.xlu0 %2335 }
 0xf62   : > { %v2343_v11 = vmul.f32 %v2336_v7, %v3348_v34 }
 0xf64   : > { %v2346_v45 = vadd.f32 1e-05, %v2343_v11 }
 0xf66   : > { %3029 = vrsqrt.f32 %v2346_v45  ;;  %vm2355_vm5 = vweird.f32 %v2346_v45 }
 0xf6c   : > { %v3030_v13 = vpop.eup %3029 }
 0xf6d   : > { %v2350_v18 = vmul.f32 %v3030_v13, %v2346_v45  ;;  %vm2356_vm4 = vweird.f32 %v3030_v13 }
 0xf6e   : > { %vm2357_vm6 = vmor %vm2355_vm5, %vm2356_vm4 }
 0xf6f   : > { %v2351_v48 = vmul.f32 %v3030_v13, %v2350_v18 }
 0xf71   : > { %v2352_v40 = vmul.f32 0.5, %v2351_v48 }
 0xf73   : > { %v2353_v5 = vsub.f32 1.5, %v2352_v40 }
 0xf75   : > { %v2354_v43 = vmul.f32 %v3030_v13, %v2353_v5 }
 0xf77   : > { %v2358_v8 = vsel %vm2357_vm6, %v3030_v13, %v2354_v43 }
 0xf78   : > { %v2379_v36 = vmul.f32 %v2358_v8, %v2328_v31 }
 0xf7a   : > { %v2382_v44 = vmul.f32 %v2379_v36, %v3717_v25 }
 0xf7c   : > { %v2385_v9 = vadd.f32 %v2382_v44, %v3721_v28 }
 0xf7e   : > { %2773 = vmatmul.msk.f32.vlgmr.msrb.gmra.mxu1 %vm683_vm8, %v2385_v9 }
 0xf81   : > { %v2339_v12 = vpop.xlane.xlu1 %2338 }
 0xf82   : > { %v2344_v16 = vmul.f32 %v2339_v12, %v3348_v34 }
 0xf84   : > { %v2347_v38 = vadd.f32 1e-05, %v2344_v16 }
 0xf86   : > { %3031 = vrsqrt.f32 %v2347_v38  ;;  %vm2365_vm1 = vweird.f32 %v2347_v38 }
 0xf8c   : > { %v3032_v14 = vpop.eup %3031 }
 0xf8d   : > { %v2360_v26 = vmul.f32 %v3032_v14, %v2347_v38  ;;  %vm2366_vm7 = vweird.f32 %v3032_v14 }
 0xf8e   : > { %vm2367_vm2 = vmor %vm2365_vm1, %vm2366_vm7 }
 0xf8f   : > { %v2361_v46 = vmul.f32 %v3032_v14, %v2360_v26 }
 0xf91   : > { %v2362_v24 = vmul.f32 0.5, %v2361_v46 }
 0xf93   : > { %v2363_v23 = vsub.f32 1.5, %v2362_v24 }
 0xf95   : > { %v2364_v47 = vmul.f32 %v3032_v14, %v2363_v23 }
 0xf97   : > { %v2368_v4 = vsel %vm2367_vm2, %v3032_v14, %v2364_v47 }
 0xf98   : > { %v2380_v15 = vmul.f32 %v2368_v4, %v2329_v53 }
 0xf9a   : > { %v2383_v39 = vmul.f32 %v2380_v15, %v3717_v25 }
 0xf9c   : > { %v2386_v57 = vadd.f32 %v2383_v39, %v3721_v28 }
 0xf9e   : > { %2774 = vmatmul.msk.f32.gmra.mxu1 %vm683_vm8, %v2386_v57 }
 0xfa8   : > { %v2342_v17 = vpop.xlane.xlu2 %2341 }
 0xfa9   : > { %v2345_v51 = vmul.f32 %v2342_v17, %v3348_v34 }
 0xfab   : > { %v2348_v19 = vadd.f32 1e-05, %v2345_v51 }
 0xfad   : > { %3033 = vrsqrt.f32 %v2348_v19  ;;  %vm2375_vm3 = vweird.f32 %v2348_v19 }
 0xfb3   : > { %v3034_v20 = vpop.eup %3033 }
 0xfb4   : > { %v2370_v21 = vmul.f32 %v3034_v20, %v2348_v19  ;;  %vm2376_vm0 = vweird.f32 %v3034_v20 }
 0xfb5   : > { %vm2377_vm10 = vmor %vm2375_vm3, %vm2376_vm0 }
 0xfb6   : > { %v2371_v33 = vmul.f32 %v3034_v20, %v2370_v21 }
 0xfb8   : > { %v2372_v27 = vmul.f32 0.5, %v2371_v33 }
 0xfba   : > { %v2373_v32 = vsub.f32 1.5, %v2372_v27 }
 0xfbc   : > { %v2374_v60 = vmul.f32 %v3034_v20, %v2373_v32 }
 0xfbe   : > { %v2378_v22 = vsel %vm2377_vm10, %v3034_v20, %v2374_v60 }
 0xfbf   : > { %v2381_v56 = vmul.f32 %v2378_v22, %v2330_v58 }
 0xfc1   : > { %v2384_v62 = vmul.f32 %v2381_v56, %v3717_v25 }
 0xfc3   : > { %v2387_v1 = vadd.f32 %v2384_v62, %v3721_v28 }
 0xfc5   : > { %2775 = vmatmul.msk.f32.gmra.mxu1 %vm683_vm8, %v2387_v1 }
 0xffb   : > { %v2414_v34 = vpop.f32.mrf.mxu1 }
 0xffc   : > { %v2415_v0 = vadd.f32 %v2414_v34, %v3832_v30 }
 0xffe   : > { %v2776_v59 = vmul.f32 -1.702, %v2415_v0 }
0x1000   : > { %v2429_v49 = vmul.f32 1.442695, %v2776_v59 }
0x1002   : > { %3035 = vpow2.f32 %v2429_v49 }
0x1008   : > { %v3036_v35 = vpop.eup %3035 }
0x1009   : > { %v2435_v31 = vadd.f32 1.0, %v3036_v35 }
0x100b   : > { %3037 = vrcp.f32 %v2435_v31  ;;  %v2449_v61 = vand.u32 2147483648, %v2435_v31  ;;  %v2447_v25 = vand.u32 2147483647, %v2435_v31  ;;  %vm2443_vm12 = vweird.f32 %v2435_v31 }
0x100d   : > { %v2450_v28 = vor.u32 1.1754944e-38, %v2449_v61  ;;  %vm2448_vm14 = vcmp.eq.f32.partialorder %v2447_v25, 8.507059e+37 }
0x1011   : > { %v3038_v37 = vpop.eup %3037 }
0x1012   : > { %v2439_v41 = vmul.f32 %v3038_v37, %v2435_v31  ;;  %vm2444_vm11 = vweird.f32 %v3038_v37 }
0x1013   : > { %vm2445_vm13 = vmor %vm2443_vm12, %vm2444_vm11 }
0x1014   : > { %v2440_v52 = vsub.f32 1.0, %v2439_v41 }
0x1016   : > { %v2441_v53 = vmul.f32 %v3038_v37, %v2440_v52 }
0x1018   : > { %v2442_v42 = vadd.f32 %v3038_v37, %v2441_v53 }
0x101a   : > { %v2446_v63 = vsel %vm2445_vm13, %v3038_v37, %v2442_v42 }
0x101b   : > { %v2451_v29 = vsel %vm2448_vm14, %v2450_v28, %v2446_v63  ;;  %v2417_v54 = vpop.f32.mrf.mxu1 }
0x101c   : > { %v2483_v58 = vmul.f32 %v2451_v29, %v2415_v0  ;;  %v2418_v55 = vadd.f32 %v2417_v54, %v3832_v30 }
0x101e   : > { %v2777_v10 = vmul.f32 -1.702, %v2418_v55  ;;  %2502 = vmatmul.f32.vlgmr.msrb.gmra.mxu3 %v2483_v58 }
0x1020   : > { %v2431_v7 = vmul.f32 1.442695, %v2777_v10 }
0x1022   : > { %3039 = vpow2.f32 %v2431_v7 }
0x1028   : > { %v3040_v11 = vpop.eup %3039 }
0x1029   : > { %v2436_v45 = vadd.f32 1.0, %v3040_v11 }
0x102b   : > { %3041 = vrcp.f32 %v2436_v45  ;;  %v2464_v40 = vand.u32 2147483648, %v2436_v45  ;;  %v2462_v43 = vand.u32 2147483647, %v2436_v45  ;;  %vm2458_vm4 = vweird.f32 %v2436_v45 }
0x102d   : > { %v2465_v36 = vor.u32 1.1754944e-38, %v2464_v40  ;;  %vm2463_vm6 = vcmp.eq.f32.partialorder %v2462_v43, 8.507059e+37 }
0x1031   : > { %v3042_v13 = vpop.eup %3041 }
0x1032   : > { %v2454_v18 = vmul.f32 %v3042_v13, %v2436_v45  ;;  %vm2459_vm15 = vweird.f32 %v3042_v13 }
0x1033   : > { %vm2460_vm5 = vmor %vm2458_vm4, %vm2459_vm15 }
0x1034   : > { %v2455_v48 = vsub.f32 1.0, %v2454_v18 }
0x1036   : > { %v2456_v5 = vmul.f32 %v3042_v13, %v2455_v48 }
0x1038   : > { %v2457_v8 = vadd.f32 %v3042_v13, %v2456_v5 }
0x103a   : > { %v2461_v44 = vsel %vm2460_vm5, %v3042_v13, %v2457_v8 }
0x103b   : > { %v2466_v9 = vsel %vm2463_vm6, %v2465_v36, %v2461_v44 }
0x103c   : > { %v2484_v12 = vmul.f32 %v2466_v9, %v2418_v55 }
0x103e   : > { %2505 = vmatmul.f32.gmra.mxu3 %v2484_v12 }
0x1042   : > { %v2420_v16 = vpop.f32.mrf.mxu1 }
0x1043   : > { %v2421_v38 = vadd.f32 %v2420_v16, %v3832_v30 }
0x1045   : > { %v2778_v14 = vmul.f32 -1.702, %v2421_v38 }
0x1047   : > { %v2433_v26 = vmul.f32 1.442695, %v2778_v14 }
0x1049   : > { %3043 = vpow2.f32 %v2433_v26 }
0x104f   : > { %v3044_v46 = vpop.eup %3043 }
0x1050   : > { %v2437_v24 = vadd.f32 1.0, %v3044_v46 }
0x1052   : > { %3045 = vrcp.f32 %v2437_v24  ;;  %v2479_v15 = vand.u32 2147483648, %v2437_v24  ;;  %v2477_v57 = vand.u32 2147483647, %v2437_v24  ;;  %vm2473_vm1 = vweird.f32 %v2437_v24 }
0x1054   : > { %v2480_v51 = vor.u32 1.1754944e-38, %v2479_v15  ;;  %vm2478_vm0 = vcmp.eq.f32.partialorder %v2477_v57, 8.507059e+37 }
0x1058   : > { %v3046_v23 = vpop.eup %3045 }
0x1059   : > { %v2469_v47 = vmul.f32 %v3046_v23, %v2437_v24  ;;  %vm2474_vm7 = vweird.f32 %v3046_v23 }
0x105a   : > { %vm2475_vm2 = vmor %vm2473_vm1, %vm2474_vm7 }
0x105b   : > { %v2470_v4 = vsub.f32 1.0, %v2469_v47 }
0x105d   : > { %v2471_v39 = vmul.f32 %v3046_v23, %v2470_v4 }
0x105f   : > { %v2472_v17 = vadd.f32 %v3046_v23, %v2471_v39 }
0x1061   : > { %v2476_v19 = vsel %vm2475_vm2, %v3046_v23, %v2472_v17 }
0x1062   : > { %v2481_v30 = vsel %vm2478_vm0, %v2480_v51, %v2476_v19 }
0x1063   : > { %v2485_v20 = vmul.f32 %v2481_v30, %v2421_v38 }
0x1065   : > { %2508 = vmatmul.f32.gmra.mxu3 %v2485_v20 }
0x10a1   : > { %v2503_v21 = vpop.f32.mrf.mxu3 }
0x10a2   : > { %v2504_v33 = vadd.f32 %v2503_v21, %v3909_v6 }
0x10a4   : > { %v2512_v27 = vadd.f32 %v2504_v33, %v4067_v3 }
0x10a6   : > { %2779 = vst.msk [vmem:[%s4145_s7 + $0x18] sm:$0xff] %vm683_vm8, %v2512_v27 }
0x10c1   : > { %v2506_v32 = vpop.f32.mrf.mxu3 }
0x10c2   : > { %v2507_v60 = vadd.f32 %v2506_v32, %v3909_v6 }
0x10c4   : > { %v2513_v22 = vadd.f32 %v2507_v60, %v4075_v50 }
0x10c6   : > { %2780 = vst.msk [vmem:[%s4145_s7 + $0x20] sm:$0xff] %vm683_vm8, %v2513_v22 }
0x10e8   : > { %v2509_v56 = vpop.f32.mrf.mxu3 }
0x10e9   : > { %v2510_v62 = vadd.f32 %v2509_v56, %v3909_v6 }
0x10eb   : > { %v2514_v3 = vadd.f32 %v2510_v62, %v4083_v2 }
0x10ed   : > { %2781 = vst.msk [vmem:[%s4145_s7 + $0x28] sm:$0x1] %vm690_vm9, %v2514_v3 }
0x10ee PF: > { %s17_s26 = sadd.s32 1, %s3073_s26   ;;  %s4152_s24 = smov %s3069_s25 }
0x10ef   : > { %p14_p6 = scmp.ge.s32.totalorder %s17_s26, 4   ;;  %s4153_s25 = smov %s4155_s27 }
0x10f1   :  { %16 = sbr.rel (!%p14_p6) target bundleno = 2 (0x2), region = 100 }

</bundles_post_ra>
